<compile_context>
chip_gen: v6e
topology: v6e:2x2x1
jax: 0.10.0
libtpu: 0.0.40
codegen_flags: <defaults>
</compile_context>

<pallas_src>
import functools

import jax
import jax.numpy as jnp
import numpy as np
from jax.experimental import pallas as pl
from jax.experimental.pallas import tpu as pltpu


def _make_kernel(d, S, has_bias):
    def kernel(*refs):
        if has_bias:
            w_ref, v_ref, wb_ref, vb_ref, o_ref = refs
        else:
            w_ref, v_ref, o_ref = refs
            wb_ref = vb_ref = None

        tb = w_ref.shape[2]
        # acc[s, t, b] = sum_k W[k, s, b] * V[k, t, b]
        acc = jnp.zeros((S, S, tb), jnp.float32)
        for k in range(d):                       # d is small & static (unrolled)
            wk = w_ref[k]                        # (S, TB)  W senses on sublanes
            vk = v_ref[k]                        # (S, TB)  V senses on sublanes
            acc = acc + wk[:, None, :] * vk[None, :, :]     # (S, S, TB)

        if has_bias:
            # bias[s, t, b] = wb[j_b, s] + vb[i_b, t]
            acc = acc + wb_ref[...][:, None, :] + vb_ref[...][None, :, :]

        # Stabilized logsumexp over the (S, S) sense grid, per pair (lane).
        m = jnp.max(jnp.max(acc, axis=0), axis=0, keepdims=True)      # (1, TB)
        e = jnp.exp(acc - m[None, :, :])                              # (S, S, TB)
        s = jnp.sum(jnp.sum(e, axis=0), axis=0, keepdims=True)        # (1, TB)
        o_ref[...] = jnp.log(s) + m                                   # (1, TB)

    return kernel


def multisense_forward(IJ, V, W, vb=None, wb=None, *, tb=256):
    """Pallas forward matching MultisenseLearner.forward.

    IJ: (B, 2) int; col 0 indexes V/vb (vocab), col 1 indexes W/wb (covocab).
    V:  (vocab, d, S) f32,  W: (covocab, d, S) f32
    vb: (vocab, S) f32 or None, wb: (covocab, S) f32 or None (bias=False)
    returns: (B,) f32 = log(sum_{s,t} exp(W[j]^T V[i] + wb[j,s] + vb[i,t]))
    """
    assert tb % 128 == 0, "pair tile must be lane-dense (multiple of 128)"
    B = int(IJ.shape[0])
    vocab, d, S = V.shape
    has_bias = (vb is not None) and (wb is not None)

    i = IJ[:, 0].astype(jnp.int32)
    j = IJ[:, 1].astype(jnp.int32)
    num_tiles = pl.cdiv(B, tb)
    B_pad = num_tiles * tb
    if B_pad != B:
        pad = B_pad - B
        i = jnp.pad(i, (0, pad))                 # pad with a valid index (0)
        j = jnp.pad(j, (0, pad))

    # Wrapper-side gather + layout plumbing: pairs go onto the 128-lane axis.
    WjT = jnp.transpose(jnp.take(W, j, axis=0), (1, 2, 0))   # (d, S, B_pad)
    ViT = jnp.transpose(jnp.take(V, i, axis=0), (1, 2, 0))   # (d, S, B_pad)

    in_arrays = [WjT, ViT]
    in_specs = [
        pl.BlockSpec((d, S, tb), lambda g: (0, 0, g)),
        pl.BlockSpec((d, S, tb), lambda g: (0, 0, g)),
    ]
    if has_bias:
        wbj = jnp.transpose(jnp.take(wb, j, axis=0), (1, 0))  # (S, B_pad)
        vbi = jnp.transpose(jnp.take(vb, i, axis=0), (1, 0))  # (S, B_pad)
        in_arrays += [wbj, vbi]
        in_specs += [
            pl.BlockSpec((S, tb), lambda g: (0, g)),
            pl.BlockSpec((S, tb), lambda g: (0, g)),
        ]

    out = pl.pallas_call(
        _make_kernel(d, S, has_bias),
        out_shape=jax.ShapeDtypeStruct((num_tiles, tb), jnp.float32),
        grid=(num_tiles,),
        in_specs=in_specs,
        out_specs=pl.BlockSpec((1, tb), lambda g: (g, 0)),
        compiler_params=pltpu.CompilerParams(
            # Every pair tile is independent -> shard across TCs on v7x.
            dimension_semantics=("parallel",),
        ),
    )(*in_arrays)
    return out.reshape(B_pad)[:B]


def xavier_uniform(key, shape):
    # Matches torch.nn.init.xavier_uniform_ fan computation (gain=1).
    if len(shape) > 2:
        receptive = int(np.prod(shape[2:]))
        fan_in, fan_out = shape[1] * receptive, shape[0] * receptive
    else:
        fan_in, fan_out = shape[1], shape[0]
    bound = float(np.sqrt(6.0 / (fan_in + fan_out)))
    return jax.random.uniform(key, shape, jnp.float32, -bound, bound)


def reference_forward(IJ, V, W, vb, wb):
    Vi = V[IJ[:, 0]]                      # (B, d, S)
    Wj = W[IJ[:, 1]]                      # (B, d, S)
    scores = jnp.einsum('bds,bdt->bst', Wj, Vi)          # bmm(W^T, V)
    if vb is not None and wb is not None:
        scores = scores + wb[IJ[:, 1]][:, :, None] + vb[IJ[:, 0]][:, None, :]
    return jnp.log(jnp.exp(scores).sum(axis=(1, 2)))


if __name__ == "__main__":
    vocab, covocab, d, num_senses, batch = 16, 12, 32, 8, 8
    key = jax.random.PRNGKey(0)
    kV, kW, kvb, kwb, ki, kj = jax.random.split(key, 6)
    V = xavier_uniform(kV, (vocab, d, num_senses))
    W = xavier_uniform(kW, (covocab, d, num_senses))
    vb = xavier_uniform(kvb, (vocab, num_senses))
    wb = xavier_uniform(kwb, (covocab, num_senses))
    i_idx = jax.random.randint(ki, (batch,), 0, vocab, jnp.int32)
    j_idx = jax.random.randint(kj, (batch,), 0, covocab, jnp.int32)
    IJ = jnp.stack([i_idx, j_idx], axis=1)

    # bias=True path
    out_b = jax.block_until_ready(multisense_forward(IJ, V, W, vb, wb))
    ref_b = reference_forward(IJ, V, W, vb, wb)
    np.testing.assert_allclose(np.asarray(out_b), np.asarray(ref_b),
                               rtol=1e-5, atol=1e-5)

    # bias=False path (bias add skipped entirely, no zero arrays streamed)
    out_nb = jax.block_until_ready(multisense_forward(IJ, V, W))
    ref_nb = reference_forward(IJ, V, W, None, None)
    np.testing.assert_allclose(np.asarray(out_nb), np.asarray(ref_nb),
                               rtol=1e-5, atol=1e-5)

    print("KERNEL_OK")
</pallas_src>

<mosaic_0001>
module attributes {stable_mosaic.version = 11 : i64} {
  func.func @kernel(%arg0: i32, %arg1: memref<32x8x256xf32, #tpu.memory_space<vmem>>, %arg2: memref<32x8x256xf32, #tpu.memory_space<vmem>>, %arg3: memref<8x256xf32, #tpu.memory_space<vmem>>, %arg4: memref<8x256xf32, #tpu.memory_space<vmem>>, %arg5: memref<1x256xf32, #tpu.memory_space<vmem>>) attributes {dimension_semantics = [#tpu.dimension_semantics<parallel>], iteration_bounds = array<i64: 1>, scalar_prefetch = 0 : i64, scratch_operands = 0 : i64, tpu.core_type = #tpu.core_type<tc>, window_params = [{transform_indices = @transform_0, window_bounds = array<i64: 32, 8, 256>}, {transform_indices = @transform_1, window_bounds = array<i64: 32, 8, 256>}, {transform_indices = @transform_2, window_bounds = array<i64: 8, 256>}, {transform_indices = @transform_3, window_bounds = array<i64: 8, 256>}, {transform_indices = @transform_4, window_bounds = array<i64: 1, 256>}]} {
    %cst = arith.constant 0.000000e+00 : f32
    %0 = vector.broadcast %cst : f32 to vector<8x8x256xf32>
    %c0 = arith.constant 0 : index
    %c0_0 = arith.constant 0 : index
    %c0_1 = arith.constant 0 : index
    %1 = vector.load %arg1[%c0, %c0_0, %c0_1] : memref<32x8x256xf32, #tpu.memory_space<vmem>>, vector<1x8x256xf32>
    %2 = vector.shape_cast %1 : vector<1x8x256xf32> to vector<8x256xf32>
    %c0_2 = arith.constant 0 : index
    %c0_3 = arith.constant 0 : index
    %c0_4 = arith.constant 0 : index
    %3 = vector.load %arg2[%c0_2, %c0_3, %c0_4] : memref<32x8x256xf32, #tpu.memory_space<vmem>>, vector<1x8x256xf32>
    %4 = vector.shape_cast %3 : vector<1x8x256xf32> to vector<8x256xf32>
    %5 = vector.shape_cast %2 : vector<8x256xf32> to vector<8x1x256xf32>
    %6 = vector.shape_cast %4 : vector<8x256xf32> to vector<1x8x256xf32>
    %7 = vector.broadcast %5 : vector<8x1x256xf32> to vector<8x8x256xf32>
    %8 = vector.broadcast %6 : vector<1x8x256xf32> to vector<8x8x256xf32>
    %9 = arith.mulf %7, %8 : vector<8x8x256xf32>
    %10 = arith.addf %0, %9 : vector<8x8x256xf32>
    %c1 = arith.constant 1 : index
    %c0_5 = arith.constant 0 : index
    %c0_6 = arith.constant 0 : index
    %11 = vector.load %arg1[%c1, %c0_5, %c0_6] : memref<32x8x256xf32, #tpu.memory_space<vmem>>, vector<1x8x256xf32>
    %12 = vector.shape_cast %11 : vector<1x8x256xf32> to vector<8x256xf32>
    %c1_7 = arith.constant 1 : index
    %c0_8 = arith.constant 0 : index
    %c0_9 = arith.constant 0 : index
    %13 = vector.load %arg2[%c1_7, %c0_8, %c0_9] : memref<32x8x256xf32, #tpu.memory_space<vmem>>, vector<1x8x256xf32>
    %14 = vector.shape_cast %13 : vector<1x8x256xf32> to vector<8x256xf32>
    %15 = vector.shape_cast %12 : vector<8x256xf32> to vector<8x1x256xf32>
    %16 = vector.shape_cast %14 : vector<8x256xf32> to vector<1x8x256xf32>
    %17 = vector.broadcast %15 : vector<8x1x256xf32> to vector<8x8x256xf32>
    %18 = vector.broadcast %16 : vector<1x8x256xf32> to vector<8x8x256xf32>
    %19 = arith.mulf %17, %18 : vector<8x8x256xf32>
    %20 = arith.addf %10, %19 : vector<8x8x256xf32>
    %c2 = arith.constant 2 : index
    %c0_10 = arith.constant 0 : index
    %c0_11 = arith.constant 0 : index
    %21 = vector.load %arg1[%c2, %c0_10, %c0_11] : memref<32x8x256xf32, #tpu.memory_space<vmem>>, vector<1x8x256xf32>
    %22 = vector.shape_cast %21 : vector<1x8x256xf32> to vector<8x256xf32>
    %c2_12 = arith.constant 2 : index
    %c0_13 = arith.constant 0 : index
    %c0_14 = arith.constant 0 : index
    %23 = vector.load %arg2[%c2_12, %c0_13, %c0_14] : memref<32x8x256xf32, #tpu.memory_space<vmem>>, vector<1x8x256xf32>
    %24 = vector.shape_cast %23 : vector<1x8x256xf32> to vector<8x256xf32>
    %25 = vector.shape_cast %22 : vector<8x256xf32> to vector<8x1x256xf32>
    %26 = vector.shape_cast %24 : vector<8x256xf32> to vector<1x8x256xf32>
    %27 = vector.broadcast %25 : vector<8x1x256xf32> to vector<8x8x256xf32>
    %28 = vector.broadcast %26 : vector<1x8x256xf32> to vector<8x8x256xf32>
    %29 = arith.mulf %27, %28 : vector<8x8x256xf32>
    %30 = arith.addf %20, %29 : vector<8x8x256xf32>
    %c3 = arith.constant 3 : index
    %c0_15 = arith.constant 0 : index
    %c0_16 = arith.constant 0 : index
    %31 = vector.load %arg1[%c3, %c0_15, %c0_16] : memref<32x8x256xf32, #tpu.memory_space<vmem>>, vector<1x8x256xf32>
    %32 = vector.shape_cast %31 : vector<1x8x256xf32> to vector<8x256xf32>
    %c3_17 = arith.constant 3 : index
    %c0_18 = arith.constant 0 : index
    %c0_19 = arith.constant 0 : index
    %33 = vector.load %arg2[%c3_17, %c0_18, %c0_19] : memref<32x8x256xf32, #tpu.memory_space<vmem>>, vector<1x8x256xf32>
    %34 = vector.shape_cast %33 : vector<1x8x256xf32> to vector<8x256xf32>
    %35 = vector.shape_cast %32 : vector<8x256xf32> to vector<8x1x256xf32>
    %36 = vector.shape_cast %34 : vector<8x256xf32> to vector<1x8x256xf32>
    %37 = vector.broadcast %35 : vector<8x1x256xf32> to vector<8x8x256xf32>
    %38 = vector.broadcast %36 : vector<1x8x256xf32> to vector<8x8x256xf32>
    %39 = arith.mulf %37, %38 : vector<8x8x256xf32>
    %40 = arith.addf %30, %39 : vector<8x8x256xf32>
    %c4 = arith.constant 4 : index
    %c0_20 = arith.constant 0 : index
    %c0_21 = arith.constant 0 : index
    %41 = vector.load %arg1[%c4, %c0_20, %c0_21] : memref<32x8x256xf32, #tpu.memory_space<vmem>>, vector<1x8x256xf32>
    %42 = vector.shape_cast %41 : vector<1x8x256xf32> to vector<8x256xf32>
    %c4_22 = arith.constant 4 : index
    %c0_23 = arith.constant 0 : index
    %c0_24 = arith.constant 0 : index
    %43 = vector.load %arg2[%c4_22, %c0_23, %c0_24] : memref<32x8x256xf32, #tpu.memory_space<vmem>>, vector<1x8x256xf32>
    %44 = vector.shape_cast %43 : vector<1x8x256xf32> to vector<8x256xf32>
    %45 = vector.shape_cast %42 : vector<8x256xf32> to vector<8x1x256xf32>
    %46 = vector.shape_cast %44 : vector<8x256xf32> to vector<1x8x256xf32>
    %47 = vector.broadcast %45 : vector<8x1x256xf32> to vector<8x8x256xf32>
    %48 = vector.broadcast %46 : vector<1x8x256xf32> to vector<8x8x256xf32>
    %49 = arith.mulf %47, %48 : vector<8x8x256xf32>
    %50 = arith.addf %40, %49 : vector<8x8x256xf32>
    %c5 = arith.constant 5 : index
    %c0_25 = arith.constant 0 : index
    %c0_26 = arith.constant 0 : index
    %51 = vector.load %arg1[%c5, %c0_25, %c0_26] : memref<32x8x256xf32, #tpu.memory_space<vmem>>, vector<1x8x256xf32>
    %52 = vector.shape_cast %51 : vector<1x8x256xf32> to vector<8x256xf32>
    %c5_27 = arith.constant 5 : index
    %c0_28 = arith.constant 0 : index
    %c0_29 = arith.constant 0 : index
    %53 = vector.load %arg2[%c5_27, %c0_28, %c0_29] : memref<32x8x256xf32, #tpu.memory_space<vmem>>, vector<1x8x256xf32>
    %54 = vector.shape_cast %53 : vector<1x8x256xf32> to vector<8x256xf32>
    %55 = vector.shape_cast %52 : vector<8x256xf32> to vector<8x1x256xf32>
    %56 = vector.shape_cast %54 : vector<8x256xf32> to vector<1x8x256xf32>
    %57 = vector.broadcast %55 : vector<8x1x256xf32> to vector<8x8x256xf32>
    %58 = vector.broadcast %56 : vector<1x8x256xf32> to vector<8x8x256xf32>
    %59 = arith.mulf %57, %58 : vector<8x8x256xf32>
    %60 = arith.addf %50, %59 : vector<8x8x256xf32>
    %c6 = arith.constant 6 : index
    %c0_30 = arith.constant 0 : index
    %c0_31 = arith.constant 0 : index
    %61 = vector.load %arg1[%c6, %c0_30, %c0_31] : memref<32x8x256xf32, #tpu.memory_space<vmem>>, vector<1x8x256xf32>
    %62 = vector.shape_cast %61 : vector<1x8x256xf32> to vector<8x256xf32>
    %c6_32 = arith.constant 6 : index
    %c0_33 = arith.constant 0 : index
    %c0_34 = arith.constant 0 : index
    %63 = vector.load %arg2[%c6_32, %c0_33, %c0_34] : memref<32x8x256xf32, #tpu.memory_space<vmem>>, vector<1x8x256xf32>
    %64 = vector.shape_cast %63 : vector<1x8x256xf32> to vector<8x256xf32>
    %65 = vector.shape_cast %62 : vector<8x256xf32> to vector<8x1x256xf32>
    %66 = vector.shape_cast %64 : vector<8x256xf32> to vector<1x8x256xf32>
    %67 = vector.broadcast %65 : vector<8x1x256xf32> to vector<8x8x256xf32>
    %68 = vector.broadcast %66 : vector<1x8x256xf32> to vector<8x8x256xf32>
    %69 = arith.mulf %67, %68 : vector<8x8x256xf32>
    %70 = arith.addf %60, %69 : vector<8x8x256xf32>
    %c7 = arith.constant 7 : index
    %c0_35 = arith.constant 0 : index
    %c0_36 = arith.constant 0 : index
    %71 = vector.load %arg1[%c7, %c0_35, %c0_36] : memref<32x8x256xf32, #tpu.memory_space<vmem>>, vector<1x8x256xf32>
    %72 = vector.shape_cast %71 : vector<1x8x256xf32> to vector<8x256xf32>
    %c7_37 = arith.constant 7 : index
    %c0_38 = arith.constant 0 : index
    %c0_39 = arith.constant 0 : index
    %73 = vector.load %arg2[%c7_37, %c0_38, %c0_39] : memref<32x8x256xf32, #tpu.memory_space<vmem>>, vector<1x8x256xf32>
    %74 = vector.shape_cast %73 : vector<1x8x256xf32> to vector<8x256xf32>
    %75 = vector.shape_cast %72 : vector<8x256xf32> to vector<8x1x256xf32>
    %76 = vector.shape_cast %74 : vector<8x256xf32> to vector<1x8x256xf32>
    %77 = vector.broadcast %75 : vector<8x1x256xf32> to vector<8x8x256xf32>
    %78 = vector.broadcast %76 : vector<1x8x256xf32> to vector<8x8x256xf32>
    %79 = arith.mulf %77, %78 : vector<8x8x256xf32>
    %80 = arith.addf %70, %79 : vector<8x8x256xf32>
    %c8 = arith.constant 8 : index
    %c0_40 = arith.constant 0 : index
    %c0_41 = arith.constant 0 : index
    %81 = vector.load %arg1[%c8, %c0_40, %c0_41] : memref<32x8x256xf32, #tpu.memory_space<vmem>>, vector<1x8x256xf32>
    %82 = vector.shape_cast %81 : vector<1x8x256xf32> to vector<8x256xf32>
    %c8_42 = arith.constant 8 : index
    %c0_43 = arith.constant 0 : index
    %c0_44 = arith.constant 0 : index
    %83 = vector.load %arg2[%c8_42, %c0_43, %c0_44] : memref<32x8x256xf32, #tpu.memory_space<vmem>>, vector<1x8x256xf32>
    %84 = vector.shape_cast %83 : vector<1x8x256xf32> to vector<8x256xf32>
    %85 = vector.shape_cast %82 : vector<8x256xf32> to vector<8x1x256xf32>
    %86 = vector.shape_cast %84 : vector<8x256xf32> to vector<1x8x256xf32>
    %87 = vector.broadcast %85 : vector<8x1x256xf32> to vector<8x8x256xf32>
    %88 = vector.broadcast %86 : vector<1x8x256xf32> to vector<8x8x256xf32>
    %89 = arith.mulf %87, %88 : vector<8x8x256xf32>
    %90 = arith.addf %80, %89 : vector<8x8x256xf32>
    %c9 = arith.constant 9 : index
    %c0_45 = arith.constant 0 : index
    %c0_46 = arith.constant 0 : index
    %91 = vector.load %arg1[%c9, %c0_45, %c0_46] : memref<32x8x256xf32, #tpu.memory_space<vmem>>, vector<1x8x256xf32>
    %92 = vector.shape_cast %91 : vector<1x8x256xf32> to vector<8x256xf32>
    %c9_47 = arith.constant 9 : index
    %c0_48 = arith.constant 0 : index
    %c0_49 = arith.constant 0 : index
    %93 = vector.load %arg2[%c9_47, %c0_48, %c0_49] : memref<32x8x256xf32, #tpu.memory_space<vmem>>, vector<1x8x256xf32>
    %94 = vector.shape_cast %93 : vector<1x8x256xf32> to vector<8x256xf32>
    %95 = vector.shape_cast %92 : vector<8x256xf32> to vector<8x1x256xf32>
    %96 = vector.shape_cast %94 : vector<8x256xf32> to vector<1x8x256xf32>
    %97 = vector.broadcast %95 : vector<8x1x256xf32> to vector<8x8x256xf32>
    %98 = vector.broadcast %96 : vector<1x8x256xf32> to vector<8x8x256xf32>
    %99 = arith.mulf %97, %98 : vector<8x8x256xf32>
    %100 = arith.addf %90, %99 : vector<8x8x256xf32>
    %c10 = arith.constant 10 : index
    %c0_50 = arith.constant 0 : index
    %c0_51 = arith.constant 0 : index
    %101 = vector.load %arg1[%c10, %c0_50, %c0_51] : memref<32x8x256xf32, #tpu.memory_space<vmem>>, vector<1x8x256xf32>
    %102 = vector.shape_cast %101 : vector<1x8x256xf32> to vector<8x256xf32>
    %c10_52 = arith.constant 10 : index
    %c0_53 = arith.constant 0 : index
    %c0_54 = arith.constant 0 : index
    %103 = vector.load %arg2[%c10_52, %c0_53, %c0_54] : memref<32x8x256xf32, #tpu.memory_space<vmem>>, vector<1x8x256xf32>
    %104 = vector.shape_cast %103 : vector<1x8x256xf32> to vector<8x256xf32>
    %105 = vector.shape_cast %102 : vector<8x256xf32> to vector<8x1x256xf32>
    %106 = vector.shape_cast %104 : vector<8x256xf32> to vector<1x8x256xf32>
    %107 = vector.broadcast %105 : vector<8x1x256xf32> to vector<8x8x256xf32>
    %108 = vector.broadcast %106 : vector<1x8x256xf32> to vector<8x8x256xf32>
    %109 = arith.mulf %107, %108 : vector<8x8x256xf32>
    %110 = arith.addf %100, %109 : vector<8x8x256xf32>
    %c11 = arith.constant 11 : index
    %c0_55 = arith.constant 0 : index
    %c0_56 = arith.constant 0 : index
    %111 = vector.load %arg1[%c11, %c0_55, %c0_56] : memref<32x8x256xf32, #tpu.memory_space<vmem>>, vector<1x8x256xf32>
    %112 = vector.shape_cast %111 : vector<1x8x256xf32> to vector<8x256xf32>
    %c11_57 = arith.constant 11 : index
    %c0_58 = arith.constant 0 : index
    %c0_59 = arith.constant 0 : index
    %113 = vector.load %arg2[%c11_57, %c0_58, %c0_59] : memref<32x8x256xf32, #tpu.memory_space<vmem>>, vector<1x8x256xf32>
    %114 = vector.shape_cast %113 : vector<1x8x256xf32> to vector<8x256xf32>
    %115 = vector.shape_cast %112 : vector<8x256xf32> to vector<8x1x256xf32>
    %116 = vector.shape_cast %114 : vector<8x256xf32> to vector<1x8x256xf32>
    %117 = vector.broadcast %115 : vector<8x1x256xf32> to vector<8x8x256xf32>
    %118 = vector.broadcast %116 : vector<1x8x256xf32> to vector<8x8x256xf32>
    %119 = arith.mulf %117, %118 : vector<8x8x256xf32>
    %120 = arith.addf %110, %119 : vector<8x8x256xf32>
    %c12 = arith.constant 12 : index
    %c0_60 = arith.constant 0 : index
    %c0_61 = arith.constant 0 : index
    %121 = vector.load %arg1[%c12, %c0_60, %c0_61] : memref<32x8x256xf32, #tpu.memory_space<vmem>>, vector<1x8x256xf32>
    %122 = vector.shape_cast %121 : vector<1x8x256xf32> to vector<8x256xf32>
    %c12_62 = arith.constant 12 : index
    %c0_63 = arith.constant 0 : index
    %c0_64 = arith.constant 0 : index
    %123 = vector.load %arg2[%c12_62, %c0_63, %c0_64] : memref<32x8x256xf32, #tpu.memory_space<vmem>>, vector<1x8x256xf32>
    %124 = vector.shape_cast %123 : vector<1x8x256xf32> to vector<8x256xf32>
    %125 = vector.shape_cast %122 : vector<8x256xf32> to vector<8x1x256xf32>
    %126 = vector.shape_cast %124 : vector<8x256xf32> to vector<1x8x256xf32>
    %127 = vector.broadcast %125 : vector<8x1x256xf32> to vector<8x8x256xf32>
    %128 = vector.broadcast %126 : vector<1x8x256xf32> to vector<8x8x256xf32>
    %129 = arith.mulf %127, %128 : vector<8x8x256xf32>
    %130 = arith.addf %120, %129 : vector<8x8x256xf32>
    %c13 = arith.constant 13 : index
    %c0_65 = arith.constant 0 : index
    %c0_66 = arith.constant 0 : index
    %131 = vector.load %arg1[%c13, %c0_65, %c0_66] : memref<32x8x256xf32, #tpu.memory_space<vmem>>, vector<1x8x256xf32>
    %132 = vector.shape_cast %131 : vector<1x8x256xf32> to vector<8x256xf32>
    %c13_67 = arith.constant 13 : index
    %c0_68 = arith.constant 0 : index
    %c0_69 = arith.constant 0 : index
    %133 = vector.load %arg2[%c13_67, %c0_68, %c0_69] : memref<32x8x256xf32, #tpu.memory_space<vmem>>, vector<1x8x256xf32>
    %134 = vector.shape_cast %133 : vector<1x8x256xf32> to vector<8x256xf32>
    %135 = vector.shape_cast %132 : vector<8x256xf32> to vector<8x1x256xf32>
    %136 = vector.shape_cast %134 : vector<8x256xf32> to vector<1x8x256xf32>
    %137 = vector.broadcast %135 : vector<8x1x256xf32> to vector<8x8x256xf32>
    %138 = vector.broadcast %136 : vector<1x8x256xf32> to vector<8x8x256xf32>
    %139 = arith.mulf %137, %138 : vector<8x8x256xf32>
    %140 = arith.addf %130, %139 : vector<8x8x256xf32>
    %c14 = arith.constant 14 : index
    %c0_70 = arith.constant 0 : index
    %c0_71 = arith.constant 0 : index
    %141 = vector.load %arg1[%c14, %c0_70, %c0_71] : memref<32x8x256xf32, #tpu.memory_space<vmem>>, vector<1x8x256xf32>
    %142 = vector.shape_cast %141 : vector<1x8x256xf32> to vector<8x256xf32>
    %c14_72 = arith.constant 14 : index
    %c0_73 = arith.constant 0 : index
    %c0_74 = arith.constant 0 : index
    %143 = vector.load %arg2[%c14_72, %c0_73, %c0_74] : memref<32x8x256xf32, #tpu.memory_space<vmem>>, vector<1x8x256xf32>
    %144 = vector.shape_cast %143 : vector<1x8x256xf32> to vector<8x256xf32>
    %145 = vector.shape_cast %142 : vector<8x256xf32> to vector<8x1x256xf32>
    %146 = vector.shape_cast %144 : vector<8x256xf32> to vector<1x8x256xf32>
    %147 = vector.broadcast %145 : vector<8x1x256xf32> to vector<8x8x256xf32>
    %148 = vector.broadcast %146 : vector<1x8x256xf32> to vector<8x8x256xf32>
    %149 = arith.mulf %147, %148 : vector<8x8x256xf32>
    %150 = arith.addf %140, %149 : vector<8x8x256xf32>
    %c15 = arith.constant 15 : index
    %c0_75 = arith.constant 0 : index
    %c0_76 = arith.constant 0 : index
    %151 = vector.load %arg1[%c15, %c0_75, %c0_76] : memref<32x8x256xf32, #tpu.memory_space<vmem>>, vector<1x8x256xf32>
    %152 = vector.shape_cast %151 : vector<1x8x256xf32> to vector<8x256xf32>
    %c15_77 = arith.constant 15 : index
    %c0_78 = arith.constant 0 : index
    %c0_79 = arith.constant 0 : index
    %153 = vector.load %arg2[%c15_77, %c0_78, %c0_79] : memref<32x8x256xf32, #tpu.memory_space<vmem>>, vector<1x8x256xf32>
    %154 = vector.shape_cast %153 : vector<1x8x256xf32> to vector<8x256xf32>
    %155 = vector.shape_cast %152 : vector<8x256xf32> to vector<8x1x256xf32>
    %156 = vector.shape_cast %154 : vector<8x256xf32> to vector<1x8x256xf32>
    %157 = vector.broadcast %155 : vector<8x1x256xf32> to vector<8x8x256xf32>
    %158 = vector.broadcast %156 : vector<1x8x256xf32> to vector<8x8x256xf32>
    %159 = arith.mulf %157, %158 : vector<8x8x256xf32>
    %160 = arith.addf %150, %159 : vector<8x8x256xf32>
    %c16 = arith.constant 16 : index
    %c0_80 = arith.constant 0 : index
    %c0_81 = arith.constant 0 : index
    %161 = vector.load %arg1[%c16, %c0_80, %c0_81] : memref<32x8x256xf32, #tpu.memory_space<vmem>>, vector<1x8x256xf32>
    %162 = vector.shape_cast %161 : vector<1x8x256xf32> to vector<8x256xf32>
    %c16_82 = arith.constant 16 : index
    %c0_83 = arith.constant 0 : index
    %c0_84 = arith.constant 0 : index
    %163 = vector.load %arg2[%c16_82, %c0_83, %c0_84] : memref<32x8x256xf32, #tpu.memory_space<vmem>>, vector<1x8x256xf32>
    %164 = vector.shape_cast %163 : vector<1x8x256xf32> to vector<8x256xf32>
    %165 = vector.shape_cast %162 : vector<8x256xf32> to vector<8x1x256xf32>
    %166 = vector.shape_cast %164 : vector<8x256xf32> to vector<1x8x256xf32>
    %167 = vector.broadcast %165 : vector<8x1x256xf32> to vector<8x8x256xf32>
    %168 = vector.broadcast %166 : vector<1x8x256xf32> to vector<8x8x256xf32>
    %169 = arith.mulf %167, %168 : vector<8x8x256xf32>
    %170 = arith.addf %160, %169 : vector<8x8x256xf32>
    %c17 = arith.constant 17 : index
    %c0_85 = arith.constant 0 : index
    %c0_86 = arith.constant 0 : index
    %171 = vector.load %arg1[%c17, %c0_85, %c0_86] : memref<32x8x256xf32, #tpu.memory_space<vmem>>, vector<1x8x256xf32>
    %172 = vector.shape_cast %171 : vector<1x8x256xf32> to vector<8x256xf32>
    %c17_87 = arith.constant 17 : index
    %c0_88 = arith.constant 0 : index
    %c0_89 = arith.constant 0 : index
    %173 = vector.load %arg2[%c17_87, %c0_88, %c0_89] : memref<32x8x256xf32, #tpu.memory_space<vmem>>, vector<1x8x256xf32>
    %174 = vector.shape_cast %173 : vector<1x8x256xf32> to vector<8x256xf32>
    %175 = vector.shape_cast %172 : vector<8x256xf32> to vector<8x1x256xf32>
    %176 = vector.shape_cast %174 : vector<8x256xf32> to vector<1x8x256xf32>
    %177 = vector.broadcast %175 : vector<8x1x256xf32> to vector<8x8x256xf32>
    %178 = vector.broadcast %176 : vector<1x8x256xf32> to vector<8x8x256xf32>
    %179 = arith.mulf %177, %178 : vector<8x8x256xf32>
    %180 = arith.addf %170, %179 : vector<8x8x256xf32>
    %c18 = arith.constant 18 : index
    %c0_90 = arith.constant 0 : index
    %c0_91 = arith.constant 0 : index
    %181 = vector.load %arg1[%c18, %c0_90, %c0_91] : memref<32x8x256xf32, #tpu.memory_space<vmem>>, vector<1x8x256xf32>
    %182 = vector.shape_cast %181 : vector<1x8x256xf32> to vector<8x256xf32>
    %c18_92 = arith.constant 18 : index
    %c0_93 = arith.constant 0 : index
    %c0_94 = arith.constant 0 : index
    %183 = vector.load %arg2[%c18_92, %c0_93, %c0_94] : memref<32x8x256xf32, #tpu.memory_space<vmem>>, vector<1x8x256xf32>
    %184 = vector.shape_cast %183 : vector<1x8x256xf32> to vector<8x256xf32>
    %185 = vector.shape_cast %182 : vector<8x256xf32> to vector<8x1x256xf32>
    %186 = vector.shape_cast %184 : vector<8x256xf32> to vector<1x8x256xf32>
    %187 = vector.broadcast %185 : vector<8x1x256xf32> to vector<8x8x256xf32>
    %188 = vector.broadcast %186 : vector<1x8x256xf32> to vector<8x8x256xf32>
    %189 = arith.mulf %187, %188 : vector<8x8x256xf32>
    %190 = arith.addf %180, %189 : vector<8x8x256xf32>
    %c19 = arith.constant 19 : index
    %c0_95 = arith.constant 0 : index
    %c0_96 = arith.constant 0 : index
    %191 = vector.load %arg1[%c19, %c0_95, %c0_96] : memref<32x8x256xf32, #tpu.memory_space<vmem>>, vector<1x8x256xf32>
    %192 = vector.shape_cast %191 : vector<1x8x256xf32> to vector<8x256xf32>
    %c19_97 = arith.constant 19 : index
    %c0_98 = arith.constant 0 : index
    %c0_99 = arith.constant 0 : index
    %193 = vector.load %arg2[%c19_97, %c0_98, %c0_99] : memref<32x8x256xf32, #tpu.memory_space<vmem>>, vector<1x8x256xf32>
    %194 = vector.shape_cast %193 : vector<1x8x256xf32> to vector<8x256xf32>
    %195 = vector.shape_cast %192 : vector<8x256xf32> to vector<8x1x256xf32>
    %196 = vector.shape_cast %194 : vector<8x256xf32> to vector<1x8x256xf32>
    %197 = vector.broadcast %195 : vector<8x1x256xf32> to vector<8x8x256xf32>
    %198 = vector.broadcast %196 : vector<1x8x256xf32> to vector<8x8x256xf32>
    %199 = arith.mulf %197, %198 : vector<8x8x256xf32>
    %200 = arith.addf %190, %199 : vector<8x8x256xf32>
    %c20 = arith.constant 20 : index
    %c0_100 = arith.constant 0 : index
    %c0_101 = arith.constant 0 : index
    %201 = vector.load %arg1[%c20, %c0_100, %c0_101] : memref<32x8x256xf32, #tpu.memory_space<vmem>>, vector<1x8x256xf32>
    %202 = vector.shape_cast %201 : vector<1x8x256xf32> to vector<8x256xf32>
    %c20_102 = arith.constant 20 : index
    %c0_103 = arith.constant 0 : index
    %c0_104 = arith.constant 0 : index
    %203 = vector.load %arg2[%c20_102, %c0_103, %c0_104] : memref<32x8x256xf32, #tpu.memory_space<vmem>>, vector<1x8x256xf32>
    %204 = vector.shape_cast %203 : vector<1x8x256xf32> to vector<8x256xf32>
    %205 = vector.shape_cast %202 : vector<8x256xf32> to vector<8x1x256xf32>
    %206 = vector.shape_cast %204 : vector<8x256xf32> to vector<1x8x256xf32>
    %207 = vector.broadcast %205 : vector<8x1x256xf32> to vector<8x8x256xf32>
    %208 = vector.broadcast %206 : vector<1x8x256xf32> to vector<8x8x256xf32>
    %209 = arith.mulf %207, %208 : vector<8x8x256xf32>
    %210 = arith.addf %200, %209 : vector<8x8x256xf32>
    %c21 = arith.constant 21 : index
    %c0_105 = arith.constant 0 : index
    %c0_106 = arith.constant 0 : index
    %211 = vector.load %arg1[%c21, %c0_105, %c0_106] : memref<32x8x256xf32, #tpu.memory_space<vmem>>, vector<1x8x256xf32>
    %212 = vector.shape_cast %211 : vector<1x8x256xf32> to vector<8x256xf32>
    %c21_107 = arith.constant 21 : index
    %c0_108 = arith.constant 0 : index
    %c0_109 = arith.constant 0 : index
    %213 = vector.load %arg2[%c21_107, %c0_108, %c0_109] : memref<32x8x256xf32, #tpu.memory_space<vmem>>, vector<1x8x256xf32>
    %214 = vector.shape_cast %213 : vector<1x8x256xf32> to vector<8x256xf32>
    %215 = vector.shape_cast %212 : vector<8x256xf32> to vector<8x1x256xf32>
    %216 = vector.shape_cast %214 : vector<8x256xf32> to vector<1x8x256xf32>
    %217 = vector.broadcast %215 : vector<8x1x256xf32> to vector<8x8x256xf32>
    %218 = vector.broadcast %216 : vector<1x8x256xf32> to vector<8x8x256xf32>
    %219 = arith.mulf %217, %218 : vector<8x8x256xf32>
    %220 = arith.addf %210, %219 : vector<8x8x256xf32>
    %c22 = arith.constant 22 : index
    %c0_110 = arith.constant 0 : index
    %c0_111 = arith.constant 0 : index
    %221 = vector.load %arg1[%c22, %c0_110, %c0_111] : memref<32x8x256xf32, #tpu.memory_space<vmem>>, vector<1x8x256xf32>
    %222 = vector.shape_cast %221 : vector<1x8x256xf32> to vector<8x256xf32>
    %c22_112 = arith.constant 22 : index
    %c0_113 = arith.constant 0 : index
    %c0_114 = arith.constant 0 : index
    %223 = vector.load %arg2[%c22_112, %c0_113, %c0_114] : memref<32x8x256xf32, #tpu.memory_space<vmem>>, vector<1x8x256xf32>
    %224 = vector.shape_cast %223 : vector<1x8x256xf32> to vector<8x256xf32>
    %225 = vector.shape_cast %222 : vector<8x256xf32> to vector<8x1x256xf32>
    %226 = vector.shape_cast %224 : vector<8x256xf32> to vector<1x8x256xf32>
    %227 = vector.broadcast %225 : vector<8x1x256xf32> to vector<8x8x256xf32>
    %228 = vector.broadcast %226 : vector<1x8x256xf32> to vector<8x8x256xf32>
    %229 = arith.mulf %227, %228 : vector<8x8x256xf32>
    %230 = arith.addf %220, %229 : vector<8x8x256xf32>
    %c23 = arith.constant 23 : index
    %c0_115 = arith.constant 0 : index
    %c0_116 = arith.constant 0 : index
    %231 = vector.load %arg1[%c23, %c0_115, %c0_116] : memref<32x8x256xf32, #tpu.memory_space<vmem>>, vector<1x8x256xf32>
    %232 = vector.shape_cast %231 : vector<1x8x256xf32> to vector<8x256xf32>
    %c23_117 = arith.constant 23 : index
    %c0_118 = arith.constant 0 : index
    %c0_119 = arith.constant 0 : index
    %233 = vector.load %arg2[%c23_117, %c0_118, %c0_119] : memref<32x8x256xf32, #tpu.memory_space<vmem>>, vector<1x8x256xf32>
    %234 = vector.shape_cast %233 : vector<1x8x256xf32> to vector<8x256xf32>
    %235 = vector.shape_cast %232 : vector<8x256xf32> to vector<8x1x256xf32>
    %236 = vector.shape_cast %234 : vector<8x256xf32> to vector<1x8x256xf32>
    %237 = vector.broadcast %235 : vector<8x1x256xf32> to vector<8x8x256xf32>
    %238 = vector.broadcast %236 : vector<1x8x256xf32> to vector<8x8x256xf32>
    %239 = arith.mulf %237, %238 : vector<8x8x256xf32>
    %240 = arith.addf %230, %239 : vector<8x8x256xf32>
    %c24 = arith.constant 24 : index
    %c0_120 = arith.constant 0 : index
    %c0_121 = arith.constant 0 : index
    %241 = vector.load %arg1[%c24, %c0_120, %c0_121] : memref<32x8x256xf32, #tpu.memory_space<vmem>>, vector<1x8x256xf32>
    %242 = vector.shape_cast %241 : vector<1x8x256xf32> to vector<8x256xf32>
    %c24_122 = arith.constant 24 : index
    %c0_123 = arith.constant 0 : index
    %c0_124 = arith.constant 0 : index
    %243 = vector.load %arg2[%c24_122, %c0_123, %c0_124] : memref<32x8x256xf32, #tpu.memory_space<vmem>>, vector<1x8x256xf32>
    %244 = vector.shape_cast %243 : vector<1x8x256xf32> to vector<8x256xf32>
    %245 = vector.shape_cast %242 : vector<8x256xf32> to vector<8x1x256xf32>
    %246 = vector.shape_cast %244 : vector<8x256xf32> to vector<1x8x256xf32>
    %247 = vector.broadcast %245 : vector<8x1x256xf32> to vector<8x8x256xf32>
    %248 = vector.broadcast %246 : vector<1x8x256xf32> to vector<8x8x256xf32>
    %249 = arith.mulf %247, %248 : vector<8x8x256xf32>
    %250 = arith.addf %240, %249 : vector<8x8x256xf32>
    %c25 = arith.constant 25 : index
    %c0_125 = arith.constant 0 : index
    %c0_126 = arith.constant 0 : index
    %251 = vector.load %arg1[%c25, %c0_125, %c0_126] : memref<32x8x256xf32, #tpu.memory_space<vmem>>, vector<1x8x256xf32>
    %252 = vector.shape_cast %251 : vector<1x8x256xf32> to vector<8x256xf32>
    %c25_127 = arith.constant 25 : index
    %c0_128 = arith.constant 0 : index
    %c0_129 = arith.constant 0 : index
    %253 = vector.load %arg2[%c25_127, %c0_128, %c0_129] : memref<32x8x256xf32, #tpu.memory_space<vmem>>, vector<1x8x256xf32>
    %254 = vector.shape_cast %253 : vector<1x8x256xf32> to vector<8x256xf32>
    %255 = vector.shape_cast %252 : vector<8x256xf32> to vector<8x1x256xf32>
    %256 = vector.shape_cast %254 : vector<8x256xf32> to vector<1x8x256xf32>
    %257 = vector.broadcast %255 : vector<8x1x256xf32> to vector<8x8x256xf32>
    %258 = vector.broadcast %256 : vector<1x8x256xf32> to vector<8x8x256xf32>
    %259 = arith.mulf %257, %258 : vector<8x8x256xf32>
    %260 = arith.addf %250, %259 : vector<8x8x256xf32>
    %c26 = arith.constant 26 : index
    %c0_130 = arith.constant 0 : index
    %c0_131 = arith.constant 0 : index
    %261 = vector.load %arg1[%c26, %c0_130, %c0_131] : memref<32x8x256xf32, #tpu.memory_space<vmem>>, vector<1x8x256xf32>
    %262 = vector.shape_cast %261 : vector<1x8x256xf32> to vector<8x256xf32>
    %c26_132 = arith.constant 26 : index
    %c0_133 = arith.constant 0 : index
    %c0_134 = arith.constant 0 : index
    %263 = vector.load %arg2[%c26_132, %c0_133, %c0_134] : memref<32x8x256xf32, #tpu.memory_space<vmem>>, vector<1x8x256xf32>
    %264 = vector.shape_cast %263 : vector<1x8x256xf32> to vector<8x256xf32>
    %265 = vector.shape_cast %262 : vector<8x256xf32> to vector<8x1x256xf32>
    %266 = vector.shape_cast %264 : vector<8x256xf32> to vector<1x8x256xf32>
    %267 = vector.broadcast %265 : vector<8x1x256xf32> to vector<8x8x256xf32>
    %268 = vector.broadcast %266 : vector<1x8x256xf32> to vector<8x8x256xf32>
    %269 = arith.mulf %267, %268 : vector<8x8x256xf32>
    %270 = arith.addf %260, %269 : vector<8x8x256xf32>
    %c27 = arith.constant 27 : index
    %c0_135 = arith.constant 0 : index
    %c0_136 = arith.constant 0 : index
    %271 = vector.load %arg1[%c27, %c0_135, %c0_136] : memref<32x8x256xf32, #tpu.memory_space<vmem>>, vector<1x8x256xf32>
    %272 = vector.shape_cast %271 : vector<1x8x256xf32> to vector<8x256xf32>
    %c27_137 = arith.constant 27 : index
    %c0_138 = arith.constant 0 : index
    %c0_139 = arith.constant 0 : index
    %273 = vector.load %arg2[%c27_137, %c0_138, %c0_139] : memref<32x8x256xf32, #tpu.memory_space<vmem>>, vector<1x8x256xf32>
    %274 = vector.shape_cast %273 : vector<1x8x256xf32> to vector<8x256xf32>
    %275 = vector.shape_cast %272 : vector<8x256xf32> to vector<8x1x256xf32>
    %276 = vector.shape_cast %274 : vector<8x256xf32> to vector<1x8x256xf32>
    %277 = vector.broadcast %275 : vector<8x1x256xf32> to vector<8x8x256xf32>
    %278 = vector.broadcast %276 : vector<1x8x256xf32> to vector<8x8x256xf32>
    %279 = arith.mulf %277, %278 : vector<8x8x256xf32>
    %280 = arith.addf %270, %279 : vector<8x8x256xf32>
    %c28 = arith.constant 28 : index
    %c0_140 = arith.constant 0 : index
    %c0_141 = arith.constant 0 : index
    %281 = vector.load %arg1[%c28, %c0_140, %c0_141] : memref<32x8x256xf32, #tpu.memory_space<vmem>>, vector<1x8x256xf32>
    %282 = vector.shape_cast %281 : vector<1x8x256xf32> to vector<8x256xf32>
    %c28_142 = arith.constant 28 : index
    %c0_143 = arith.constant 0 : index
    %c0_144 = arith.constant 0 : index
    %283 = vector.load %arg2[%c28_142, %c0_143, %c0_144] : memref<32x8x256xf32, #tpu.memory_space<vmem>>, vector<1x8x256xf32>
    %284 = vector.shape_cast %283 : vector<1x8x256xf32> to vector<8x256xf32>
    %285 = vector.shape_cast %282 : vector<8x256xf32> to vector<8x1x256xf32>
    %286 = vector.shape_cast %284 : vector<8x256xf32> to vector<1x8x256xf32>
    %287 = vector.broadcast %285 : vector<8x1x256xf32> to vector<8x8x256xf32>
    %288 = vector.broadcast %286 : vector<1x8x256xf32> to vector<8x8x256xf32>
    %289 = arith.mulf %287, %288 : vector<8x8x256xf32>
    %290 = arith.addf %280, %289 : vector<8x8x256xf32>
    %c29 = arith.constant 29 : index
    %c0_145 = arith.constant 0 : index
    %c0_146 = arith.constant 0 : index
    %291 = vector.load %arg1[%c29, %c0_145, %c0_146] : memref<32x8x256xf32, #tpu.memory_space<vmem>>, vector<1x8x256xf32>
    %292 = vector.shape_cast %291 : vector<1x8x256xf32> to vector<8x256xf32>
    %c29_147 = arith.constant 29 : index
    %c0_148 = arith.constant 0 : index
    %c0_149 = arith.constant 0 : index
    %293 = vector.load %arg2[%c29_147, %c0_148, %c0_149] : memref<32x8x256xf32, #tpu.memory_space<vmem>>, vector<1x8x256xf32>
    %294 = vector.shape_cast %293 : vector<1x8x256xf32> to vector<8x256xf32>
    %295 = vector.shape_cast %292 : vector<8x256xf32> to vector<8x1x256xf32>
    %296 = vector.shape_cast %294 : vector<8x256xf32> to vector<1x8x256xf32>
    %297 = vector.broadcast %295 : vector<8x1x256xf32> to vector<8x8x256xf32>
    %298 = vector.broadcast %296 : vector<1x8x256xf32> to vector<8x8x256xf32>
    %299 = arith.mulf %297, %298 : vector<8x8x256xf32>
    %300 = arith.addf %290, %299 : vector<8x8x256xf32>
    %c30 = arith.constant 30 : index
    %c0_150 = arith.constant 0 : index
    %c0_151 = arith.constant 0 : index
    %301 = vector.load %arg1[%c30, %c0_150, %c0_151] : memref<32x8x256xf32, #tpu.memory_space<vmem>>, vector<1x8x256xf32>
    %302 = vector.shape_cast %301 : vector<1x8x256xf32> to vector<8x256xf32>
    %c30_152 = arith.constant 30 : index
    %c0_153 = arith.constant 0 : index
    %c0_154 = arith.constant 0 : index
    %303 = vector.load %arg2[%c30_152, %c0_153, %c0_154] : memref<32x8x256xf32, #tpu.memory_space<vmem>>, vector<1x8x256xf32>
    %304 = vector.shape_cast %303 : vector<1x8x256xf32> to vector<8x256xf32>
    %305 = vector.shape_cast %302 : vector<8x256xf32> to vector<8x1x256xf32>
    %306 = vector.shape_cast %304 : vector<8x256xf32> to vector<1x8x256xf32>
    %307 = vector.broadcast %305 : vector<8x1x256xf32> to vector<8x8x256xf32>
    %308 = vector.broadcast %306 : vector<1x8x256xf32> to vector<8x8x256xf32>
    %309 = arith.mulf %307, %308 : vector<8x8x256xf32>
    %310 = arith.addf %300, %309 : vector<8x8x256xf32>
    %c31 = arith.constant 31 : index
    %c0_155 = arith.constant 0 : index
    %c0_156 = arith.constant 0 : index
    %311 = vector.load %arg1[%c31, %c0_155, %c0_156] : memref<32x8x256xf32, #tpu.memory_space<vmem>>, vector<1x8x256xf32>
    %312 = vector.shape_cast %311 : vector<1x8x256xf32> to vector<8x256xf32>
    %c31_157 = arith.constant 31 : index
    %c0_158 = arith.constant 0 : index
    %c0_159 = arith.constant 0 : index
    %313 = vector.load %arg2[%c31_157, %c0_158, %c0_159] : memref<32x8x256xf32, #tpu.memory_space<vmem>>, vector<1x8x256xf32>
    %314 = vector.shape_cast %313 : vector<1x8x256xf32> to vector<8x256xf32>
    %315 = vector.shape_cast %312 : vector<8x256xf32> to vector<8x1x256xf32>
    %316 = vector.shape_cast %314 : vector<8x256xf32> to vector<1x8x256xf32>
    %317 = vector.broadcast %315 : vector<8x1x256xf32> to vector<8x8x256xf32>
    %318 = vector.broadcast %316 : vector<1x8x256xf32> to vector<8x8x256xf32>
    %319 = arith.mulf %317, %318 : vector<8x8x256xf32>
    %320 = arith.addf %310, %319 : vector<8x8x256xf32>
    %c0_160 = arith.constant 0 : index
    %c0_161 = arith.constant 0 : index
    %321 = vector.load %arg3[%c0_160, %c0_161] : memref<8x256xf32, #tpu.memory_space<vmem>>, vector<8x256xf32>
    %322 = vector.shape_cast %321 : vector<8x256xf32> to vector<8x1x256xf32>
    %323 = vector.broadcast %322 : vector<8x1x256xf32> to vector<8x8x256xf32>
    %324 = arith.addf %320, %323 : vector<8x8x256xf32>
    %c0_162 = arith.constant 0 : index
    %c0_163 = arith.constant 0 : index
    %325 = vector.load %arg4[%c0_162, %c0_163] : memref<8x256xf32, #tpu.memory_space<vmem>>, vector<8x256xf32>
    %326 = vector.shape_cast %325 : vector<8x256xf32> to vector<1x8x256xf32>
    %327 = vector.broadcast %326 : vector<1x8x256xf32> to vector<8x8x256xf32>
    %328 = arith.addf %324, %327 : vector<8x8x256xf32>
    %cst_164 = arith.constant dense<0xFF800000> : vector<8x256xf32>
    %329 = vector.multi_reduction <maximumf>, %328, %cst_164 [0] : vector<8x8x256xf32> to vector<8x256xf32>
    %cst_165 = arith.constant dense<0xFF800000> : vector<256xf32>
    %330 = vector.multi_reduction <maximumf>, %329, %cst_165 [0] : vector<8x256xf32> to vector<256xf32>
    %331 = vector.shape_cast %330 : vector<256xf32> to vector<1x256xf32>
    %332 = vector.shape_cast %331 : vector<1x256xf32> to vector<1x1x256xf32>
    %333 = vector.broadcast %332 : vector<1x1x256xf32> to vector<8x8x256xf32>
    %334 = arith.subf %328, %333 : vector<8x8x256xf32>
    %335 = math.exp %334 : vector<8x8x256xf32>
    %cst_166 = arith.constant dense<0.000000e+00> : vector<8x256xf32>
    %336 = vector.multi_reduction <add>, %335, %cst_166 [0] : vector<8x8x256xf32> to vector<8x256xf32>
    %cst_167 = arith.constant dense<0.000000e+00> : vector<256xf32>
    %337 = vector.multi_reduction <add>, %336, %cst_167 [0] : vector<8x256xf32> to vector<256xf32>
    %338 = vector.shape_cast %337 : vector<256xf32> to vector<1x256xf32>
    %339 = math.log %338 : vector<1x256xf32>
    %340 = arith.addf %339, %331 : vector<1x256xf32>
    %c0_168 = arith.constant 0 : index
    %c0_169 = arith.constant 0 : index
    %341 = vector.load %arg5[%c0_168, %c0_169] : memref<1x256xf32, #tpu.memory_space<vmem>>, vector<1x256xf32>
    tpu.vector_store %arg5[%c0_168, %c0_169], %340 {strides = array<i32>} : memref<1x256xf32, #tpu.memory_space<vmem>>, vector<1x256xf32>,
    return
  }
  func.func @transform_0(%arg0: i32) -> (i32, i32, i32) {
    %c0_i32 = arith.constant 0 : i32
    %c0_i32_0 = arith.constant 0 : i32
    %c0_i32_1 = arith.constant 0 : i32
    return %c0_i32, %c0_i32_0, %arg0 : i32, i32, i32
  }
  func.func @transform_1(%arg0: i32) -> (i32, i32, i32) {
    %c0_i32 = arith.constant 0 : i32
    %c0_i32_0 = arith.constant 0 : i32
    %c0_i32_1 = arith.constant 0 : i32
    return %c0_i32, %c0_i32_0, %arg0 : i32, i32, i32
  }
  func.func @transform_2(%arg0: i32) -> (i32, i32) {
    %c0_i32 = arith.constant 0 : i32
    %c0_i32_0 = arith.constant 0 : i32
    return %c0_i32, %arg0 : i32, i32
  }
  func.func @transform_3(%arg0: i32) -> (i32, i32) {
    %c0_i32 = arith.constant 0 : i32
    %c0_i32_0 = arith.constant 0 : i32
    return %c0_i32, %arg0 : i32, i32
  }
  func.func @transform_4(%arg0: i32) -> (i32, i32) {
    %c0_i32 = arith.constant 0 : i32
    %c0_i32_0 = arith.constant 0 : i32
    return %arg0, %c0_i32 : i32, i32
  }
}

</mosaic_0001>

<bundles_post_ra>
// kernel: tpu_custom_call.1
= control target key start
LH: loop header
LB: loop body
LE: loop exit
PB: predicated region body
PF: predicated region fallthrough
CT: control target
= control target key end

     0   :  { %9 = vsyncpa [#allocation3], 0  ;;  %s8073_s0 = inlined_call_operand.hbm [shape: f32[32,8,256], index: 0, kind: input, shape index: {}]   ;;  %s8074_s1 = inlined_call_operand.hbm [shape: f32[32,8,256], index: 1, kind: input, shape index: {}]   ;;  %s8075_s2 = inlined_call_operand.hbm [shape: f32[8,256], index: 2, kind: input, shape index: {}]   ;;  %s8076_s3 = inlined_call_operand.hbm [shape: f32[8,256], index: 3, kind: input, shape index: {}]   ;;  %s8077_s4 = inlined_call_operand.hbm [shape: f32[1,256], index: 4, kind: output, shape index: {}]  }
   0x1   :  { %10 = vsyncpa [#allocation6], 0 }
   0x2   :  { %11 = vsyncpa [#allocation9], 0 }
   0x3   :  { %12 = vsyncpa [#allocation4], 0  ;;  %s6072_s15 = smov [#allocation5]   ;;  %s6073_s17 = smov [#allocation2]  }
   0x4   :  { %s30_s16 = sshll.u32 %s6072_s15, 4  ;;  %s18_s18 = sshll.u32 %s6073_s17, 4  ;;  %s31_s16 = int_to_ptr.vmem [resolvable:$true] %s30_s16  ;;  %s19_s18 = int_to_ptr.vmem [resolvable:$true] %s18_s18 }
   0x5   :  { %s5972_s19 = scalar_lea.vmem %s31_s16, 8192  ;;  %p5977_p1 = scmp.lt.s32.totalorder %s31_s16, %s31_s16 }
   0x6   :  { %p5973_p0 = scmp.ne.s32.totalorder %s31_s16, %s5972_s19  ;;  %p5978_p2 = scmp.lt.s32.totalorder %s5972_s19, %s5972_s19 }
   0x8   :  { %p5979_p3 = por %p5978_p2, %p5977_p1 }
   0xa   :  { %p5980_p4 = pnand %p5979_p3, %p5973_p0 }
   0xc   :  { %5983 = shalt.err (!%p5980_p4)
}
   0xd   :  { %s6074_s20 = smov 256   ;;  %s6075_s21 = smov 16  }
   0xe   :  { %36 = dma.hbm_to_vmem [thread:$0]  %s8074_s1, 8192, %s31_s16, [#allocation6], %s6074_s20, %s6074_s20, %s6075_s21  }
   0xf   :  { %s5992_s24 = scalar_lea.vmem %s19_s18, 8192  ;;  %p5997_p6 = scmp.lt.s32.totalorder %s19_s18, %s19_s18 }
  0x10   :  { %p5993_p5 = scmp.ne.s32.totalorder %s19_s18, %s5992_s24  ;;  %p5998_p7 = scmp.lt.s32.totalorder %s5992_s24, %s5992_s24 }
  0x12   :  { %p5999_p8 = por %p5998_p7, %p5997_p6 }
  0x14   :  { %p6000_p9 = pnand %p5999_p8, %p5993_p5 }
  0x16   :  { %6003 = shalt.err (!%p6000_p9)
}
  0x17   :  { %24 = dma.hbm_to_vmem [thread:$0]  %s8073_s0, 8192, %s19_s18, [#allocation3], %s6074_s20, %s6074_s20, %s6075_s21  }
  0x18   :  { %s6076_s27 = smov [#allocation7]   ;;  %s6077_s29 = smov [#allocation8]  }
  0x19   :  { %s43_s28 = sshll.u32 %s6076_s27, 4  ;;  %s53_s30 = sshll.u32 %s6077_s29, 4  ;;  %s44_s28 = int_to_ptr.vmem [resolvable:$true] %s43_s28  ;;  %s54_s30 = int_to_ptr.vmem [resolvable:$true] %s53_s30 }
  0x1a   :  { %s6012_s5 = scalar_lea.vmem %s44_s28, 256  ;;  %p6017_p11 = scmp.lt.s32.totalorder %s44_s28, %s44_s28 }
  0x1b   :  { %p6013_p10 = scmp.ne.s32.totalorder %s44_s28, %s6012_s5  ;;  %p6018_p12 = scmp.lt.s32.totalorder %s6012_s5, %s6012_s5 }
  0x1d   :  { %p6019_p13 = por %p6018_p12, %p6017_p11 }
  0x1f   :  { %p6020_p0 = pnand %p6019_p13, %p6013_p10 }
  0x21   :  { %6023 = shalt.err (!%p6020_p0)
}
  0x22   :  { %46 = dma.hbm_to_vmem [thread:$0]  %s8075_s2, 256, %s44_s28, [#allocation6]  }
  0x23   :  { %s6032_s7 = scalar_lea.vmem %s54_s30, 256  ;;  %p6037_p2 = scmp.lt.s32.totalorder %s54_s30, %s54_s30 }
  0x24   :  { %p6033_p1 = scmp.ne.s32.totalorder %s54_s30, %s6032_s7  ;;  %p6038_p3 = scmp.lt.s32.totalorder %s6032_s7, %s6032_s7 }
  0x26   :  { %p6039_p4 = por %p6038_p3, %p6037_p2 }
  0x28   :  { %p6040_p5 = pnand %p6039_p4, %p6033_p1 }
  0x2a   :  { %6043 = shalt.err (!%p6040_p5)
}
  0x2b   :  { %56 = dma.hbm_to_vmem [thread:$0]  %s8076_s3, 256, %s54_s30, [#allocation9]  }
  0x2c   :  { %6064 = dma.done.wait [#allocation3], 8192  }
  0x2d   :  { %6065 = vsyncadd [#allocation3], 4294959104 }
  0x2e   :  { %6066 = dma.done.wait [#allocation6], 8448  }
  0x2f   :  { %6067 = vsyncadd [#allocation6], 4294958848 }
  0x30   :  { %6068 = dma.done.wait [#allocation9], 256  }
  0x31   :  { %6069 = vsyncadd [#allocation9], 4294967040  ;;  %v80_v0 = vlaneseq  ;;  %v6078_v1 = vmov 1966171168   ;;  %v5829_v6 = vld [vmem:[#allocation2] ss:$8 sps:$4 sm:$0xff]  }
  0x32   :  { %v78_v2 = vunpack.c.l.s4 %v6078_v1  ;;  %v5831_v7 = vld [vmem:[#allocation2 + $0x4] ss:$8 sps:$4 sm:$0xff]   ;;  %v5832_v13 = vld [vmem:[#allocation2 + $0x10] ss:$8 sps:$4 sm:$0xff]   ;;  %v5834_v15 = vld [vmem:[#allocation2 + $0x14] ss:$8 sps:$4 sm:$0xff]  }
  0x33   :  { %v81_v3 = vshrl.u32 %v80_v0, 7  ;;  %v71_v26 = vld [vmem:[#allocation5] sm:$0xff]  ;;  %v72_v31 = vld [vmem:[#allocation5 + $0x8] sm:$0xff]  ;;  %v5838_v58 = vld [vmem:[#allocation2 + $0x30] ss:$8 sps:$4 sm:$0xff]   ;;  %s6079_s2 = smov [#allocation10]  }
  0x34   :  { %v79_v4 = vunpack.c.0.s8 %v78_v2  ;;  %v5835_v56 = vld [vmem:[#allocation2 + $0x20] ss:$8 sps:$4 sm:$0xff]   ;;  %v5837_v57 = vld [vmem:[#allocation2 + $0x24] ss:$8 sps:$4 sm:$0xff]   ;;  %v5840_v63 = vld [vmem:[#allocation2 + $0x34] ss:$8 sps:$4 sm:$0xff]  }
  0x35   :  { %v6126_v18 = vsub.s32 0, %v81_v3  ;;  %v6128_v19 = vsub.s32 1, %v81_v3  ;;  %s5810_s3 = sshll.u32 %s6079_s2, 4  ;;  %vm5801_vm0 = vcmp.lt.s32.totalorder %v80_v0, 256  ;;  %s5811_s3 = int_to_ptr.vmem [resolvable:$true] %s5810_s3 }
  0x36   :  { %v6118_v5 = vsub.s32 %v79_v4, %v81_v3  ;;  %s6044_s9 = scalar_lea.vmem %s5811_s3, 32  ;;  %p6049_p7 = scmp.lt.s32.totalorder %s5811_s3, %s5811_s3 }
  0x37   :  { %p6045_p6 = scmp.ne.s32.totalorder %s5811_s3, %s6044_s9  ;;  %p6050_p8 = scmp.lt.s32.totalorder %s6044_s9, %s6044_s9 }
  0x38   :  { %v83_v8 = vrot.slane %v5829_v6, %v6118_v5  ;;  %v90_v9 = vrot.slane %v5831_v7, %v6118_v5  ;;  %v253_v24 = vrot.slane %v5832_v13, %v6118_v5  ;;  %v260_v25 = vrot.slane %v5834_v15, %v6118_v5 }
  0x39   :  { %v423_v13 = vrot.slane %v5835_v56, %v6118_v5  ;;  %v6183_v15 = vrot.slane %v5838_v58, %v6118_v5  ;;  %p6051_p9 = por %p6050_p8, %p6049_p7 }
  0x3a   :  { %v91_v10 = vcombine.high %v83_v8, %v83_v8  ;;  %v92_v11 = vcombine.high %v90_v9, %v90_v9  ;;  %v99_v12 = vrot.slane %v83_v8, %v6118_v5  ;;  %v106_v14 = vrot.slane %v90_v9, %v6118_v5 }
  0x3b   :  { %v261_v50 = vcombine.high %v253_v24, %v253_v24  ;;  %v262_v51 = vcombine.high %v260_v25, %v260_v25  ;;  %v269_v54 = vrot.slane %v253_v24, %v6118_v5  ;;  %v276_v55 = vrot.slane %v260_v25, %v6118_v5  ;;  %p6052_p10 = pnand %p6051_p9, %p6045_p6 }
  0x3c   :  { %v113_v16 = vrot.slane %v91_v10, %v6118_v5  ;;  %v120_v17 = vrot.slane %v92_v11, %v6118_v5  ;;  %v121_v20 = vcombine.high %v99_v12, %v99_v12  ;;  %v122_v22 = vcombine.high %v106_v14, %v106_v14  ;;  %v241_v10 = vld [vmem:[#allocation5 + $0x10] sm:$0xff]  ;;  %v242_v11 = vld [vmem:[#allocation5 + $0x18] sm:$0xff] }
  0x3d   :  { %v128_v27 = vrot.slane %v99_v12, %v6126_v18  ;;  %v132_v28 = vrot.slane %v99_v12, %v6128_v19  ;;  %v160_v34 = vrot.slane %v106_v14, %v6126_v18  ;;  %v164_v35 = vrot.slane %v106_v14, %v6128_v19 }
  0x3e   :  { %v123_v21 = vcombine.high %v113_v16, %v113_v16  ;;  %v124_v23 = vcombine.high %v120_v17, %v120_v17  ;;  %v136_v29 = vrot.slane %v113_v16, %v6126_v18  ;;  %v140_v30 = vrot.slane %v113_v16, %v6128_v19 }
  0x3f   :  { %v144_v32 = vrot.slane %v121_v20, %v6126_v18  ;;  %v148_v33 = vrot.slane %v121_v20, %v6128_v19  ;;  %v168_v38 = vrot.slane %v120_v17, %v6126_v18  ;;  %v172_v39 = vrot.slane %v120_v17, %v6128_v19 }
  0x40   :  { %v152_v36 = vrot.slane %v123_v21, %v6126_v18  ;;  %v156_v37 = vrot.slane %v123_v21, %v6128_v19  ;;  %v176_v40 = vrot.slane %v122_v22, %v6126_v18  ;;  %v180_v41 = vrot.slane %v122_v22, %v6128_v19 }
  0x41   :  { %v184_v42 = vrot.slane %v124_v23, %v6126_v18  ;;  %v188_v43 = vrot.slane %v124_v23, %v6128_v19  ;;  %v6148_v44 = vmul.f32 %v128_v27, %v71_v26  ;;  %v6150_v45 = vmul.f32 %v132_v28, %v72_v31 }
  0x42   :  { %v6152_v46 = vmul.f32 %v136_v29, %v71_v26  ;;  %v6154_v47 = vmul.f32 %v140_v30, %v72_v31  ;;  %v6156_v48 = vmul.f32 %v144_v32, %v71_v26  ;;  %v6158_v49 = vmul.f32 %v148_v33, %v72_v31 }
  0x43   :  { %v6160_v52 = vmul.f32 %v152_v36, %v71_v26  ;;  %v6162_v53 = vmul.f32 %v156_v37, %v72_v31  ;;  %v6166_v59 = vmul.f32 %v160_v34, %v71_v26  ;;  %v6168_v60 = vmul.f32 %v164_v35, %v72_v31 }
  0x44   :  { %v283_v61 = vrot.slane %v261_v50, %v6118_v5  ;;  %v290_v62 = vrot.slane %v262_v51, %v6118_v5  ;;  %v215_v1 = vmul.f32 %v168_v38, %v71_v26  ;;  %v216_v2 = vmul.f32 %v172_v39, %v72_v31 }
  0x45   :  { %v6172_v3 = vmul.f32 %v176_v40, %v71_v26  ;;  %v291_v4 = vcombine.high %v269_v54, %v269_v54  ;;  %v6174_v6 = vmul.f32 %v180_v41, %v72_v31  ;;  %v6176_v7 = vmul.f32 %v184_v42, %v71_v26 }
  0x46   :  { %v6178_v8 = vmul.f32 %v188_v43, %v72_v31  ;;  %v293_v9 = vcombine.high %v283_v61, %v283_v61  ;;  %v292_v12 = vcombine.high %v276_v55, %v276_v55  ;;  %v430_v14 = vrot.slane %v5837_v57, %v6118_v5 }
  0x47   :  { %v294_v16 = vcombine.high %v290_v62, %v290_v62  ;;  %v298_v17 = vrot.slane %v269_v54, %v6126_v18  ;;  %v302_v20 = vrot.slane %v269_v54, %v6128_v19  ;;  %v6188_v21 = vrot.slane %v5840_v63, %v6118_v5 }
  0x48   :  { %v306_v22 = vrot.slane %v283_v61, %v6126_v18  ;;  %v310_v23 = vrot.slane %v283_v61, %v6128_v19  ;;  %v314_v24 = vrot.slane %v291_v4, %v6126_v18  ;;  %v318_v25 = vrot.slane %v291_v4, %v6128_v19 }
  0x49   :  { %v322_v26 = vrot.slane %v293_v9, %v6126_v18  ;;  %v326_v27 = vrot.slane %v293_v9, %v6128_v19  ;;  %v330_v28 = vrot.slane %v276_v55, %v6126_v18  ;;  %v334_v29 = vrot.slane %v276_v55, %v6128_v19 }
  0x4a   :  { %v338_v30 = vrot.slane %v290_v62, %v6126_v18  ;;  %v342_v31 = vrot.slane %v290_v62, %v6128_v19  ;;  %v346_v32 = vrot.slane %v292_v12, %v6126_v18  ;;  %v350_v33 = vrot.slane %v292_v12, %v6128_v19 }
  0x4b   :  { %v354_v34 = vrot.slane %v294_v16, %v6126_v18  ;;  %v358_v35 = vrot.slane %v294_v16, %v6128_v19  ;;  %v375_v36 = vmul.f32 %v298_v17, %v241_v10  ;;  %v376_v37 = vmul.f32 %v302_v20, %v242_v11 }
  0x4c   :  { %v377_v38 = vmul.f32 %v306_v22, %v241_v10  ;;  %v378_v39 = vmul.f32 %v310_v23, %v242_v11  ;;  %v379_v40 = vmul.f32 %v314_v24, %v241_v10  ;;  %v380_v41 = vmul.f32 %v318_v25, %v242_v11 }
  0x4d   :  { %v381_v42 = vmul.f32 %v322_v26, %v241_v10  ;;  %v382_v43 = vmul.f32 %v326_v27, %v242_v11  ;;  %v383_v50 = vmul.f32 %v330_v28, %v241_v10  ;;  %v384_v51 = vmul.f32 %v334_v29, %v242_v11  ;;  %v411_v28 = vld [vmem:[#allocation5 + $0x20] sm:$0xff]  ;;  %v412_v29 = vld [vmem:[#allocation5 + $0x28] sm:$0xff] }
  0x4e   :  { %v385_v54 = vmul.f32 %v338_v30, %v241_v10  ;;  %v386_v55 = vmul.f32 %v342_v31, %v242_v11  ;;  %v387_v56 = vmul.f32 %v346_v32, %v241_v10  ;;  %v388_v57 = vmul.f32 %v350_v33, %v242_v11 }
  0x4f   :  { %v389_v58 = vmul.f32 %v354_v34, %v241_v10  ;;  %v390_v61 = vmul.f32 %v358_v35, %v242_v11  ;;  %v6205_v62 = vadd.f32 %v375_v36, %v6148_v44  ;;  %v6208_v63 = vadd.f32 %v376_v37, %v6150_v45 }
  0x50   :  { %v6211_v4 = vadd.f32 %v377_v38, %v6152_v46  ;;  %v6214_v9 = vadd.f32 %v378_v39, %v6154_v47  ;;  %v6217_v12 = vadd.f32 %v379_v40, %v6156_v48  ;;  %v6220_v16 = vadd.f32 %v380_v41, %v6158_v49 }
  0x51   :  { %v6223_v10 = vadd.f32 %v381_v42, %v6160_v52  ;;  %v431_v44 = vcombine.high %v423_v13, %v423_v13  ;;  %v432_v11 = vcombine.high %v430_v14, %v430_v14  ;;  %v439_v45 = vrot.slane %v423_v13, %v6118_v5 }
  0x52   :  { %v6227_v17 = vadd.f32 %v382_v43, %v6162_v53  ;;  %v6230_v46 = vadd.f32 %v383_v50, %v6166_v59  ;;  %v6233_v47 = vadd.f32 %v384_v51, %v6168_v60  ;;  %v446_v48 = vrot.slane %v430_v14, %v6118_v5 }
  0x53   :  { %v6236_v49 = vadd.f32 %v385_v54, %v215_v1  ;;  %v6238_v20 = vadd.f32 %v386_v55, %v216_v2  ;;  %v453_v52 = vrot.slane %v431_v44, %v6118_v5  ;;  %v460_v22 = vrot.slane %v432_v11, %v6118_v5 }
  0x54   :  { %v403_v13 = vadd.f32 %v387_v56, %v6172_v3  ;;  %v404_v53 = vadd.f32 %v388_v57, %v6174_v6  ;;  %v405_v59 = vadd.f32 %v389_v58, %v6176_v7  ;;  %v461_v23 = vcombine.high %v439_v45, %v439_v45 }
  0x55   :  { %v406_v60 = vadd.f32 %v390_v61, %v6178_v8  ;;  %v463_v24 = vcombine.high %v453_v52, %v453_v52  ;;  %v601_v1 = vcombine.high %v6183_v15, %v6183_v15  ;;  %v602_v2 = vcombine.high %v6188_v21, %v6188_v21 }
  0x56   :  { %v462_v14 = vcombine.high %v446_v48, %v446_v48  ;;  %v464_v25 = vcombine.high %v460_v22, %v460_v22  ;;  %v6252_v26 = vrot.slane %v6183_v15, %v6118_v5  ;;  %v6256_v3 = vrot.slane %v6188_v21, %v6118_v5 }
  0x57   :  { %v468_v6 = vrot.slane %v439_v45, %v6126_v18  ;;  %v472_v7 = vrot.slane %v439_v45, %v6128_v19  ;;  %v476_v8 = vrot.slane %v453_v52, %v6126_v18  ;;  %v480_v27 = vrot.slane %v453_v52, %v6128_v19 }
  0x58   :  { %v484_v30 = vrot.slane %v461_v23, %v6126_v18  ;;  %v488_v31 = vrot.slane %v461_v23, %v6128_v19  ;;  %v492_v15 = vrot.slane %v463_v24, %v6126_v18  ;;  %v496_v32 = vrot.slane %v463_v24, %v6128_v19 }
  0x59   :  { %v500_v21 = vrot.slane %v446_v48, %v6126_v18  ;;  %v504_v33 = vrot.slane %v446_v48, %v6128_v19  ;;  %v508_v34 = vrot.slane %v460_v22, %v6126_v18  ;;  %v512_v35 = vrot.slane %v460_v22, %v6128_v19 }
  0x5a   :  { %v516_v36 = vrot.slane %v462_v14, %v6126_v18  ;;  %v520_v37 = vrot.slane %v462_v14, %v6128_v19  ;;  %v524_v38 = vrot.slane %v464_v25, %v6126_v18  ;;  %v528_v39 = vrot.slane %v464_v25, %v6128_v19 }
  0x5b   :  { %v545_v40 = vmul.f32 %v468_v6, %v411_v28  ;;  %v546_v41 = vmul.f32 %v472_v7, %v412_v29  ;;  %v547_v42 = vmul.f32 %v476_v8, %v411_v28  ;;  %v548_v43 = vmul.f32 %v480_v27, %v412_v29 }
  0x5c   :  { %v549_v50 = vmul.f32 %v484_v30, %v411_v28  ;;  %v550_v51 = vmul.f32 %v488_v31, %v412_v29  ;;  %v551_v54 = vmul.f32 %v492_v15, %v411_v28  ;;  %v552_v55 = vmul.f32 %v496_v32, %v412_v29 }
  0x5d   :  { %v553_v56 = vmul.f32 %v500_v21, %v411_v28  ;;  %v554_v57 = vmul.f32 %v504_v33, %v412_v29  ;;  %v555_v58 = vmul.f32 %v508_v34, %v411_v28  ;;  %v556_v61 = vmul.f32 %v512_v35, %v412_v29 }
  0x5e   :  { %v557_v44 = vmul.f32 %v516_v36, %v411_v28  ;;  %v558_v11 = vmul.f32 %v520_v37, %v412_v29  ;;  %v559_v45 = vmul.f32 %v524_v38, %v411_v28  ;;  %v560_v48 = vmul.f32 %v528_v39, %v412_v29  ;;  %v582_v29 = vld [vmem:[#allocation5 + $0x38] sm:$0xff] }
  0x5f   :  { %v561_v52 = vadd.f32 %v545_v40, %v6205_v62  ;;  %v562_v22 = vadd.f32 %v546_v41, %v6208_v63  ;;  %v563_v23 = vadd.f32 %v547_v42, %v6211_v4  ;;  %v564_v24 = vadd.f32 %v548_v43, %v6214_v9 }
  0x60   :  { %v565_v14 = vadd.f32 %v549_v50, %v6217_v12  ;;  %v566_v25 = vadd.f32 %v550_v51, %v6220_v16  ;;  %v623_v6 = vrot.slane %v601_v1, %v6118_v5  ;;  %v630_v7 = vrot.slane %v602_v2, %v6118_v5 }
  0x61   :  { %v567_v8 = vadd.f32 %v551_v54, %v6223_v10  ;;  %v568_v27 = vadd.f32 %v552_v55, %v6227_v17  ;;  %v569_v62 = vadd.f32 %v553_v56, %v6230_v46  ;;  %v631_v63 = vcombine.high %v6252_v26, %v6252_v26  ;;  %v5841_v54 = vld [vmem:[#allocation2 + $0x40] ss:$8 sps:$4 sm:$0xff]   ;;  %v5843_v55 = vld [vmem:[#allocation2 + $0x44] ss:$8 sps:$4 sm:$0xff]  }
  0x62   :  { %v570_v4 = vadd.f32 %v554_v57, %v6233_v47  ;;  %v571_v9 = vadd.f32 %v555_v58, %v6236_v49  ;;  %v6290_v12 = vadd.f32 %v556_v61, %v6238_v20  ;;  %v633_v16 = vcombine.high %v623_v6, %v623_v6  ;;  %v581_v20 = vld [vmem:[#allocation5 + $0x30] sm:$0xff] }
  0x63   :  { %v6292_v1 = vadd.f32 %v557_v44, %v403_v13  ;;  %v6294_v2 = vadd.f32 %v558_v11, %v404_v53  ;;  %v6296_v10 = vadd.f32 %v559_v45, %v405_v59  ;;  %v632_v17 = vcombine.high %v6256_v3, %v6256_v3  ;;  %v5844_v44 = vld [vmem:[#allocation2 + $0x50] ss:$8 sps:$4 sm:$0xff]  }
  0x64   :  { %v6300_v46 = vadd.f32 %v560_v48, %v406_v60  ;;  %v634_v28 = vcombine.high %v630_v7, %v630_v7  ;;  %v638_v47 = vrot.slane %v6252_v26, %v6126_v18  ;;  %v642_v49 = vrot.slane %v6252_v26, %v6128_v19 }
  0x65   :  { %v646_v13 = vrot.slane %v623_v6, %v6126_v18  ;;  %v650_v53 = vrot.slane %v623_v6, %v6128_v19  ;;  %v654_v59 = vrot.slane %v631_v63, %v6126_v18  ;;  %v658_v30 = vrot.slane %v631_v63, %v6128_v19 }
  0x66   :  { %v662_v60 = vrot.slane %v633_v16, %v6126_v18  ;;  %v666_v31 = vrot.slane %v633_v16, %v6128_v19  ;;  %v670_v15 = vrot.slane %v6256_v3, %v6126_v18  ;;  %v674_v26 = vrot.slane %v6256_v3, %v6128_v19 }
  0x67   :  { %v678_v32 = vrot.slane %v630_v7, %v6126_v18  ;;  %v682_v21 = vrot.slane %v630_v7, %v6128_v19  ;;  %v686_v33 = vrot.slane %v632_v17, %v6126_v18  ;;  %v690_v34 = vrot.slane %v632_v17, %v6128_v19  ;;  %v5846_v7 = vld [vmem:[#allocation2 + $0x54] ss:$8 sps:$4 sm:$0xff]  }
  0x68   :  { %v694_v35 = vrot.slane %v634_v28, %v6126_v18  ;;  %v698_v36 = vrot.slane %v634_v28, %v6128_v19  ;;  %v715_v37 = vmul.f32 %v638_v47, %v581_v20  ;;  %v716_v38 = vmul.f32 %v642_v49, %v582_v29 }
  0x69   :  { %v717_v39 = vmul.f32 %v646_v13, %v581_v20  ;;  %v718_v40 = vmul.f32 %v650_v53, %v582_v29  ;;  %v719_v41 = vmul.f32 %v654_v59, %v581_v20  ;;  %v720_v42 = vmul.f32 %v658_v30, %v582_v29  ;;  %v5850_v13 = vld [vmem:[#allocation2 + $0x70] ss:$8 sps:$4 sm:$0xff]   ;;  %v5852_v30 = vld [vmem:[#allocation2 + $0x74] ss:$8 sps:$4 sm:$0xff]  }
  0x6a   :  { %v721_v43 = vmul.f32 %v662_v60, %v581_v20  ;;  %v722_v3 = vmul.f32 %v666_v31, %v582_v29  ;;  %v723_v50 = vmul.f32 %v670_v15, %v581_v20  ;;  %v724_v51 = vmul.f32 %v674_v26, %v582_v29 }
  0x6b   :  { %v725_v56 = vmul.f32 %v678_v32, %v581_v20  ;;  %v726_v57 = vmul.f32 %v682_v21, %v582_v29  ;;  %v727_v58 = vmul.f32 %v686_v33, %v581_v20  ;;  %v728_v61 = vmul.f32 %v690_v34, %v582_v29 }
  0x6c   :  { %v729_v11 = vmul.f32 %v694_v35, %v581_v20  ;;  %v730_v45 = vmul.f32 %v698_v36, %v582_v29  ;;  %v6322_v48 = vadd.f32 %v715_v37, %v561_v52  ;;  %v6324_v6 = vadd.f32 %v716_v38, %v562_v22 }
  0x6d   :  { %v6326_v63 = vadd.f32 %v717_v39, %v563_v23  ;;  %v6328_v16 = vadd.f32 %v718_v40, %v564_v24  ;;  %v6330_v17 = vadd.f32 %v719_v41, %v565_v14  ;;  %v6332_v28 = vadd.f32 %v720_v42, %v566_v25  ;;  %v5847_v14 = vld [vmem:[#allocation2 + $0x60] ss:$8 sps:$4 sm:$0xff]   ;;  %v5849_v25 = vld [vmem:[#allocation2 + $0x64] ss:$8 sps:$4 sm:$0xff]  }
  0x6e   :  { %v6334_v47 = vadd.f32 %v721_v43, %v567_v8  ;;  %v6336_v49 = vadd.f32 %v722_v3, %v568_v27  ;;  %v763_v20 = vrot.slane %v5841_v54, %v6118_v5  ;;  %v770_v52 = vrot.slane %v5843_v55, %v6118_v5  ;;  %v751_v43 = vld [vmem:[#allocation5 + $0x40] sm:$0xff]  ;;  %v752_v3 = vld [vmem:[#allocation5 + $0x48] sm:$0xff] }
  0x6f   :  { %v6340_v29 = vadd.f32 %v723_v50, %v569_v62  ;;  %v6342_v22 = vadd.f32 %v724_v51, %v570_v4  ;;  %v6344_v23 = vadd.f32 %v725_v56, %v571_v9  ;;  %v6347_v24 = vrot.slane %v5844_v44, %v6118_v5 }
  0x70   :  { %v771_v8 = vcombine.high %v763_v20, %v763_v20  ;;  %v772_v53 = vcombine.high %v770_v52, %v770_v52  ;;  %v779_v27 = vrot.slane %v763_v20, %v6118_v5  ;;  %v6351_v59 = vrot.slane %v5846_v7, %v6118_v5 }
  0x71   :  { %v6354_v62 = vadd.f32 %v726_v57, %v6290_v12  ;;  %v6357_v4 = vadd.f32 %v727_v58, %v6292_v1  ;;  %v6360_v9 = vadd.f32 %v728_v61, %v6294_v2  ;;  %v786_v60 = vrot.slane %v770_v52, %v6118_v5 }
  0x72   :  { %v6364_v31 = vadd.f32 %v729_v11, %v6296_v10  ;;  %v6367_v15 = vadd.f32 %v730_v45, %v6300_v46  ;;  %v793_v26 = vrot.slane %v771_v8, %v6118_v5  ;;  %v800_v32 = vrot.slane %v772_v53, %v6118_v5 }
  0x73   :  { %v801_v12 = vcombine.high %v779_v27, %v779_v27  ;;  %v6372_v21 = vrot.slane %v5847_v14, %v6118_v5  ;;  %v6375_v1 = vrot.slane %v5849_v25, %v6118_v5  ;;  %v6378_v2 = vrot.slane %v5850_v13, %v6118_v5 }
  0x74   :  { %v803_v33 = vcombine.high %v793_v26, %v793_v26  ;;  %v941_v10 = vcombine.high %v6347_v24, %v6347_v24  ;;  %v942_v46 = vcombine.high %v6351_v59, %v6351_v59  ;;  %v6385_v34 = vrot.slane %v5852_v30, %v6118_v5 }
  0x75   :  { %v802_v35 = vcombine.high %v786_v60, %v786_v60  ;;  %v804_v36 = vcombine.high %v800_v32, %v800_v32  ;;  %v6389_v37 = vrot.slane %v6347_v24, %v6118_v5  ;;  %v6393_v38 = vrot.slane %v6351_v59, %v6118_v5 }
  0x76   :  { %v808_v39 = vrot.slane %v779_v27, %v6126_v18  ;;  %v812_v40 = vrot.slane %v779_v27, %v6128_v19  ;;  %v816_v41 = vrot.slane %v793_v26, %v6126_v18  ;;  %v820_v42 = vrot.slane %v793_v26, %v6128_v19 }
  0x77   :  { %v824_v50 = vrot.slane %v801_v12, %v6126_v18  ;;  %v828_v51 = vrot.slane %v801_v12, %v6128_v19  ;;  %v832_v54 = vrot.slane %v803_v33, %v6126_v18  ;;  %v836_v55 = vrot.slane %v803_v33, %v6128_v19 }
  0x78   :  { %v840_v56 = vrot.slane %v786_v60, %v6126_v18  ;;  %v844_v57 = vrot.slane %v786_v60, %v6128_v19  ;;  %v848_v58 = vrot.slane %v800_v32, %v6126_v18  ;;  %v852_v61 = vrot.slane %v800_v32, %v6128_v19 }
  0x79   :  { %v856_v44 = vrot.slane %v802_v35, %v6126_v18  ;;  %v860_v11 = vrot.slane %v802_v35, %v6128_v19  ;;  %v864_v45 = vrot.slane %v804_v36, %v6126_v18  ;;  %v868_v7 = vrot.slane %v804_v36, %v6128_v19 }
  0x7a   :  { %v885_v20 = vmul.f32 %v808_v39, %v751_v43  ;;  %v886_v52 = vmul.f32 %v812_v40, %v752_v3  ;;  %v887_v24 = vmul.f32 %v816_v41, %v751_v43  ;;  %v888_v14 = vmul.f32 %v820_v42, %v752_v3 }
  0x7b   :  { %v889_v25 = vmul.f32 %v824_v50, %v751_v43  ;;  %v890_v13 = vmul.f32 %v828_v51, %v752_v3  ;;  %v891_v8 = vmul.f32 %v832_v54, %v751_v43  ;;  %v892_v53 = vmul.f32 %v836_v55, %v752_v3  ;;  %v922_v55 = vld [vmem:[#allocation5 + $0x58] sm:$0xff] }
  0x7c   :  { %v893_v27 = vmul.f32 %v840_v56, %v751_v43  ;;  %v894_v59 = vmul.f32 %v844_v57, %v752_v3  ;;  %v895_v30 = vmul.f32 %v848_v58, %v751_v43  ;;  %v896_v60 = vmul.f32 %v852_v61, %v752_v3 }
  0x7d   :  { %v897_v26 = vmul.f32 %v856_v44, %v751_v43  ;;  %v898_v32 = vmul.f32 %v860_v11, %v752_v3  ;;  %v899_v12 = vmul.f32 %v864_v45, %v751_v43  ;;  %v900_v33 = vmul.f32 %v868_v7, %v752_v3 }
  0x7e   :  { %v901_v35 = vadd.f32 %v885_v20, %v6322_v48  ;;  %v902_v36 = vadd.f32 %v886_v52, %v6324_v6  ;;  %v903_v39 = vadd.f32 %v887_v24, %v6326_v63  ;;  %v904_v40 = vadd.f32 %v888_v14, %v6328_v16 }
  0x7f   :  { %v905_v41 = vadd.f32 %v889_v25, %v6330_v17  ;;  %v906_v42 = vadd.f32 %v890_v13, %v6332_v28  ;;  %v963_v50 = vrot.slane %v941_v10, %v6118_v5  ;;  %v970_v51 = vrot.slane %v942_v46, %v6118_v5 }
  0x80   :  { %v907_v54 = vadd.f32 %v891_v8, %v6334_v47  ;;  %v908_v43 = vadd.f32 %v892_v53, %v6336_v49  ;;  %v909_v48 = vadd.f32 %v893_v27, %v6340_v29  ;;  %v971_v6 = vcombine.high %v6389_v37, %v6389_v37 }
  0x81   :  { %v910_v63 = vadd.f32 %v894_v59, %v6342_v22  ;;  %v911_v16 = vadd.f32 %v895_v30, %v6344_v23  ;;  %v912_v17 = vadd.f32 %v896_v60, %v6354_v62  ;;  %v973_v28 = vcombine.high %v963_v50, %v963_v50  ;;  %v921_v62 = vld [vmem:[#allocation5 + $0x50] sm:$0xff] }
  0x82   :  { %v913_v10 = vadd.f32 %v897_v26, %v6357_v4  ;;  %v914_v46 = vadd.f32 %v898_v32, %v6360_v9  ;;  %v915_v47 = vadd.f32 %v899_v12, %v6364_v31  ;;  %v972_v49 = vcombine.high %v6393_v38, %v6393_v38 }
  0x83   :  { %v916_v29 = vadd.f32 %v900_v33, %v6367_v15  ;;  %v974_v3 = vcombine.high %v970_v51, %v970_v51  ;;  %v978_v22 = vrot.slane %v6389_v37, %v6126_v18  ;;  %v982_v23 = vrot.slane %v6389_v37, %v6128_v19 }
  0x84   :  { %v986_v4 = vrot.slane %v963_v50, %v6126_v18  ;;  %v990_v9 = vrot.slane %v963_v50, %v6128_v19  ;;  %v994_v31 = vrot.slane %v971_v6, %v6126_v18  ;;  %v998_v56 = vrot.slane %v971_v6, %v6128_v19 }
  0x85   :  { %v1002_v57 = vrot.slane %v973_v28, %v6126_v18  ;;  %v1006_v15 = vrot.slane %v973_v28, %v6128_v19  ;;  %v1010_v58 = vrot.slane %v6393_v38, %v6126_v18  ;;  %v1014_v37 = vrot.slane %v6393_v38, %v6128_v19 }
  0x86   :  { %v1018_v61 = vrot.slane %v970_v51, %v6126_v18  ;;  %v1022_v44 = vrot.slane %v970_v51, %v6128_v19  ;;  %v1026_v11 = vrot.slane %v972_v49, %v6126_v18  ;;  %v1030_v45 = vrot.slane %v972_v49, %v6128_v19 }
  0x87   :  { %v1034_v7 = vrot.slane %v974_v3, %v6126_v18  ;;  %v1038_v20 = vrot.slane %v974_v3, %v6128_v19  ;;  %v1055_v52 = vmul.f32 %v978_v22, %v921_v62  ;;  %v1056_v24 = vmul.f32 %v982_v23, %v922_v55 }
  0x88   :  { %v1057_v14 = vmul.f32 %v986_v4, %v921_v62  ;;  %v1058_v25 = vmul.f32 %v990_v9, %v922_v55  ;;  %v1059_v13 = vmul.f32 %v994_v31, %v921_v62  ;;  %v1060_v8 = vmul.f32 %v998_v56, %v922_v55 }
  0x89   :  { %v1061_v53 = vmul.f32 %v1002_v57, %v921_v62  ;;  %v1062_v38 = vmul.f32 %v1006_v15, %v922_v55  ;;  %v1063_v27 = vmul.f32 %v1010_v58, %v921_v62  ;;  %v1064_v59 = vmul.f32 %v1014_v37, %v922_v55  ;;  %v1091_v58 = vld [vmem:[#allocation5 + $0x60] sm:$0xff]  ;;  %v1092_v37 = vld [vmem:[#allocation5 + $0x68] sm:$0xff] }
  0x8a   :  { %v1065_v30 = vmul.f32 %v1018_v61, %v921_v62  ;;  %v1066_v60 = vmul.f32 %v1022_v44, %v922_v55  ;;  %v1067_v26 = vmul.f32 %v1026_v11, %v921_v62  ;;  %v1068_v32 = vmul.f32 %v1030_v45, %v922_v55 }
  0x8b   :  { %v1069_v12 = vmul.f32 %v1034_v7, %v921_v62  ;;  %v1070_v33 = vmul.f32 %v1038_v20, %v922_v55  ;;  %v6453_v50 = vadd.f32 %v1055_v52, %v901_v35  ;;  %v6455_v51 = vadd.f32 %v1056_v24, %v902_v36 }
  0x8c   :  { %v6457_v6 = vadd.f32 %v1057_v14, %v903_v39  ;;  %v6459_v28 = vadd.f32 %v1058_v25, %v904_v40  ;;  %v6461_v49 = vadd.f32 %v1059_v13, %v905_v41  ;;  %v6463_v3 = vadd.f32 %v1060_v8, %v906_v42 }
  0x8d   :  { %v6465_v22 = vadd.f32 %v1061_v53, %v907_v54  ;;  %v1111_v23 = vcombine.high %v6372_v21, %v6372_v21  ;;  %v1112_v62 = vcombine.high %v6375_v1, %v6375_v1  ;;  %v1119_v35 = vrot.slane %v6372_v21, %v6118_v5 }
  0x8e   :  { %v6473_v36 = vadd.f32 %v1062_v38, %v908_v43  ;;  %v6475_v39 = vadd.f32 %v1063_v27, %v909_v48  ;;  %v6477_v40 = vadd.f32 %v1064_v59, %v910_v63  ;;  %v1126_v41 = vrot.slane %v6375_v1, %v6118_v5 }
  0x8f   :  { %v6481_v42 = vadd.f32 %v1065_v30, %v911_v16  ;;  %v6483_v54 = vadd.f32 %v1066_v60, %v912_v17  ;;  %v1133_v55 = vrot.slane %v1111_v23, %v6118_v5  ;;  %v1140_v4 = vrot.slane %v1112_v62, %v6118_v5 }
  0x90   :  { %v1083_v9 = vadd.f32 %v1067_v26, %v913_v10  ;;  %v1084_v31 = vadd.f32 %v1068_v32, %v914_v46  ;;  %v1085_v21 = vadd.f32 %v1069_v12, %v915_v47  ;;  %v1141_v43 = vcombine.high %v1119_v35, %v1119_v35 }
  0x91   :  { %v1086_v56 = vadd.f32 %v1070_v33, %v916_v29  ;;  %v1143_v48 = vcombine.high %v1133_v55, %v1133_v55  ;;  %v1281_v63 = vcombine.high %v6378_v2, %v6378_v2  ;;  %v1282_v1 = vcombine.high %v6385_v34, %v6385_v34 }
  0x92   :  { %v1142_v16 = vcombine.high %v1126_v41, %v1126_v41  ;;  %v1144_v57 = vcombine.high %v1140_v4, %v1140_v4  ;;  %v6493_v17 = vrot.slane %v6378_v2, %v6118_v5  ;;  %v6497_v10 = vrot.slane %v6385_v34, %v6118_v5 }
  0x93   :  { %v1148_v46 = vrot.slane %v1119_v35, %v6126_v18  ;;  %v1152_v47 = vrot.slane %v1119_v35, %v6128_v19  ;;  %v1156_v29 = vrot.slane %v1133_v55, %v6126_v18  ;;  %v1160_v15 = vrot.slane %v1133_v55, %v6128_v19 }
  0x94   :  { %v1164_v61 = vrot.slane %v1141_v43, %v6126_v18  ;;  %v1168_v44 = vrot.slane %v1141_v43, %v6128_v19  ;;  %v1172_v2 = vrot.slane %v1143_v48, %v6126_v18  ;;  %v1176_v11 = vrot.slane %v1143_v48, %v6128_v19 }
  0x95   :  { %v1180_v34 = vrot.slane %v1126_v41, %v6126_v18  ;;  %v1184_v45 = vrot.slane %v1126_v41, %v6128_v19  ;;  %v1188_v7 = vrot.slane %v1140_v4, %v6126_v18  ;;  %v1192_v20 = vrot.slane %v1140_v4, %v6128_v19 }
  0x96   :  { %v1196_v52 = vrot.slane %v1142_v16, %v6126_v18  ;;  %v1200_v24 = vrot.slane %v1142_v16, %v6128_v19  ;;  %v1204_v14 = vrot.slane %v1144_v57, %v6126_v18  ;;  %v1208_v25 = vrot.slane %v1144_v57, %v6128_v19 }
  0x97   :  { %v1225_v13 = vmul.f32 %v1148_v46, %v1091_v58  ;;  %v1226_v8 = vmul.f32 %v1152_v47, %v1092_v37  ;;  %v1227_v53 = vmul.f32 %v1156_v29, %v1091_v58  ;;  %v1228_v38 = vmul.f32 %v1160_v15, %v1092_v37 }
  0x98   :  { %v1229_v27 = vmul.f32 %v1164_v61, %v1091_v58  ;;  %v1230_v59 = vmul.f32 %v1168_v44, %v1092_v37  ;;  %v1231_v30 = vmul.f32 %v1172_v2, %v1091_v58  ;;  %v1232_v60 = vmul.f32 %v1176_v11, %v1092_v37 }
  0x99   :  { %v1233_v26 = vmul.f32 %v1180_v34, %v1091_v58  ;;  %v1234_v32 = vmul.f32 %v1184_v45, %v1092_v37  ;;  %v1235_v12 = vmul.f32 %v1188_v7, %v1091_v58  ;;  %v1236_v33 = vmul.f32 %v1192_v20, %v1092_v37 }
  0x9a   :  { %v1237_v23 = vmul.f32 %v1196_v52, %v1091_v58  ;;  %v1238_v62 = vmul.f32 %v1200_v24, %v1092_v37  ;;  %v1239_v35 = vmul.f32 %v1204_v14, %v1091_v58  ;;  %v1240_v41 = vmul.f32 %v1208_v25, %v1092_v37  ;;  %v1262_v37 = vld [vmem:[#allocation5 + $0x78] sm:$0xff] }
  0x9b   :  { %v1241_v55 = vadd.f32 %v1225_v13, %v6453_v50  ;;  %v1242_v4 = vadd.f32 %v1226_v8, %v6455_v51  ;;  %v1243_v43 = vadd.f32 %v1227_v53, %v6457_v6  ;;  %v1244_v48 = vadd.f32 %v1228_v38, %v6459_v28 }
  0x9c   :  { %v1245_v16 = vadd.f32 %v1229_v27, %v6461_v49  ;;  %v1246_v57 = vadd.f32 %v1230_v59, %v6463_v3  ;;  %v1303_v46 = vrot.slane %v1281_v63, %v6118_v5  ;;  %v1310_v47 = vrot.slane %v1282_v1, %v6118_v5 }
  0x9d   :  { %v1247_v29 = vadd.f32 %v1231_v30, %v6465_v22  ;;  %v1248_v15 = vadd.f32 %v1232_v60, %v6473_v36  ;;  %v1249_v50 = vadd.f32 %v1233_v26, %v6475_v39  ;;  %v1311_v51 = vcombine.high %v6493_v17, %v6493_v17  ;;  %v5853_v30 = vld [vmem:[#allocation2 + $0x80] ss:$8 sps:$4 sm:$0xff]   ;;  %v5855_v60 = vld [vmem:[#allocation2 + $0x84] ss:$8 sps:$4 sm:$0xff]  }
  0x9e   :  { %v1250_v6 = vadd.f32 %v1234_v32, %v6477_v40  ;;  %v1251_v28 = vadd.f32 %v1235_v12, %v6481_v42  ;;  %v6531_v49 = vadd.f32 %v1236_v33, %v6483_v54  ;;  %v1313_v3 = vcombine.high %v1303_v46, %v1303_v46  ;;  %v1261_v54 = vld [vmem:[#allocation5 + $0x70] sm:$0xff] }
  0x9f   :  { %v6533_v63 = vadd.f32 %v1237_v23, %v1083_v9  ;;  %v6535_v1 = vadd.f32 %v1238_v62, %v1084_v31  ;;  %v6537_v22 = vadd.f32 %v1239_v35, %v1085_v21  ;;  %v1312_v36 = vcombine.high %v6497_v10, %v6497_v10  ;;  %v5856_v23 = vld [vmem:[#allocation2 + $0x90] ss:$8 sps:$4 sm:$0xff]  }
  0xa0   :  { %v6541_v39 = vadd.f32 %v1240_v41, %v1086_v56  ;;  %v1314_v58 = vcombine.high %v1310_v47, %v1310_v47  ;;  %v1318_v40 = vrot.slane %v6493_v17, %v6126_v18  ;;  %v1322_v42 = vrot.slane %v6493_v17, %v6128_v19 }
  0xa1   :  { %v1326_v9 = vrot.slane %v1303_v46, %v6126_v18  ;;  %v1330_v31 = vrot.slane %v1303_v46, %v6128_v19  ;;  %v1334_v21 = vrot.slane %v1311_v51, %v6126_v18  ;;  %v1338_v61 = vrot.slane %v1311_v51, %v6128_v19 }
  0xa2   :  { %v1342_v56 = vrot.slane %v1313_v3, %v6126_v18  ;;  %v1346_v44 = vrot.slane %v1313_v3, %v6128_v19  ;;  %v1350_v2 = vrot.slane %v6497_v10, %v6126_v18  ;;  %v1354_v17 = vrot.slane %v6497_v10, %v6128_v19 }
  0xa3   :  { %v1358_v11 = vrot.slane %v1310_v47, %v6126_v18  ;;  %v1362_v34 = vrot.slane %v1310_v47, %v6128_v19  ;;  %v1366_v45 = vrot.slane %v1312_v36, %v6126_v18  ;;  %v1370_v7 = vrot.slane %v1312_v36, %v6128_v19  ;;  %v5858_v47 = vld [vmem:[#allocation2 + $0x94] ss:$8 sps:$4 sm:$0xff]  }
  0xa4   :  { %v1374_v20 = vrot.slane %v1314_v58, %v6126_v18  ;;  %v1378_v52 = vrot.slane %v1314_v58, %v6128_v19  ;;  %v1395_v24 = vmul.f32 %v1318_v40, %v1261_v54  ;;  %v1396_v14 = vmul.f32 %v1322_v42, %v1262_v37 }
  0xa5   :  { %v1397_v25 = vmul.f32 %v1326_v9, %v1261_v54  ;;  %v1398_v13 = vmul.f32 %v1330_v31, %v1262_v37  ;;  %v1399_v8 = vmul.f32 %v1334_v21, %v1261_v54  ;;  %v1400_v53 = vmul.f32 %v1338_v61, %v1262_v37  ;;  %v5862_v9 = vld [vmem:[#allocation2 + $0xb0] ss:$8 sps:$4 sm:$0xff]   ;;  %v5864_v61 = vld [vmem:[#allocation2 + $0xb4] ss:$8 sps:$4 sm:$0xff]  }
  0xa6   :  { %v1401_v38 = vmul.f32 %v1342_v56, %v1261_v54  ;;  %v1402_v10 = vmul.f32 %v1346_v44, %v1262_v37  ;;  %v1403_v27 = vmul.f32 %v1350_v2, %v1261_v54  ;;  %v1404_v59 = vmul.f32 %v1354_v17, %v1262_v37 }
  0xa7   :  { %v1405_v26 = vmul.f32 %v1358_v11, %v1261_v54  ;;  %v1406_v32 = vmul.f32 %v1362_v34, %v1262_v37  ;;  %v1407_v12 = vmul.f32 %v1366_v45, %v1261_v54  ;;  %v1408_v33 = vmul.f32 %v1370_v7, %v1262_v37 }
  0xa8   :  { %v1409_v62 = vmul.f32 %v1374_v20, %v1261_v54  ;;  %v1410_v35 = vmul.f32 %v1378_v52, %v1262_v37  ;;  %v6563_v41 = vadd.f32 %v1395_v24, %v1241_v55  ;;  %v6565_v46 = vadd.f32 %v1396_v14, %v1242_v4 }
  0xa9   :  { %v6567_v51 = vadd.f32 %v1397_v25, %v1243_v43  ;;  %v6569_v3 = vadd.f32 %v1398_v13, %v1244_v48  ;;  %v6571_v36 = vadd.f32 %v1399_v8, %v1245_v16  ;;  %v6573_v58 = vadd.f32 %v1400_v53, %v1246_v57  ;;  %v5859_v16 = vld [vmem:[#allocation2 + $0xa0] ss:$8 sps:$4 sm:$0xff]   ;;  %v5861_v57 = vld [vmem:[#allocation2 + $0xa4] ss:$8 sps:$4 sm:$0xff]  }
  0xaa   :  { %v6575_v40 = vadd.f32 %v1401_v38, %v1247_v29  ;;  %v6577_v42 = vadd.f32 %v1402_v10, %v1248_v15  ;;  %v1443_v54 = vrot.slane %v5853_v30, %v6118_v5  ;;  %v1450_v55 = vrot.slane %v5855_v60, %v6118_v5  ;;  %v1431_v38 = vld [vmem:[#allocation5 + $0x80] sm:$0xff]  ;;  %v1432_v10 = vld [vmem:[#allocation5 + $0x88] sm:$0xff] }
  0xab   :  { %v6581_v37 = vadd.f32 %v1403_v27, %v1249_v50  ;;  %v6583_v4 = vadd.f32 %v1404_v59, %v1250_v6  ;;  %v6585_v43 = vadd.f32 %v1405_v26, %v1251_v28  ;;  %v6588_v48 = vrot.slane %v5856_v23, %v6118_v5 }
  0xac   :  { %v1451_v29 = vcombine.high %v1443_v54, %v1443_v54  ;;  %v1452_v31 = vcombine.high %v1450_v55, %v1450_v55  ;;  %v1459_v15 = vrot.slane %v1443_v54, %v6118_v5  ;;  %v6592_v21 = vrot.slane %v5858_v47, %v6118_v5 }
  0xad   :  { %v6595_v50 = vadd.f32 %v1406_v32, %v6531_v49  ;;  %v6598_v6 = vadd.f32 %v1407_v12, %v6533_v63  ;;  %v6601_v28 = vadd.f32 %v1408_v33, %v6535_v1  ;;  %v1466_v56 = vrot.slane %v1450_v55, %v6118_v5 }
  0xae   :  { %v6605_v44 = vadd.f32 %v1409_v62, %v6537_v22  ;;  %v6608_v2 = vadd.f32 %v1410_v35, %v6541_v39  ;;  %v1473_v17 = vrot.slane %v1451_v29, %v6118_v5  ;;  %v1480_v11 = vrot.slane %v1452_v31, %v6118_v5 }
  0xaf   :  { %v1481_v49 = vcombine.high %v1459_v15, %v1459_v15  ;;  %v6613_v34 = vrot.slane %v5859_v16, %v6118_v5  ;;  %v6616_v63 = vrot.slane %v5861_v57, %v6118_v5  ;;  %v6619_v1 = vrot.slane %v5862_v9, %v6118_v5 }
  0xb0   :  { %v1483_v45 = vcombine.high %v1473_v17, %v1473_v17  ;;  %v1621_v22 = vcombine.high %v6588_v48, %v6588_v48  ;;  %v1622_v39 = vcombine.high %v6592_v21, %v6592_v21  ;;  %v6626_v7 = vrot.slane %v5864_v61, %v6118_v5 }
  0xb1   :  { %v1482_v20 = vcombine.high %v1466_v56, %v1466_v56  ;;  %v1484_v52 = vcombine.high %v1480_v11, %v1480_v11  ;;  %v6630_v24 = vrot.slane %v6588_v48, %v6118_v5  ;;  %v6634_v14 = vrot.slane %v6592_v21, %v6118_v5 }
  0xb2   :  { %v1488_v25 = vrot.slane %v1459_v15, %v6126_v18  ;;  %v1492_v13 = vrot.slane %v1459_v15, %v6128_v19  ;;  %v1496_v8 = vrot.slane %v1473_v17, %v6126_v18  ;;  %v1500_v53 = vrot.slane %v1473_v17, %v6128_v19 }
  0xb3   :  { %v1504_v27 = vrot.slane %v1481_v49, %v6126_v18  ;;  %v1508_v59 = vrot.slane %v1481_v49, %v6128_v19  ;;  %v1512_v30 = vrot.slane %v1483_v45, %v6126_v18  ;;  %v1516_v60 = vrot.slane %v1483_v45, %v6128_v19 }
  0xb4   :  { %v1520_v26 = vrot.slane %v1466_v56, %v6126_v18  ;;  %v1524_v32 = vrot.slane %v1466_v56, %v6128_v19  ;;  %v1528_v12 = vrot.slane %v1480_v11, %v6126_v18  ;;  %v1532_v33 = vrot.slane %v1480_v11, %v6128_v19 }
  0xb5   :  { %v1536_v23 = vrot.slane %v1482_v20, %v6126_v18  ;;  %v1540_v62 = vrot.slane %v1482_v20, %v6128_v19  ;;  %v1544_v35 = vrot.slane %v1484_v52, %v6126_v18  ;;  %v1548_v47 = vrot.slane %v1484_v52, %v6128_v19 }
  0xb6   :  { %v1565_v54 = vmul.f32 %v1488_v25, %v1431_v38  ;;  %v1566_v55 = vmul.f32 %v1492_v13, %v1432_v10  ;;  %v1567_v48 = vmul.f32 %v1496_v8, %v1431_v38  ;;  %v1568_v16 = vmul.f32 %v1500_v53, %v1432_v10 }
  0xb7   :  { %v1569_v57 = vmul.f32 %v1504_v27, %v1431_v38  ;;  %v1570_v9 = vmul.f32 %v1508_v59, %v1432_v10  ;;  %v1571_v29 = vmul.f32 %v1512_v30, %v1431_v38  ;;  %v1572_v31 = vmul.f32 %v1516_v60, %v1432_v10  ;;  %v1602_v60 = vld [vmem:[#allocation5 + $0x98] sm:$0xff] }
  0xb8   :  { %v1573_v15 = vmul.f32 %v1520_v26, %v1431_v38  ;;  %v1574_v21 = vmul.f32 %v1524_v32, %v1432_v10  ;;  %v1575_v61 = vmul.f32 %v1528_v12, %v1431_v38  ;;  %v1576_v56 = vmul.f32 %v1532_v33, %v1432_v10 }
  0xb9   :  { %v1577_v17 = vmul.f32 %v1536_v23, %v1431_v38  ;;  %v1578_v11 = vmul.f32 %v1540_v62, %v1432_v10  ;;  %v1579_v49 = vmul.f32 %v1544_v35, %v1431_v38  ;;  %v1580_v45 = vmul.f32 %v1548_v47, %v1432_v10 }
  0xba   :  { %v1581_v20 = vadd.f32 %v1565_v54, %v6563_v41  ;;  %v1582_v52 = vadd.f32 %v1566_v55, %v6565_v46  ;;  %v1583_v25 = vadd.f32 %v1567_v48, %v6567_v51  ;;  %v1584_v13 = vadd.f32 %v1568_v16, %v6569_v3 }
  0xbb   :  { %v1585_v8 = vadd.f32 %v1569_v57, %v6571_v36  ;;  %v1586_v53 = vadd.f32 %v1570_v9, %v6573_v58  ;;  %v1643_v27 = vrot.slane %v1621_v22, %v6118_v5  ;;  %v1650_v59 = vrot.slane %v1622_v39, %v6118_v5 }
  0xbc   :  { %v1587_v30 = vadd.f32 %v1571_v29, %v6575_v40  ;;  %v1588_v38 = vadd.f32 %v1572_v31, %v6577_v42  ;;  %v1589_v41 = vadd.f32 %v1573_v15, %v6581_v37  ;;  %v1651_v46 = vcombine.high %v6630_v24, %v6630_v24 }
  0xbd   :  { %v1590_v51 = vadd.f32 %v1574_v21, %v6583_v4  ;;  %v1591_v3 = vadd.f32 %v1575_v61, %v6585_v43  ;;  %v1592_v36 = vadd.f32 %v1576_v56, %v6595_v50  ;;  %v1653_v58 = vcombine.high %v1643_v27, %v1643_v27  ;;  %v1601_v50 = vld [vmem:[#allocation5 + $0x90] sm:$0xff] }
  0xbe   :  { %v1593_v22 = vadd.f32 %v1577_v17, %v6598_v6  ;;  %v1594_v39 = vadd.f32 %v1578_v11, %v6601_v28  ;;  %v1595_v40 = vadd.f32 %v1579_v49, %v6605_v44  ;;  %v1652_v42 = vcombine.high %v6634_v14, %v6634_v14 }
  0xbf   :  { %v1596_v37 = vadd.f32 %v1580_v45, %v6608_v2  ;;  %v1654_v10 = vcombine.high %v1650_v59, %v1650_v59  ;;  %v1658_v4 = vrot.slane %v6630_v24, %v6126_v18  ;;  %v1662_v43 = vrot.slane %v6630_v24, %v6128_v19 }
  0xc0   :  { %v1666_v6 = vrot.slane %v1643_v27, %v6126_v18  ;;  %v1670_v28 = vrot.slane %v1643_v27, %v6128_v19  ;;  %v1674_v44 = vrot.slane %v1651_v46, %v6126_v18  ;;  %v1678_v26 = vrot.slane %v1651_v46, %v6128_v19 }
  0xc1   :  { %v1682_v32 = vrot.slane %v1653_v58, %v6126_v18  ;;  %v1686_v2 = vrot.slane %v1653_v58, %v6128_v19  ;;  %v1690_v12 = vrot.slane %v6634_v14, %v6126_v18  ;;  %v1694_v24 = vrot.slane %v6634_v14, %v6128_v19 }
  0xc2   :  { %v1698_v33 = vrot.slane %v1650_v59, %v6126_v18  ;;  %v1702_v23 = vrot.slane %v1650_v59, %v6128_v19  ;;  %v1706_v62 = vrot.slane %v1652_v42, %v6126_v18  ;;  %v1710_v35 = vrot.slane %v1652_v42, %v6128_v19 }
  0xc3   :  { %v1714_v47 = vrot.slane %v1654_v10, %v6126_v18  ;;  %v1718_v54 = vrot.slane %v1654_v10, %v6128_v19  ;;  %v1735_v55 = vmul.f32 %v1658_v4, %v1601_v50  ;;  %v1736_v48 = vmul.f32 %v1662_v43, %v1602_v60 }
  0xc4   :  { %v1737_v16 = vmul.f32 %v1666_v6, %v1601_v50  ;;  %v1738_v57 = vmul.f32 %v1670_v28, %v1602_v60  ;;  %v1739_v9 = vmul.f32 %v1674_v44, %v1601_v50  ;;  %v1740_v29 = vmul.f32 %v1678_v26, %v1602_v60 }
  0xc5   :  { %v1741_v31 = vmul.f32 %v1682_v32, %v1601_v50  ;;  %v1742_v14 = vmul.f32 %v1686_v2, %v1602_v60  ;;  %v1743_v15 = vmul.f32 %v1690_v12, %v1601_v50  ;;  %v1744_v21 = vmul.f32 %v1694_v24, %v1602_v60  ;;  %v1771_v12 = vld [vmem:[#allocation5 + $0xa0] sm:$0xff]  ;;  %v1772_v24 = vld [vmem:[#allocation5 + $0xa8] sm:$0xff] }
  0xc6   :  { %v1745_v61 = vmul.f32 %v1698_v33, %v1601_v50  ;;  %v1746_v56 = vmul.f32 %v1702_v23, %v1602_v60  ;;  %v1747_v17 = vmul.f32 %v1706_v62, %v1601_v50  ;;  %v1748_v11 = vmul.f32 %v1710_v35, %v1602_v60 }
  0xc7   :  { %v1749_v49 = vmul.f32 %v1714_v47, %v1601_v50  ;;  %v1750_v45 = vmul.f32 %v1718_v54, %v1602_v60  ;;  %v6694_v27 = vadd.f32 %v1735_v55, %v1581_v20  ;;  %v6696_v59 = vadd.f32 %v1736_v48, %v1582_v52 }
  0xc8   :  { %v6698_v46 = vadd.f32 %v1737_v16, %v1583_v25  ;;  %v6700_v58 = vadd.f32 %v1738_v57, %v1584_v13  ;;  %v6702_v42 = vadd.f32 %v1739_v9, %v1585_v8  ;;  %v6704_v10 = vadd.f32 %v1740_v29, %v1586_v53 }
  0xc9   :  { %v6706_v4 = vadd.f32 %v1741_v31, %v1587_v30  ;;  %v1791_v43 = vcombine.high %v6613_v34, %v6613_v34  ;;  %v1792_v50 = vcombine.high %v6616_v63, %v6616_v63  ;;  %v1799_v20 = vrot.slane %v6613_v34, %v6118_v5 }
  0xca   :  { %v6714_v52 = vadd.f32 %v1742_v14, %v1588_v38  ;;  %v6716_v25 = vadd.f32 %v1743_v15, %v1589_v41  ;;  %v6718_v13 = vadd.f32 %v1744_v21, %v1590_v51  ;;  %v1806_v8 = vrot.slane %v6616_v63, %v6118_v5 }
  0xcb   :  { %v6722_v53 = vadd.f32 %v1745_v61, %v1591_v3  ;;  %v6724_v30 = vadd.f32 %v1746_v56, %v1592_v36  ;;  %v1813_v60 = vrot.slane %v1791_v43, %v6118_v5  ;;  %v1820_v6 = vrot.slane %v1792_v50, %v6118_v5 }
  0xcc   :  { %v1763_v28 = vadd.f32 %v1747_v17, %v1593_v22  ;;  %v1764_v44 = vadd.f32 %v1748_v11, %v1594_v39  ;;  %v1765_v34 = vadd.f32 %v1749_v49, %v1595_v40  ;;  %v1821_v38 = vcombine.high %v1799_v20, %v1799_v20 }
  0xcd   :  { %v1766_v26 = vadd.f32 %v1750_v45, %v1596_v37  ;;  %v1823_v41 = vcombine.high %v1813_v60, %v1813_v60  ;;  %v1961_v51 = vcombine.high %v6619_v1, %v6619_v1  ;;  %v1962_v63 = vcombine.high %v6626_v7, %v6626_v7 }
  0xce   :  { %v1822_v3 = vcombine.high %v1806_v8, %v1806_v8  ;;  %v1824_v32 = vcombine.high %v1820_v6, %v1820_v6  ;;  %v6734_v36 = vrot.slane %v6619_v1, %v6118_v5  ;;  %v6738_v22 = vrot.slane %v6626_v7, %v6118_v5 }
  0xcf   :  { %v1828_v39 = vrot.slane %v1799_v20, %v6126_v18  ;;  %v1832_v40 = vrot.slane %v1799_v20, %v6128_v19  ;;  %v1836_v37 = vrot.slane %v1813_v60, %v6126_v18  ;;  %v1840_v2 = vrot.slane %v1813_v60, %v6128_v19 }
  0xd0   :  { %v1844_v33 = vrot.slane %v1821_v38, %v6126_v18  ;;  %v1848_v23 = vrot.slane %v1821_v38, %v6128_v19  ;;  %v1852_v1 = vrot.slane %v1823_v41, %v6126_v18  ;;  %v1856_v62 = vrot.slane %v1823_v41, %v6128_v19 }
  0xd1   :  { %v1860_v7 = vrot.slane %v1806_v8, %v6126_v18  ;;  %v1864_v35 = vrot.slane %v1806_v8, %v6128_v19  ;;  %v1868_v47 = vrot.slane %v1820_v6, %v6126_v18  ;;  %v1872_v54 = vrot.slane %v1820_v6, %v6128_v19 }
  0xd2   :  { %v1876_v55 = vrot.slane %v1822_v3, %v6126_v18  ;;  %v1880_v48 = vrot.slane %v1822_v3, %v6128_v19  ;;  %v1884_v16 = vrot.slane %v1824_v32, %v6126_v18  ;;  %v1888_v57 = vrot.slane %v1824_v32, %v6128_v19 }
  0xd3   :  { %v1905_v9 = vmul.f32 %v1828_v39, %v1771_v12  ;;  %v1906_v29 = vmul.f32 %v1832_v40, %v1772_v24  ;;  %v1907_v31 = vmul.f32 %v1836_v37, %v1771_v12  ;;  %v1908_v14 = vmul.f32 %v1840_v2, %v1772_v24 }
  0xd4   :  { %v1909_v15 = vmul.f32 %v1844_v33, %v1771_v12  ;;  %v1910_v21 = vmul.f32 %v1848_v23, %v1772_v24  ;;  %v1911_v61 = vmul.f32 %v1852_v1, %v1771_v12  ;;  %v1912_v56 = vmul.f32 %v1856_v62, %v1772_v24 }
  0xd5   :  { %v1913_v17 = vmul.f32 %v1860_v7, %v1771_v12  ;;  %v1914_v11 = vmul.f32 %v1864_v35, %v1772_v24  ;;  %v1915_v49 = vmul.f32 %v1868_v47, %v1771_v12  ;;  %v1916_v45 = vmul.f32 %v1872_v54, %v1772_v24 }
  0xd6   :  { %v1917_v43 = vmul.f32 %v1876_v55, %v1771_v12  ;;  %v1918_v50 = vmul.f32 %v1880_v48, %v1772_v24  ;;  %v1919_v20 = vmul.f32 %v1884_v16, %v1771_v12  ;;  %v1920_v8 = vmul.f32 %v1888_v57, %v1772_v24  ;;  %v1942_v24 = vld [vmem:[#allocation5 + $0xb8] sm:$0xff] }
  0xd7   :  { %v1921_v60 = vadd.f32 %v1905_v9, %v6694_v27  ;;  %v1922_v6 = vadd.f32 %v1906_v29, %v6696_v59  ;;  %v1923_v38 = vadd.f32 %v1907_v31, %v6698_v46  ;;  %v1924_v41 = vadd.f32 %v1908_v14, %v6700_v58 }
  0xd8   :  { %v1925_v3 = vadd.f32 %v1909_v15, %v6702_v42  ;;  %v1926_v32 = vadd.f32 %v1910_v21, %v6704_v10  ;;  %v1983_v39 = vrot.slane %v1961_v51, %v6118_v5  ;;  %v1990_v40 = vrot.slane %v1962_v63, %v6118_v5 }
  0xd9   :  { %v1927_v37 = vadd.f32 %v1911_v61, %v6706_v4  ;;  %v1928_v2 = vadd.f32 %v1912_v56, %v6714_v52  ;;  %v1929_v27 = vadd.f32 %v1913_v17, %v6716_v25  ;;  %v1991_v59 = vcombine.high %v6734_v36, %v6734_v36  ;;  %v5865_v61 = vld [vmem:[#allocation2 + $0xc0] ss:$8 sps:$4 sm:$0xff]   ;;  %v5867_v56 = vld [vmem:[#allocation2 + $0xc4] ss:$8 sps:$4 sm:$0xff]  }
  0xda   :  { %v1930_v46 = vadd.f32 %v1914_v11, %v6718_v13  ;;  %v1931_v58 = vadd.f32 %v1915_v49, %v6722_v53  ;;  %v6772_v42 = vadd.f32 %v1916_v45, %v6724_v30  ;;  %v1993_v10 = vcombine.high %v1983_v39, %v1983_v39  ;;  %v1941_v30 = vld [vmem:[#allocation5 + $0xb0] sm:$0xff] }
  0xdb   :  { %v6774_v51 = vadd.f32 %v1917_v43, %v1763_v28  ;;  %v6776_v63 = vadd.f32 %v1918_v50, %v1764_v44  ;;  %v6778_v4 = vadd.f32 %v1919_v20, %v1765_v34  ;;  %v1992_v52 = vcombine.high %v6738_v22, %v6738_v22  ;;  %v5868_v43 = vld [vmem:[#allocation2 + $0xd0] ss:$8 sps:$4 sm:$0xff]  }
  0xdc   :  { %v6782_v25 = vadd.f32 %v1920_v8, %v1766_v26  ;;  %v1994_v12 = vcombine.high %v1990_v40, %v1990_v40  ;;  %v1998_v13 = vrot.slane %v6734_v36, %v6126_v18  ;;  %v2002_v53 = vrot.slane %v6734_v36, %v6128_v19 }
  0xdd   :  { %v2006_v28 = vrot.slane %v1983_v39, %v6126_v18  ;;  %v2010_v44 = vrot.slane %v1983_v39, %v6128_v19  ;;  %v2014_v34 = vrot.slane %v1991_v59, %v6126_v18  ;;  %v2018_v33 = vrot.slane %v1991_v59, %v6128_v19 }
  0xde   :  { %v2022_v26 = vrot.slane %v1993_v10, %v6126_v18  ;;  %v2026_v23 = vrot.slane %v1993_v10, %v6128_v19  ;;  %v2030_v1 = vrot.slane %v6738_v22, %v6126_v18  ;;  %v2034_v36 = vrot.slane %v6738_v22, %v6128_v19 }
  0xdf   :  { %v2038_v62 = vrot.slane %v1990_v40, %v6126_v18  ;;  %v2042_v7 = vrot.slane %v1990_v40, %v6128_v19  ;;  %v2046_v35 = vrot.slane %v1992_v52, %v6126_v18  ;;  %v2050_v47 = vrot.slane %v1992_v52, %v6128_v19  ;;  %v5870_v40 = vld [vmem:[#allocation2 + $0xd4] ss:$8 sps:$4 sm:$0xff]  }
  0xe0   :  { %v2054_v54 = vrot.slane %v1994_v12, %v6126_v18  ;;  %v2058_v55 = vrot.slane %v1994_v12, %v6128_v19  ;;  %v2075_v48 = vmul.f32 %v1998_v13, %v1941_v30  ;;  %v2076_v16 = vmul.f32 %v2002_v53, %v1942_v24 }
  0xe1   :  { %v2077_v57 = vmul.f32 %v2006_v28, %v1941_v30  ;;  %v2078_v9 = vmul.f32 %v2010_v44, %v1942_v24  ;;  %v2079_v29 = vmul.f32 %v2014_v34, %v1941_v30  ;;  %v2080_v31 = vmul.f32 %v2018_v33, %v1942_v24  ;;  %v5874_v28 = vld [vmem:[#allocation2 + $0xf0] ss:$8 sps:$4 sm:$0xff]   ;;  %v5876_v33 = vld [vmem:[#allocation2 + $0xf4] ss:$8 sps:$4 sm:$0xff]  }
  0xe2   :  { %v2081_v14 = vmul.f32 %v2022_v26, %v1941_v30  ;;  %v2082_v22 = vmul.f32 %v2026_v23, %v1942_v24  ;;  %v2083_v15 = vmul.f32 %v2030_v1, %v1941_v30  ;;  %v2084_v21 = vmul.f32 %v2034_v36, %v1942_v24 }
  0xe3   :  { %v2085_v17 = vmul.f32 %v2038_v62, %v1941_v30  ;;  %v2086_v11 = vmul.f32 %v2042_v7, %v1942_v24  ;;  %v2087_v49 = vmul.f32 %v2046_v35, %v1941_v30  ;;  %v2088_v45 = vmul.f32 %v2050_v47, %v1942_v24 }
  0xe4   :  { %v2089_v50 = vmul.f32 %v2054_v54, %v1941_v30  ;;  %v2090_v20 = vmul.f32 %v2058_v55, %v1942_v24  ;;  %v6804_v8 = vadd.f32 %v2075_v48, %v1921_v60  ;;  %v6806_v39 = vadd.f32 %v2076_v16, %v1922_v6 }
  0xe5   :  { %v6808_v59 = vadd.f32 %v2077_v57, %v1923_v38  ;;  %v6810_v10 = vadd.f32 %v2078_v9, %v1924_v41  ;;  %v6812_v52 = vadd.f32 %v2079_v29, %v1925_v3  ;;  %v6814_v12 = vadd.f32 %v2080_v31, %v1926_v32  ;;  %v5871_v3 = vld [vmem:[#allocation2 + $0xe0] ss:$8 sps:$4 sm:$0xff]   ;;  %v5873_v32 = vld [vmem:[#allocation2 + $0xe4] ss:$8 sps:$4 sm:$0xff]  }
  0xe6   :  { %v6816_v13 = vadd.f32 %v2081_v14, %v1927_v37  ;;  %v6818_v53 = vadd.f32 %v2082_v22, %v1928_v2  ;;  %v2123_v30 = vrot.slane %v5865_v61, %v6118_v5  ;;  %v2130_v60 = vrot.slane %v5867_v56, %v6118_v5  ;;  %v2111_v14 = vld [vmem:[#allocation5 + $0xc0] sm:$0xff]  ;;  %v2112_v22 = vld [vmem:[#allocation5 + $0xc8] sm:$0xff] }
  0xe7   :  { %v6822_v24 = vadd.f32 %v2083_v15, %v1929_v27  ;;  %v6824_v6 = vadd.f32 %v2084_v21, %v1930_v46  ;;  %v6826_v38 = vadd.f32 %v2085_v17, %v1931_v58  ;;  %v6829_v41 = vrot.slane %v5868_v43, %v6118_v5 }
  0xe8   :  { %v2131_v37 = vcombine.high %v2123_v30, %v2123_v30  ;;  %v2132_v44 = vcombine.high %v2130_v60, %v2130_v60  ;;  %v2139_v2 = vrot.slane %v2123_v30, %v6118_v5  ;;  %v6833_v34 = vrot.slane %v5870_v40, %v6118_v5 }
  0xe9   :  { %v6836_v27 = vadd.f32 %v2086_v11, %v6772_v42  ;;  %v6839_v46 = vadd.f32 %v2087_v49, %v6774_v51  ;;  %v6842_v58 = vadd.f32 %v2088_v45, %v6776_v63  ;;  %v2146_v26 = vrot.slane %v2130_v60, %v6118_v5 }
  0xea   :  { %v6846_v23 = vadd.f32 %v2089_v50, %v6778_v4  ;;  %v6849_v1 = vadd.f32 %v2090_v20, %v6782_v25  ;;  %v2153_v36 = vrot.slane %v2131_v37, %v6118_v5  ;;  %v2160_v62 = vrot.slane %v2132_v44, %v6118_v5 }
  0xeb   :  { %v2161_v42 = vcombine.high %v2139_v2, %v2139_v2  ;;  %v6854_v7 = vrot.slane %v5871_v3, %v6118_v5  ;;  %v6857_v51 = vrot.slane %v5873_v32, %v6118_v5  ;;  %v6860_v63 = vrot.slane %v5874_v28, %v6118_v5 }
  0xec   :  { %v2163_v35 = vcombine.high %v2153_v36, %v2153_v36  ;;  %v2301_v4 = vcombine.high %v6829_v41, %v6829_v41  ;;  %v2302_v25 = vcombine.high %v6833_v34, %v6833_v34  ;;  %v6867_v47 = vrot.slane %v5876_v33, %v6118_v5 }
  0xed   :  { %v2162_v54 = vcombine.high %v2146_v26, %v2146_v26  ;;  %v2164_v55 = vcombine.high %v2160_v62, %v2160_v62  ;;  %v6871_v48 = vrot.slane %v6829_v41, %v6118_v5  ;;  %v6875_v16 = vrot.slane %v6833_v34, %v6118_v5 }
  0xee   :  { %v2168_v57 = vrot.slane %v2139_v2, %v6126_v18  ;;  %v2172_v9 = vrot.slane %v2139_v2, %v6128_v19  ;;  %v2176_v29 = vrot.slane %v2153_v36, %v6126_v18  ;;  %v2180_v31 = vrot.slane %v2153_v36, %v6128_v19 }
  0xef   :  { %v2184_v15 = vrot.slane %v2161_v42, %v6126_v18  ;;  %v2188_v21 = vrot.slane %v2161_v42, %v6128_v19  ;;  %v2192_v61 = vrot.slane %v2163_v35, %v6126_v18  ;;  %v2196_v56 = vrot.slane %v2163_v35, %v6128_v19 }
  0xf0   :  { %v2200_v17 = vrot.slane %v2146_v26, %v6126_v18  ;;  %v2204_v11 = vrot.slane %v2146_v26, %v6128_v19  ;;  %v2208_v49 = vrot.slane %v2160_v62, %v6126_v18  ;;  %v2212_v45 = vrot.slane %v2160_v62, %v6128_v19 }
  0xf1   :  { %v2216_v43 = vrot.slane %v2162_v54, %v6126_v18  ;;  %v2220_v50 = vrot.slane %v2162_v54, %v6128_v19  ;;  %v2224_v20 = vrot.slane %v2164_v55, %v6126_v18  ;;  %v2228_v40 = vrot.slane %v2164_v55, %v6128_v19 }
  0xf2   :  { %v2245_v30 = vmul.f32 %v2168_v57, %v2111_v14  ;;  %v2246_v60 = vmul.f32 %v2172_v9, %v2112_v22  ;;  %v2247_v41 = vmul.f32 %v2176_v29, %v2111_v14  ;;  %v2248_v3 = vmul.f32 %v2180_v31, %v2112_v22 }
  0xf3   :  { %v2249_v32 = vmul.f32 %v2184_v15, %v2111_v14  ;;  %v2250_v28 = vmul.f32 %v2188_v21, %v2112_v22  ;;  %v2251_v37 = vmul.f32 %v2192_v61, %v2111_v14  ;;  %v2252_v44 = vmul.f32 %v2196_v56, %v2112_v22  ;;  %v2282_v56 = vld [vmem:[#allocation5 + $0xd8] sm:$0xff] }
  0xf4   :  { %v2253_v2 = vmul.f32 %v2200_v17, %v2111_v14  ;;  %v2254_v34 = vmul.f32 %v2204_v11, %v2112_v22  ;;  %v2255_v33 = vmul.f32 %v2208_v49, %v2111_v14  ;;  %v2256_v26 = vmul.f32 %v2212_v45, %v2112_v22 }
  0xf5   :  { %v2257_v36 = vmul.f32 %v2216_v43, %v2111_v14  ;;  %v2258_v62 = vmul.f32 %v2220_v50, %v2112_v22  ;;  %v2259_v42 = vmul.f32 %v2224_v20, %v2111_v14  ;;  %v2260_v35 = vmul.f32 %v2228_v40, %v2112_v22 }
  0xf6   :  { %v2261_v54 = vadd.f32 %v2245_v30, %v6804_v8  ;;  %v2262_v55 = vadd.f32 %v2246_v60, %v6806_v39  ;;  %v2263_v57 = vadd.f32 %v2247_v41, %v6808_v59  ;;  %v2264_v9 = vadd.f32 %v2248_v3, %v6810_v10 }
  0xf7   :  { %v2265_v29 = vadd.f32 %v2249_v32, %v6812_v52  ;;  %v2266_v31 = vadd.f32 %v2250_v28, %v6814_v12  ;;  %v2323_v15 = vrot.slane %v2301_v4, %v6118_v5  ;;  %v2330_v21 = vrot.slane %v2302_v25, %v6118_v5 }
  0xf8   :  { %v2267_v61 = vadd.f32 %v2251_v37, %v6816_v13  ;;  %v2268_v14 = vadd.f32 %v2252_v44, %v6818_v53  ;;  %v2269_v8 = vadd.f32 %v2253_v2, %v6822_v24  ;;  %v2331_v39 = vcombine.high %v6871_v48, %v6871_v48 }
  0xf9   :  { %v2270_v59 = vadd.f32 %v2254_v34, %v6824_v6  ;;  %v2271_v10 = vadd.f32 %v2255_v33, %v6826_v38  ;;  %v2272_v52 = vadd.f32 %v2256_v26, %v6836_v27  ;;  %v2333_v12 = vcombine.high %v2323_v15, %v2323_v15  ;;  %v2281_v27 = vld [vmem:[#allocation5 + $0xd0] sm:$0xff] }
  0xfa   :  { %v2273_v4 = vadd.f32 %v2257_v36, %v6839_v46  ;;  %v2274_v25 = vadd.f32 %v2258_v62, %v6842_v58  ;;  %v2275_v13 = vadd.f32 %v2259_v42, %v6846_v23  ;;  %v2332_v53 = vcombine.high %v6875_v16, %v6875_v16 }
  0xfb   :  { %v2276_v24 = vadd.f32 %v2260_v35, %v6849_v1  ;;  %v2334_v22 = vcombine.high %v2330_v21, %v2330_v21  ;;  %v2338_v6 = vrot.slane %v6871_v48, %v6126_v18  ;;  %v2342_v38 = vrot.slane %v6871_v48, %v6128_v19 }
  0xfc   :  { %v2346_v46 = vrot.slane %v2323_v15, %v6126_v18  ;;  %v2350_v58 = vrot.slane %v2323_v15, %v6128_v19  ;;  %v2354_v23 = vrot.slane %v2331_v39, %v6126_v18  ;;  %v2358_v17 = vrot.slane %v2331_v39, %v6128_v19 }
  0xfd   :  { %v2362_v11 = vrot.slane %v2333_v12, %v6126_v18  ;;  %v2366_v1 = vrot.slane %v2333_v12, %v6128_v19  ;;  %v2370_v49 = vrot.slane %v6875_v16, %v6126_v18  ;;  %v2374_v48 = vrot.slane %v6875_v16, %v6128_v19 }
  0xfe   :  { %v2378_v45 = vrot.slane %v2330_v21, %v6126_v18  ;;  %v2382_v43 = vrot.slane %v2330_v21, %v6128_v19  ;;  %v2386_v50 = vrot.slane %v2332_v53, %v6126_v18  ;;  %v2390_v20 = vrot.slane %v2332_v53, %v6128_v19 }
  0xff   :  { %v2394_v40 = vrot.slane %v2334_v22, %v6126_v18  ;;  %v2398_v30 = vrot.slane %v2334_v22, %v6128_v19  ;;  %v2415_v60 = vmul.f32 %v2338_v6, %v2281_v27  ;;  %v2416_v41 = vmul.f32 %v2342_v38, %v2282_v56 }
 0x100   :  { %v2417_v3 = vmul.f32 %v2346_v46, %v2281_v27  ;;  %v2418_v32 = vmul.f32 %v2350_v58, %v2282_v56  ;;  %v2419_v28 = vmul.f32 %v2354_v23, %v2281_v27  ;;  %v2420_v37 = vmul.f32 %v2358_v17, %v2282_v56 }
 0x101   :  { %v2421_v44 = vmul.f32 %v2362_v11, %v2281_v27  ;;  %v2422_v16 = vmul.f32 %v2366_v1, %v2282_v56  ;;  %v2423_v2 = vmul.f32 %v2370_v49, %v2281_v27  ;;  %v2424_v34 = vmul.f32 %v2374_v48, %v2282_v56  ;;  %v2451_v49 = vld [vmem:[#allocation5 + $0xe0] sm:$0xff]  ;;  %v2452_v48 = vld [vmem:[#allocation5 + $0xe8] sm:$0xff] }
 0x102   :  { %v2425_v33 = vmul.f32 %v2378_v45, %v2281_v27  ;;  %v2426_v26 = vmul.f32 %v2382_v43, %v2282_v56  ;;  %v2427_v36 = vmul.f32 %v2386_v50, %v2281_v27  ;;  %v2428_v62 = vmul.f32 %v2390_v20, %v2282_v56 }
 0x103   :  { %v2429_v42 = vmul.f32 %v2394_v40, %v2281_v27  ;;  %v2430_v35 = vmul.f32 %v2398_v30, %v2282_v56  ;;  %v6935_v15 = vadd.f32 %v2415_v60, %v2261_v54  ;;  %v6937_v21 = vadd.f32 %v2416_v41, %v2262_v55 }
 0x104   :  { %v6939_v39 = vadd.f32 %v2417_v3, %v2263_v57  ;;  %v6941_v12 = vadd.f32 %v2418_v32, %v2264_v9  ;;  %v6943_v53 = vadd.f32 %v2419_v28, %v2265_v29  ;;  %v6945_v22 = vadd.f32 %v2420_v37, %v2266_v31 }
 0x105   :  { %v6947_v6 = vadd.f32 %v2421_v44, %v2267_v61  ;;  %v2471_v38 = vcombine.high %v6854_v7, %v6854_v7  ;;  %v2472_v27 = vcombine.high %v6857_v51, %v6857_v51  ;;  %v2479_v54 = vrot.slane %v6854_v7, %v6118_v5 }
 0x106   :  { %v6955_v55 = vadd.f32 %v2422_v16, %v2268_v14  ;;  %v6957_v57 = vadd.f32 %v2423_v2, %v2269_v8  ;;  %v6959_v9 = vadd.f32 %v2424_v34, %v2270_v59  ;;  %v2486_v29 = vrot.slane %v6857_v51, %v6118_v5 }
 0x107   :  { %v6963_v31 = vadd.f32 %v2425_v33, %v2271_v10  ;;  %v6965_v61 = vadd.f32 %v2426_v26, %v2272_v52  ;;  %v2493_v56 = vrot.slane %v2471_v38, %v6118_v5  ;;  %v2500_v46 = vrot.slane %v2472_v27, %v6118_v5 }
 0x108   :  { %v2443_v58 = vadd.f32 %v2427_v36, %v2273_v4  ;;  %v2444_v23 = vadd.f32 %v2428_v62, %v2274_v25  ;;  %v2445_v7 = vadd.f32 %v2429_v42, %v2275_v13  ;;  %v2501_v14 = vcombine.high %v2479_v54, %v2479_v54 }
 0x109   :  { %v2446_v17 = vadd.f32 %v2430_v35, %v2276_v24  ;;  %v2503_v8 = vcombine.high %v2493_v56, %v2493_v56  ;;  %v2641_v59 = vcombine.high %v6860_v63, %v6860_v63  ;;  %v2642_v51 = vcombine.high %v6867_v47, %v6867_v47 }
 0x10a   :  { %v2502_v10 = vcombine.high %v2486_v29, %v2486_v29  ;;  %v2504_v11 = vcombine.high %v2500_v46, %v2500_v46  ;;  %v6975_v52 = vrot.slane %v6860_v63, %v6118_v5  ;;  %v6979_v4 = vrot.slane %v6867_v47, %v6118_v5 }
 0x10b   :  { %v2508_v25 = vrot.slane %v2479_v54, %v6126_v18  ;;  %v2512_v13 = vrot.slane %v2479_v54, %v6128_v19  ;;  %v2516_v24 = vrot.slane %v2493_v56, %v6126_v18  ;;  %v2520_v1 = vrot.slane %v2493_v56, %v6128_v19 }
 0x10c   :  { %v2524_v45 = vrot.slane %v2501_v14, %v6126_v18  ;;  %v2528_v43 = vrot.slane %v2501_v14, %v6128_v19  ;;  %v2532_v63 = vrot.slane %v2503_v8, %v6126_v18  ;;  %v2536_v50 = vrot.slane %v2503_v8, %v6128_v19 }
 0x10d   :  { %v2540_v47 = vrot.slane %v2486_v29, %v6126_v18  ;;  %v2544_v20 = vrot.slane %v2486_v29, %v6128_v19  ;;  %v2548_v40 = vrot.slane %v2500_v46, %v6126_v18  ;;  %v2552_v30 = vrot.slane %v2500_v46, %v6128_v19 }
 0x10e   :  { %v2556_v60 = vrot.slane %v2502_v10, %v6126_v18  ;;  %v2560_v41 = vrot.slane %v2502_v10, %v6128_v19  ;;  %v2564_v3 = vrot.slane %v2504_v11, %v6126_v18  ;;  %v2568_v32 = vrot.slane %v2504_v11, %v6128_v19 }
 0x10f   :  { %v2585_v28 = vmul.f32 %v2508_v25, %v2451_v49  ;;  %v2586_v37 = vmul.f32 %v2512_v13, %v2452_v48  ;;  %v2587_v44 = vmul.f32 %v2516_v24, %v2451_v49  ;;  %v2588_v16 = vmul.f32 %v2520_v1, %v2452_v48 }
 0x110   :  { %v2589_v2 = vmul.f32 %v2524_v45, %v2451_v49  ;;  %v2590_v34 = vmul.f32 %v2528_v43, %v2452_v48  ;;  %v2591_v33 = vmul.f32 %v2532_v63, %v2451_v49  ;;  %v2592_v26 = vmul.f32 %v2536_v50, %v2452_v48 }
 0x111   :  { %v2593_v36 = vmul.f32 %v2540_v47, %v2451_v49  ;;  %v2594_v62 = vmul.f32 %v2544_v20, %v2452_v48  ;;  %v2595_v42 = vmul.f32 %v2548_v40, %v2451_v49  ;;  %v2596_v35 = vmul.f32 %v2552_v30, %v2452_v48 }
 0x112   :  { %v2597_v38 = vmul.f32 %v2556_v60, %v2451_v49  ;;  %v2598_v27 = vmul.f32 %v2560_v41, %v2452_v48  ;;  %v2599_v54 = vmul.f32 %v2564_v3, %v2451_v49  ;;  %v2600_v29 = vmul.f32 %v2568_v32, %v2452_v48  ;;  %v2622_v48 = vld [vmem:[#allocation5 + $0xf8] sm:$0xff] }
 0x113   :  { %v2601_v56 = vadd.f32 %v2585_v28, %v6935_v15  ;;  %v2602_v46 = vadd.f32 %v2586_v37, %v6937_v21  ;;  %v2603_v14 = vadd.f32 %v2587_v44, %v6939_v39  ;;  %v2604_v8 = vadd.f32 %v2588_v16, %v6941_v12 }
 0x114   :  { %v2605_v10 = vadd.f32 %v2589_v2, %v6943_v53  ;;  %v2606_v11 = vadd.f32 %v2590_v34, %v6945_v22  ;;  %v2663_v25 = vrot.slane %v2641_v59, %v6118_v5  ;;  %v2670_v13 = vrot.slane %v2642_v51, %v6118_v5 }
 0x115   :  { %v2607_v24 = vadd.f32 %v2591_v33, %v6947_v6  ;;  %v2608_v1 = vadd.f32 %v2592_v26, %v6955_v55  ;;  %v2609_v15 = vadd.f32 %v2593_v36, %v6957_v57  ;;  %v2671_v21 = vcombine.high %v6975_v52, %v6975_v52  ;;  %v5877_v33 = vld [vmem:[#allocation2 + $0x100] ss:$8 sps:$4 sm:$0xff]   ;;  %v5879_v26 = vld [vmem:[#allocation2 + $0x104] ss:$8 sps:$4 sm:$0xff]  }
 0x116   :  { %v2610_v39 = vadd.f32 %v2594_v62, %v6959_v9  ;;  %v2611_v12 = vadd.f32 %v2595_v42, %v6963_v31  ;;  %v7013_v53 = vadd.f32 %v2596_v35, %v6965_v61  ;;  %v2673_v22 = vcombine.high %v2663_v25, %v2663_v25  ;;  %v2621_v61 = vld [vmem:[#allocation5 + $0xf0] sm:$0xff] }
 0x117   :  { %v7015_v59 = vadd.f32 %v2597_v38, %v2443_v58  ;;  %v7017_v51 = vadd.f32 %v2598_v27, %v2444_v23  ;;  %v7019_v6 = vadd.f32 %v2599_v54, %v2445_v7  ;;  %v2672_v55 = vcombine.high %v6979_v4, %v6979_v4  ;;  %v5880_v38 = vld [vmem:[#allocation2 + $0x110] ss:$8 sps:$4 sm:$0xff]  }
 0x118   :  { %v7023_v57 = vadd.f32 %v2600_v29, %v2446_v17  ;;  %v2674_v49 = vcombine.high %v2670_v13, %v2670_v13  ;;  %v2678_v9 = vrot.slane %v6975_v52, %v6126_v18  ;;  %v2682_v31 = vrot.slane %v6975_v52, %v6128_v19 }
 0x119   :  { %v2686_v58 = vrot.slane %v2663_v25, %v6126_v18  ;;  %v2690_v23 = vrot.slane %v2663_v25, %v6128_v19  ;;  %v2694_v7 = vrot.slane %v2671_v21, %v6126_v18  ;;  %v2698_v45 = vrot.slane %v2671_v21, %v6128_v19 }
 0x11a   :  { %v2702_v17 = vrot.slane %v2673_v22, %v6126_v18  ;;  %v2706_v43 = vrot.slane %v2673_v22, %v6128_v19  ;;  %v2710_v63 = vrot.slane %v6979_v4, %v6126_v18  ;;  %v2714_v52 = vrot.slane %v6979_v4, %v6128_v19 }
 0x11b   :  { %v2718_v50 = vrot.slane %v2670_v13, %v6126_v18  ;;  %v2722_v47 = vrot.slane %v2670_v13, %v6128_v19  ;;  %v2726_v20 = vrot.slane %v2672_v55, %v6126_v18  ;;  %v2730_v40 = vrot.slane %v2672_v55, %v6128_v19  ;;  %v5882_v13 = vld [vmem:[#allocation2 + $0x114] ss:$8 sps:$4 sm:$0xff]  }
 0x11c   :  { %v2734_v30 = vrot.slane %v2674_v49, %v6126_v18  ;;  %v2738_v60 = vrot.slane %v2674_v49, %v6128_v19  ;;  %v2755_v41 = vmul.f32 %v2678_v9, %v2621_v61  ;;  %v2756_v3 = vmul.f32 %v2682_v31, %v2622_v48 }
 0x11d   :  { %v2757_v32 = vmul.f32 %v2686_v58, %v2621_v61  ;;  %v2758_v28 = vmul.f32 %v2690_v23, %v2622_v48  ;;  %v2759_v37 = vmul.f32 %v2694_v7, %v2621_v61  ;;  %v2760_v44 = vmul.f32 %v2698_v45, %v2622_v48  ;;  %v5886_v58 = vld [vmem:[#allocation2 + $0x130] ss:$8 sps:$4 sm:$0xff]   ;;  %v5888_v45 = vld [vmem:[#allocation2 + $0x134] ss:$8 sps:$4 sm:$0xff]  }
 0x11e   :  { %v2761_v16 = vmul.f32 %v2702_v17, %v2621_v61  ;;  %v2762_v4 = vmul.f32 %v2706_v43, %v2622_v48  ;;  %v2763_v2 = vmul.f32 %v2710_v63, %v2621_v61  ;;  %v2764_v34 = vmul.f32 %v2714_v52, %v2622_v48 }
 0x11f   :  { %v2765_v36 = vmul.f32 %v2718_v50, %v2621_v61  ;;  %v2766_v62 = vmul.f32 %v2722_v47, %v2622_v48  ;;  %v2767_v42 = vmul.f32 %v2726_v20, %v2621_v61  ;;  %v2768_v35 = vmul.f32 %v2730_v40, %v2622_v48 }
 0x120   :  { %v2769_v27 = vmul.f32 %v2734_v30, %v2621_v61  ;;  %v2770_v54 = vmul.f32 %v2738_v60, %v2622_v48  ;;  %v7045_v29 = vadd.f32 %v2755_v41, %v2601_v56  ;;  %v7047_v25 = vadd.f32 %v2756_v3, %v2602_v46 }
 0x121   :  { %v7049_v21 = vadd.f32 %v2757_v32, %v2603_v14  ;;  %v7051_v22 = vadd.f32 %v2758_v28, %v2604_v8  ;;  %v7053_v55 = vadd.f32 %v2759_v37, %v2605_v10  ;;  %v7055_v49 = vadd.f32 %v2760_v44, %v2606_v11  ;;  %v5883_v10 = vld [vmem:[#allocation2 + $0x120] ss:$8 sps:$4 sm:$0xff]   ;;  %v5885_v11 = vld [vmem:[#allocation2 + $0x124] ss:$8 sps:$4 sm:$0xff]  }
 0x122   :  { %v7057_v9 = vadd.f32 %v2761_v16, %v2607_v24  ;;  %v7059_v31 = vadd.f32 %v2762_v4, %v2608_v1  ;;  %v2803_v61 = vrot.slane %v5877_v33, %v6118_v5  ;;  %v2810_v56 = vrot.slane %v5879_v26, %v6118_v5  ;;  %v2791_v16 = vld [vmem:[#allocation5 + $0x100] sm:$0xff]  ;;  %v2792_v4 = vld [vmem:[#allocation5 + $0x108] sm:$0xff] }
 0x123   :  { %v7063_v48 = vadd.f32 %v2763_v2, %v2609_v15  ;;  %v7065_v46 = vadd.f32 %v2764_v34, %v2610_v39  ;;  %v7067_v14 = vadd.f32 %v2765_v36, %v2611_v12  ;;  %v7070_v8 = vrot.slane %v5880_v38, %v6118_v5 }
 0x124   :  { %v2811_v24 = vcombine.high %v2803_v61, %v2803_v61  ;;  %v2812_v23 = vcombine.high %v2810_v56, %v2810_v56  ;;  %v2819_v1 = vrot.slane %v2803_v61, %v6118_v5  ;;  %v7074_v7 = vrot.slane %v5882_v13, %v6118_v5 }
 0x125   :  { %v7077_v15 = vadd.f32 %v2766_v62, %v7013_v53  ;;  %v7080_v39 = vadd.f32 %v2767_v42, %v7015_v59  ;;  %v7083_v12 = vadd.f32 %v2768_v35, %v7017_v51  ;;  %v2826_v17 = vrot.slane %v2810_v56, %v6118_v5 }
 0x126   :  { %v7087_v43 = vadd.f32 %v2769_v27, %v7019_v6  ;;  %v7090_v63 = vadd.f32 %v2770_v54, %v7023_v57  ;;  %v2833_v52 = vrot.slane %v2811_v24, %v6118_v5  ;;  %v2840_v50 = vrot.slane %v2812_v23, %v6118_v5 }
 0x127   :  { %v2841_v53 = vcombine.high %v2819_v1, %v2819_v1  ;;  %v7095_v47 = vrot.slane %v5883_v10, %v6118_v5  ;;  %v7098_v59 = vrot.slane %v5885_v11, %v6118_v5  ;;  %v7101_v51 = vrot.slane %v5886_v58, %v6118_v5 }
 0x128   :  { %v2843_v20 = vcombine.high %v2833_v52, %v2833_v52  ;;  %v2981_v6 = vcombine.high %v7070_v8, %v7070_v8  ;;  %v2982_v57 = vcombine.high %v7074_v7, %v7074_v7  ;;  %v7108_v40 = vrot.slane %v5888_v45, %v6118_v5 }
 0x129   :  { %v2842_v30 = vcombine.high %v2826_v17, %v2826_v17  ;;  %v2844_v60 = vcombine.high %v2840_v50, %v2840_v50  ;;  %v7112_v41 = vrot.slane %v7070_v8, %v6118_v5  ;;  %v7116_v3 = vrot.slane %v7074_v7, %v6118_v5 }
 0x12a   :  { %v2848_v32 = vrot.slane %v2819_v1, %v6126_v18  ;;  %v2852_v28 = vrot.slane %v2819_v1, %v6128_v19  ;;  %v2856_v37 = vrot.slane %v2833_v52, %v6126_v18  ;;  %v2860_v44 = vrot.slane %v2833_v52, %v6128_v19 }
 0x12b   :  { %v2864_v2 = vrot.slane %v2841_v53, %v6126_v18  ;;  %v2868_v34 = vrot.slane %v2841_v53, %v6128_v19  ;;  %v2872_v33 = vrot.slane %v2843_v20, %v6126_v18  ;;  %v2876_v26 = vrot.slane %v2843_v20, %v6128_v19 }
 0x12c   :  { %v2880_v36 = vrot.slane %v2826_v17, %v6126_v18  ;;  %v2884_v62 = vrot.slane %v2826_v17, %v6128_v19  ;;  %v2888_v42 = vrot.slane %v2840_v50, %v6126_v18  ;;  %v2892_v35 = vrot.slane %v2840_v50, %v6128_v19 }
 0x12d   :  { %v2896_v38 = vrot.slane %v2842_v30, %v6126_v18  ;;  %v2900_v27 = vrot.slane %v2842_v30, %v6128_v19  ;;  %v2904_v54 = vrot.slane %v2844_v60, %v6126_v18  ;;  %v2908_v13 = vrot.slane %v2844_v60, %v6128_v19 }
 0x12e   :  { %v2925_v61 = vmul.f32 %v2848_v32, %v2791_v16  ;;  %v2926_v56 = vmul.f32 %v2852_v28, %v2792_v4  ;;  %v2927_v8 = vmul.f32 %v2856_v37, %v2791_v16  ;;  %v2928_v10 = vmul.f32 %v2860_v44, %v2792_v4 }
 0x12f   :  { %v2929_v11 = vmul.f32 %v2864_v2, %v2791_v16  ;;  %v2930_v58 = vmul.f32 %v2868_v34, %v2792_v4  ;;  %v2931_v24 = vmul.f32 %v2872_v33, %v2791_v16  ;;  %v2932_v23 = vmul.f32 %v2876_v26, %v2792_v4  ;;  %v2962_v26 = vld [vmem:[#allocation5 + $0x118] sm:$0xff] }
 0x130   :  { %v2933_v1 = vmul.f32 %v2880_v36, %v2791_v16  ;;  %v2934_v7 = vmul.f32 %v2884_v62, %v2792_v4  ;;  %v2935_v45 = vmul.f32 %v2888_v42, %v2791_v16  ;;  %v2936_v17 = vmul.f32 %v2892_v35, %v2792_v4 }
 0x131   :  { %v2937_v52 = vmul.f32 %v2896_v38, %v2791_v16  ;;  %v2938_v50 = vmul.f32 %v2900_v27, %v2792_v4  ;;  %v2939_v53 = vmul.f32 %v2904_v54, %v2791_v16  ;;  %v2940_v20 = vmul.f32 %v2908_v13, %v2792_v4 }
 0x132   :  { %v2941_v30 = vadd.f32 %v2925_v61, %v7045_v29  ;;  %v2942_v60 = vadd.f32 %v2926_v56, %v7047_v25  ;;  %v2943_v32 = vadd.f32 %v2927_v8, %v7049_v21  ;;  %v2944_v28 = vadd.f32 %v2928_v10, %v7051_v22 }
 0x133   :  { %v2945_v37 = vadd.f32 %v2929_v11, %v7053_v55  ;;  %v2946_v44 = vadd.f32 %v2930_v58, %v7055_v49  ;;  %v3003_v2 = vrot.slane %v2981_v6, %v6118_v5  ;;  %v3010_v34 = vrot.slane %v2982_v57, %v6118_v5 }
 0x134   :  { %v2947_v33 = vadd.f32 %v2931_v24, %v7057_v9  ;;  %v2948_v16 = vadd.f32 %v2932_v23, %v7059_v31  ;;  %v2949_v29 = vadd.f32 %v2933_v1, %v7063_v48  ;;  %v3011_v25 = vcombine.high %v7112_v41, %v7112_v41 }
 0x135   :  { %v2950_v21 = vadd.f32 %v2934_v7, %v7065_v46  ;;  %v2951_v22 = vadd.f32 %v2935_v45, %v7067_v14  ;;  %v2952_v55 = vadd.f32 %v2936_v17, %v7077_v15  ;;  %v3013_v49 = vcombine.high %v3003_v2, %v3003_v2  ;;  %v2961_v15 = vld [vmem:[#allocation5 + $0x110] sm:$0xff] }
 0x136   :  { %v2953_v6 = vadd.f32 %v2937_v52, %v7080_v39  ;;  %v2954_v57 = vadd.f32 %v2938_v50, %v7083_v12  ;;  %v2955_v9 = vadd.f32 %v2939_v53, %v7087_v43  ;;  %v3012_v31 = vcombine.high %v7116_v3, %v7116_v3 }
 0x137   :  { %v2956_v48 = vadd.f32 %v2940_v20, %v7090_v63  ;;  %v3014_v4 = vcombine.high %v3010_v34, %v3010_v34  ;;  %v3018_v46 = vrot.slane %v7112_v41, %v6126_v18  ;;  %v3022_v14 = vrot.slane %v7112_v41, %v6128_v19 }
 0x138   :  { %v3026_v39 = vrot.slane %v3003_v2, %v6126_v18  ;;  %v3030_v12 = vrot.slane %v3003_v2, %v6128_v19  ;;  %v3034_v43 = vrot.slane %v3011_v25, %v6126_v18  ;;  %v3038_v36 = vrot.slane %v3011_v25, %v6128_v19 }
 0x139   :  { %v3042_v62 = vrot.slane %v3013_v49, %v6126_v18  ;;  %v3046_v63 = vrot.slane %v3013_v49, %v6128_v19  ;;  %v3050_v42 = vrot.slane %v7116_v3, %v6126_v18  ;;  %v3054_v41 = vrot.slane %v7116_v3, %v6128_v19 }
 0x13a   :  { %v3058_v35 = vrot.slane %v3010_v34, %v6126_v18  ;;  %v3062_v38 = vrot.slane %v3010_v34, %v6128_v19  ;;  %v3066_v27 = vrot.slane %v3012_v31, %v6126_v18  ;;  %v3070_v54 = vrot.slane %v3012_v31, %v6128_v19 }
 0x13b   :  { %v3074_v13 = vrot.slane %v3014_v4, %v6126_v18  ;;  %v3078_v61 = vrot.slane %v3014_v4, %v6128_v19  ;;  %v3095_v56 = vmul.f32 %v3018_v46, %v2961_v15  ;;  %v3096_v8 = vmul.f32 %v3022_v14, %v2962_v26 }
 0x13c   :  { %v3097_v10 = vmul.f32 %v3026_v39, %v2961_v15  ;;  %v3098_v11 = vmul.f32 %v3030_v12, %v2962_v26  ;;  %v3099_v58 = vmul.f32 %v3034_v43, %v2961_v15  ;;  %v3100_v24 = vmul.f32 %v3038_v36, %v2962_v26 }
 0x13d   :  { %v3101_v23 = vmul.f32 %v3042_v62, %v2961_v15  ;;  %v3102_v3 = vmul.f32 %v3046_v63, %v2962_v26  ;;  %v3103_v1 = vmul.f32 %v3050_v42, %v2961_v15  ;;  %v3104_v7 = vmul.f32 %v3054_v41, %v2962_v26  ;;  %v3131_v42 = vld [vmem:[#allocation5 + $0x120] sm:$0xff]  ;;  %v3132_v41 = vld [vmem:[#allocation5 + $0x128] sm:$0xff] }
 0x13e   :  { %v3105_v45 = vmul.f32 %v3058_v35, %v2961_v15  ;;  %v3106_v17 = vmul.f32 %v3062_v38, %v2962_v26  ;;  %v3107_v52 = vmul.f32 %v3066_v27, %v2961_v15  ;;  %v3108_v50 = vmul.f32 %v3070_v54, %v2962_v26 }
 0x13f   :  { %v3109_v53 = vmul.f32 %v3074_v13, %v2961_v15  ;;  %v3110_v20 = vmul.f32 %v3078_v61, %v2962_v26  ;;  %v7176_v2 = vadd.f32 %v3095_v56, %v2941_v30  ;;  %v7178_v34 = vadd.f32 %v3096_v8, %v2942_v60 }
 0x140   :  { %v7180_v25 = vadd.f32 %v3097_v10, %v2943_v32  ;;  %v7182_v49 = vadd.f32 %v3098_v11, %v2944_v28  ;;  %v7184_v31 = vadd.f32 %v3099_v58, %v2945_v37  ;;  %v7186_v4 = vadd.f32 %v3100_v24, %v2946_v44 }
 0x141   :  { %v7188_v46 = vadd.f32 %v3101_v23, %v2947_v33  ;;  %v3151_v14 = vcombine.high %v7095_v47, %v7095_v47  ;;  %v3152_v15 = vcombine.high %v7098_v59, %v7098_v59  ;;  %v3159_v30 = vrot.slane %v7095_v47, %v6118_v5 }
 0x142   :  { %v7196_v60 = vadd.f32 %v3102_v3, %v2948_v16  ;;  %v7198_v32 = vadd.f32 %v3103_v1, %v2949_v29  ;;  %v7200_v28 = vadd.f32 %v3104_v7, %v2950_v21  ;;  %v3166_v37 = vrot.slane %v7098_v59, %v6118_v5 }
 0x143   :  { %v7204_v44 = vadd.f32 %v3105_v45, %v2951_v22  ;;  %v7206_v33 = vadd.f32 %v3106_v17, %v2952_v55  ;;  %v3173_v26 = vrot.slane %v3151_v14, %v6118_v5  ;;  %v3180_v39 = vrot.slane %v3152_v15, %v6118_v5 }
 0x144   :  { %v3123_v12 = vadd.f32 %v3107_v52, %v2953_v6  ;;  %v3124_v43 = vadd.f32 %v3108_v50, %v2954_v57  ;;  %v3125_v47 = vadd.f32 %v3109_v53, %v2955_v9  ;;  %v3181_v16 = vcombine.high %v3159_v30, %v3159_v30 }
 0x145   :  { %v3126_v36 = vadd.f32 %v3110_v20, %v2956_v48  ;;  %v3183_v29 = vcombine.high %v3173_v26, %v3173_v26  ;;  %v3321_v21 = vcombine.high %v7101_v51, %v7101_v51  ;;  %v3322_v59 = vcombine.high %v7108_v40, %v7108_v40 }
 0x146   :  { %v3182_v22 = vcombine.high %v3166_v37, %v3166_v37  ;;  %v3184_v62 = vcombine.high %v3180_v39, %v3180_v39  ;;  %v7216_v55 = vrot.slane %v7101_v51, %v6118_v5  ;;  %v7220_v6 = vrot.slane %v7108_v40, %v6118_v5 }
 0x147   :  { %v3188_v57 = vrot.slane %v3159_v30, %v6126_v18  ;;  %v3192_v9 = vrot.slane %v3159_v30, %v6128_v19  ;;  %v3196_v48 = vrot.slane %v3173_v26, %v6126_v18  ;;  %v3200_v63 = vrot.slane %v3173_v26, %v6128_v19 }
 0x148   :  { %v3204_v35 = vrot.slane %v3181_v16, %v6126_v18  ;;  %v3208_v38 = vrot.slane %v3181_v16, %v6128_v19  ;;  %v3212_v51 = vrot.slane %v3183_v29, %v6126_v18  ;;  %v3216_v27 = vrot.slane %v3183_v29, %v6128_v19 }
 0x149   :  { %v3220_v40 = vrot.slane %v3166_v37, %v6126_v18  ;;  %v3224_v54 = vrot.slane %v3166_v37, %v6128_v19  ;;  %v3228_v13 = vrot.slane %v3180_v39, %v6126_v18  ;;  %v3232_v61 = vrot.slane %v3180_v39, %v6128_v19 }
 0x14a   :  { %v3236_v56 = vrot.slane %v3182_v22, %v6126_v18  ;;  %v3240_v8 = vrot.slane %v3182_v22, %v6128_v19  ;;  %v3244_v10 = vrot.slane %v3184_v62, %v6126_v18  ;;  %v3248_v11 = vrot.slane %v3184_v62, %v6128_v19 }
 0x14b   :  { %v3265_v58 = vmul.f32 %v3188_v57, %v3131_v42  ;;  %v3266_v24 = vmul.f32 %v3192_v9, %v3132_v41  ;;  %v3267_v23 = vmul.f32 %v3196_v48, %v3131_v42  ;;  %v3268_v3 = vmul.f32 %v3200_v63, %v3132_v41 }
 0x14c   :  { %v3269_v1 = vmul.f32 %v3204_v35, %v3131_v42  ;;  %v3270_v7 = vmul.f32 %v3208_v38, %v3132_v41  ;;  %v3271_v45 = vmul.f32 %v3212_v51, %v3131_v42  ;;  %v3272_v17 = vmul.f32 %v3216_v27, %v3132_v41 }
 0x14d   :  { %v3273_v52 = vmul.f32 %v3220_v40, %v3131_v42  ;;  %v3274_v50 = vmul.f32 %v3224_v54, %v3132_v41  ;;  %v3275_v53 = vmul.f32 %v3228_v13, %v3131_v42  ;;  %v3276_v20 = vmul.f32 %v3232_v61, %v3132_v41 }
 0x14e   :  { %v3277_v14 = vmul.f32 %v3236_v56, %v3131_v42  ;;  %v3278_v15 = vmul.f32 %v3240_v8, %v3132_v41  ;;  %v3279_v30 = vmul.f32 %v3244_v10, %v3131_v42  ;;  %v3280_v37 = vmul.f32 %v3248_v11, %v3132_v41  ;;  %v3302_v41 = vld [vmem:[#allocation5 + $0x138] sm:$0xff] }
 0x14f   :  { %v3281_v26 = vadd.f32 %v3265_v58, %v7176_v2  ;;  %v3282_v39 = vadd.f32 %v3266_v24, %v7178_v34  ;;  %v3283_v16 = vadd.f32 %v3267_v23, %v7180_v25  ;;  %v3284_v29 = vadd.f32 %v3268_v3, %v7182_v49 }
 0x150   :  { %v3285_v22 = vadd.f32 %v3269_v1, %v7184_v31  ;;  %v3286_v62 = vadd.f32 %v3270_v7, %v7186_v4  ;;  %v3343_v57 = vrot.slane %v3321_v21, %v6118_v5  ;;  %v3350_v9 = vrot.slane %v3322_v59, %v6118_v5 }
 0x151   :  { %v3287_v48 = vadd.f32 %v3271_v45, %v7188_v46  ;;  %v3288_v63 = vadd.f32 %v3272_v17, %v7196_v60  ;;  %v3289_v2 = vadd.f32 %v3273_v52, %v7198_v32  ;;  %v3351_v34 = vcombine.high %v7216_v55, %v7216_v55  ;;  %v5889_v45 = vld [vmem:[#allocation2 + $0x140] ss:$8 sps:$4 sm:$0xff]   ;;  %v5891_v17 = vld [vmem:[#allocation2 + $0x144] ss:$8 sps:$4 sm:$0xff]  }
 0x152   :  { %v3290_v25 = vadd.f32 %v3274_v50, %v7200_v28  ;;  %v3291_v49 = vadd.f32 %v3275_v53, %v7204_v44  ;;  %v7254_v31 = vadd.f32 %v3276_v20, %v7206_v33  ;;  %v3353_v4 = vcombine.high %v3343_v57, %v3343_v57  ;;  %v3301_v33 = vld [vmem:[#allocation5 + $0x130] sm:$0xff] }
 0x153   :  { %v7256_v21 = vadd.f32 %v3277_v14, %v3123_v12  ;;  %v7258_v59 = vadd.f32 %v3278_v15, %v3124_v43  ;;  %v7260_v46 = vadd.f32 %v3279_v30, %v3125_v47  ;;  %v3352_v60 = vcombine.high %v7220_v6, %v7220_v6  ;;  %v5892_v14 = vld [vmem:[#allocation2 + $0x150] ss:$8 sps:$4 sm:$0xff]  }
 0x154   :  { %v7264_v32 = vadd.f32 %v3280_v37, %v3126_v36  ;;  %v3354_v42 = vcombine.high %v3350_v9, %v3350_v9  ;;  %v3358_v28 = vrot.slane %v7216_v55, %v6126_v18  ;;  %v3362_v44 = vrot.slane %v7216_v55, %v6128_v19 }
 0x155   :  { %v3366_v12 = vrot.slane %v3343_v57, %v6126_v18  ;;  %v3370_v43 = vrot.slane %v3343_v57, %v6128_v19  ;;  %v3374_v47 = vrot.slane %v3351_v34, %v6126_v18  ;;  %v3378_v35 = vrot.slane %v3351_v34, %v6128_v19 }
 0x156   :  { %v3382_v36 = vrot.slane %v3353_v4, %v6126_v18  ;;  %v3386_v38 = vrot.slane %v3353_v4, %v6128_v19  ;;  %v3390_v51 = vrot.slane %v7220_v6, %v6126_v18  ;;  %v3394_v55 = vrot.slane %v7220_v6, %v6128_v19 }
 0x157   :  { %v3398_v27 = vrot.slane %v3350_v9, %v6126_v18  ;;  %v3402_v40 = vrot.slane %v3350_v9, %v6128_v19  ;;  %v3406_v54 = vrot.slane %v3352_v60, %v6126_v18  ;;  %v3410_v13 = vrot.slane %v3352_v60, %v6128_v19  ;;  %v5894_v9 = vld [vmem:[#allocation2 + $0x154] ss:$8 sps:$4 sm:$0xff]  }
 0x158   :  { %v3414_v61 = vrot.slane %v3354_v42, %v6126_v18  ;;  %v3418_v56 = vrot.slane %v3354_v42, %v6128_v19  ;;  %v3435_v8 = vmul.f32 %v3358_v28, %v3301_v33  ;;  %v3436_v10 = vmul.f32 %v3362_v44, %v3302_v41 }
 0x159   :  { %v3437_v11 = vmul.f32 %v3366_v12, %v3301_v33  ;;  %v3438_v58 = vmul.f32 %v3370_v43, %v3302_v41  ;;  %v3439_v24 = vmul.f32 %v3374_v47, %v3301_v33  ;;  %v3440_v23 = vmul.f32 %v3378_v35, %v3302_v41  ;;  %v5898_v12 = vld [vmem:[#allocation2 + $0x170] ss:$8 sps:$4 sm:$0xff]   ;;  %v5900_v35 = vld [vmem:[#allocation2 + $0x174] ss:$8 sps:$4 sm:$0xff]  }
 0x15a   :  { %v3441_v3 = vmul.f32 %v3382_v36, %v3301_v33  ;;  %v3442_v6 = vmul.f32 %v3386_v38, %v3302_v41  ;;  %v3443_v1 = vmul.f32 %v3390_v51, %v3301_v33  ;;  %v3444_v7 = vmul.f32 %v3394_v55, %v3302_v41 }
 0x15b   :  { %v3445_v52 = vmul.f32 %v3398_v27, %v3301_v33  ;;  %v3446_v50 = vmul.f32 %v3402_v40, %v3302_v41  ;;  %v3447_v53 = vmul.f32 %v3406_v54, %v3301_v33  ;;  %v3448_v20 = vmul.f32 %v3410_v13, %v3302_v41 }
 0x15c   :  { %v3449_v15 = vmul.f32 %v3414_v61, %v3301_v33  ;;  %v3450_v30 = vmul.f32 %v3418_v56, %v3302_v41  ;;  %v7286_v37 = vadd.f32 %v3435_v8, %v3281_v26  ;;  %v7288_v57 = vadd.f32 %v3436_v10, %v3282_v39 }
 0x15d   :  { %v7290_v34 = vadd.f32 %v3437_v11, %v3283_v16  ;;  %v7292_v4 = vadd.f32 %v3438_v58, %v3284_v29  ;;  %v7294_v60 = vadd.f32 %v3439_v24, %v3285_v22  ;;  %v7296_v42 = vadd.f32 %v3440_v23, %v3286_v62  ;;  %v5895_v22 = vld [vmem:[#allocation2 + $0x160] ss:$8 sps:$4 sm:$0xff]   ;;  %v5897_v62 = vld [vmem:[#allocation2 + $0x164] ss:$8 sps:$4 sm:$0xff]  }
 0x15e   :  { %v7298_v28 = vadd.f32 %v3441_v3, %v3287_v48  ;;  %v7300_v44 = vadd.f32 %v3442_v6, %v3288_v63  ;;  %v3483_v33 = vrot.slane %v5889_v45, %v6118_v5  ;;  %v3490_v26 = vrot.slane %v5891_v17, %v6118_v5  ;;  %v3471_v3 = vld [vmem:[#allocation5 + $0x140] sm:$0xff]  ;;  %v3472_v6 = vld [vmem:[#allocation5 + $0x148] sm:$0xff] }
 0x15f   :  { %v7304_v41 = vadd.f32 %v3443_v1, %v3289_v2  ;;  %v7306_v39 = vadd.f32 %v3444_v7, %v3290_v25  ;;  %v7308_v16 = vadd.f32 %v3445_v52, %v3291_v49  ;;  %v7311_v29 = vrot.slane %v5892_v14, %v6118_v5 }
 0x160   :  { %v3491_v48 = vcombine.high %v3483_v33, %v3483_v33  ;;  %v3492_v43 = vcombine.high %v3490_v26, %v3490_v26  ;;  %v3499_v63 = vrot.slane %v3483_v33, %v6118_v5  ;;  %v7315_v47 = vrot.slane %v5894_v9, %v6118_v5 }
 0x161   :  { %v7318_v2 = vadd.f32 %v3446_v50, %v7254_v31  ;;  %v7321_v25 = vadd.f32 %v3447_v53, %v7256_v21  ;;  %v7324_v49 = vadd.f32 %v3448_v20, %v7258_v59  ;;  %v3506_v36 = vrot.slane %v3490_v26, %v6118_v5 }
 0x162   :  { %v7328_v38 = vadd.f32 %v3449_v15, %v7260_v46  ;;  %v7331_v51 = vadd.f32 %v3450_v30, %v7264_v32  ;;  %v3513_v55 = vrot.slane %v3491_v48, %v6118_v5  ;;  %v3520_v27 = vrot.slane %v3492_v43, %v6118_v5 }
 0x163   :  { %v3521_v31 = vcombine.high %v3499_v63, %v3499_v63  ;;  %v7336_v40 = vrot.slane %v5895_v22, %v6118_v5  ;;  %v7339_v21 = vrot.slane %v5897_v62, %v6118_v5  ;;  %v7342_v59 = vrot.slane %v5898_v12, %v6118_v5 }
 0x164   :  { %v3523_v54 = vcombine.high %v3513_v55, %v3513_v55  ;;  %v3661_v46 = vcombine.high %v7311_v29, %v7311_v29  ;;  %v3662_v32 = vcombine.high %v7315_v47, %v7315_v47  ;;  %v7349_v13 = vrot.slane %v5900_v35, %v6118_v5 }
 0x165   :  { %v3522_v61 = vcombine.high %v3506_v36, %v3506_v36  ;;  %v3524_v56 = vcombine.high %v3520_v27, %v3520_v27  ;;  %v7353_v8 = vrot.slane %v7311_v29, %v6118_v5  ;;  %v7357_v10 = vrot.slane %v7315_v47, %v6118_v5 }
 0x166   :  { %v3528_v11 = vrot.slane %v3499_v63, %v6126_v18  ;;  %v3532_v58 = vrot.slane %v3499_v63, %v6128_v19  ;;  %v3536_v24 = vrot.slane %v3513_v55, %v6126_v18  ;;  %v3540_v23 = vrot.slane %v3513_v55, %v6128_v19 }
 0x167   :  { %v3544_v1 = vrot.slane %v3521_v31, %v6126_v18  ;;  %v3548_v7 = vrot.slane %v3521_v31, %v6128_v19  ;;  %v3552_v45 = vrot.slane %v3523_v54, %v6126_v18  ;;  %v3556_v17 = vrot.slane %v3523_v54, %v6128_v19 }
 0x168   :  { %v3560_v52 = vrot.slane %v3506_v36, %v6126_v18  ;;  %v3564_v50 = vrot.slane %v3506_v36, %v6128_v19  ;;  %v3568_v53 = vrot.slane %v3520_v27, %v6126_v18  ;;  %v3572_v20 = vrot.slane %v3520_v27, %v6128_v19 }
 0x169   :  { %v3576_v14 = vrot.slane %v3522_v61, %v6126_v18  ;;  %v3580_v15 = vrot.slane %v3522_v61, %v6128_v19  ;;  %v3584_v30 = vrot.slane %v3524_v56, %v6126_v18  ;;  %v3588_v9 = vrot.slane %v3524_v56, %v6128_v19 }
 0x16a   :  { %v3605_v33 = vmul.f32 %v3528_v11, %v3471_v3  ;;  %v3606_v26 = vmul.f32 %v3532_v58, %v3472_v6  ;;  %v3607_v29 = vmul.f32 %v3536_v24, %v3471_v3  ;;  %v3608_v22 = vmul.f32 %v3540_v23, %v3472_v6 }
 0x16b   :  { %v3609_v62 = vmul.f32 %v3544_v1, %v3471_v3  ;;  %v3610_v12 = vmul.f32 %v3548_v7, %v3472_v6  ;;  %v3611_v48 = vmul.f32 %v3552_v45, %v3471_v3  ;;  %v3612_v43 = vmul.f32 %v3556_v17, %v3472_v6  ;;  %v3642_v17 = vld [vmem:[#allocation5 + $0x158] sm:$0xff] }
 0x16c   :  { %v3613_v63 = vmul.f32 %v3560_v52, %v3471_v3  ;;  %v3614_v47 = vmul.f32 %v3564_v50, %v3472_v6  ;;  %v3615_v35 = vmul.f32 %v3568_v53, %v3471_v3  ;;  %v3616_v36 = vmul.f32 %v3572_v20, %v3472_v6 }
 0x16d   :  { %v3617_v55 = vmul.f32 %v3576_v14, %v3471_v3  ;;  %v3618_v27 = vmul.f32 %v3580_v15, %v3472_v6  ;;  %v3619_v31 = vmul.f32 %v3584_v30, %v3471_v3  ;;  %v3620_v54 = vmul.f32 %v3588_v9, %v3472_v6 }
 0x16e   :  { %v3621_v61 = vadd.f32 %v3605_v33, %v7286_v37  ;;  %v3622_v56 = vadd.f32 %v3606_v26, %v7288_v57  ;;  %v3623_v11 = vadd.f32 %v3607_v29, %v7290_v34  ;;  %v3624_v58 = vadd.f32 %v3608_v22, %v7292_v4 }
 0x16f   :  { %v3625_v24 = vadd.f32 %v3609_v62, %v7294_v60  ;;  %v3626_v23 = vadd.f32 %v3610_v12, %v7296_v42  ;;  %v3683_v1 = vrot.slane %v3661_v46, %v6118_v5  ;;  %v3690_v7 = vrot.slane %v3662_v32, %v6118_v5 }
 0x170   :  { %v3627_v45 = vadd.f32 %v3611_v48, %v7298_v28  ;;  %v3628_v3 = vadd.f32 %v3612_v43, %v7300_v44  ;;  %v3629_v37 = vadd.f32 %v3613_v63, %v7304_v41  ;;  %v3691_v57 = vcombine.high %v7353_v8, %v7353_v8 }
 0x171   :  { %v3630_v34 = vadd.f32 %v3614_v47, %v7306_v39  ;;  %v3631_v4 = vadd.f32 %v3615_v35, %v7308_v16  ;;  %v3632_v60 = vadd.f32 %v3616_v36, %v7318_v2  ;;  %v3693_v42 = vcombine.high %v3683_v1, %v3683_v1  ;;  %v3641_v2 = vld [vmem:[#allocation5 + $0x150] sm:$0xff] }
 0x172   :  { %v3633_v46 = vadd.f32 %v3617_v55, %v7321_v25  ;;  %v3634_v32 = vadd.f32 %v3618_v27, %v7324_v49  ;;  %v3635_v28 = vadd.f32 %v3619_v31, %v7328_v38  ;;  %v3692_v44 = vcombine.high %v7357_v10, %v7357_v10 }
 0x173   :  { %v3636_v41 = vadd.f32 %v3620_v54, %v7331_v51  ;;  %v3694_v6 = vcombine.high %v3690_v7, %v3690_v7  ;;  %v3698_v39 = vrot.slane %v7353_v8, %v6126_v18  ;;  %v3702_v16 = vrot.slane %v7353_v8, %v6128_v19 }
 0x174   :  { %v3706_v25 = vrot.slane %v3683_v1, %v6126_v18  ;;  %v3710_v49 = vrot.slane %v3683_v1, %v6128_v19  ;;  %v3714_v38 = vrot.slane %v3691_v57, %v6126_v18  ;;  %v3718_v52 = vrot.slane %v3691_v57, %v6128_v19 }
 0x175   :  { %v3722_v50 = vrot.slane %v3693_v42, %v6126_v18  ;;  %v3726_v51 = vrot.slane %v3693_v42, %v6128_v19  ;;  %v3730_v53 = vrot.slane %v7357_v10, %v6126_v18  ;;  %v3734_v8 = vrot.slane %v7357_v10, %v6128_v19 }
 0x176   :  { %v3738_v20 = vrot.slane %v3690_v7, %v6126_v18  ;;  %v3742_v14 = vrot.slane %v3690_v7, %v6128_v19  ;;  %v3746_v15 = vrot.slane %v3692_v44, %v6126_v18  ;;  %v3750_v30 = vrot.slane %v3692_v44, %v6128_v19 }
 0x177   :  { %v3754_v9 = vrot.slane %v3694_v6, %v6126_v18  ;;  %v3758_v33 = vrot.slane %v3694_v6, %v6128_v19  ;;  %v3775_v26 = vmul.f32 %v3698_v39, %v3641_v2  ;;  %v3776_v29 = vmul.f32 %v3702_v16, %v3642_v17 }
 0x178   :  { %v3777_v22 = vmul.f32 %v3706_v25, %v3641_v2  ;;  %v3778_v62 = vmul.f32 %v3710_v49, %v3642_v17  ;;  %v3779_v12 = vmul.f32 %v3714_v38, %v3641_v2  ;;  %v3780_v48 = vmul.f32 %v3718_v52, %v3642_v17 }
 0x179   :  { %v3781_v43 = vmul.f32 %v3722_v50, %v3641_v2  ;;  %v3782_v10 = vmul.f32 %v3726_v51, %v3642_v17  ;;  %v3783_v63 = vmul.f32 %v3730_v53, %v3641_v2  ;;  %v3784_v47 = vmul.f32 %v3734_v8, %v3642_v17  ;;  %v3811_v53 = vld [vmem:[#allocation5 + $0x160] sm:$0xff]  ;;  %v3812_v8 = vld [vmem:[#allocation5 + $0x168] sm:$0xff] }
 0x17a   :  { %v3785_v35 = vmul.f32 %v3738_v20, %v3641_v2  ;;  %v3786_v36 = vmul.f32 %v3742_v14, %v3642_v17  ;;  %v3787_v55 = vmul.f32 %v3746_v15, %v3641_v2  ;;  %v3788_v27 = vmul.f32 %v3750_v30, %v3642_v17 }
 0x17b   :  { %v3789_v31 = vmul.f32 %v3754_v9, %v3641_v2  ;;  %v3790_v54 = vmul.f32 %v3758_v33, %v3642_v17  ;;  %v7417_v1 = vadd.f32 %v3775_v26, %v3621_v61  ;;  %v7419_v7 = vadd.f32 %v3776_v29, %v3622_v56 }
 0x17c   :  { %v7421_v57 = vadd.f32 %v3777_v22, %v3623_v11  ;;  %v7423_v42 = vadd.f32 %v3778_v62, %v3624_v58  ;;  %v7425_v44 = vadd.f32 %v3779_v12, %v3625_v24  ;;  %v7427_v6 = vadd.f32 %v3780_v48, %v3626_v23 }
 0x17d   :  { %v7429_v39 = vadd.f32 %v3781_v43, %v3627_v45  ;;  %v3831_v16 = vcombine.high %v7336_v40, %v7336_v40  ;;  %v3832_v2 = vcombine.high %v7339_v21, %v7339_v21  ;;  %v3839_v61 = vrot.slane %v7336_v40, %v6118_v5 }
 0x17e   :  { %v7437_v56 = vadd.f32 %v3782_v10, %v3628_v3  ;;  %v7439_v11 = vadd.f32 %v3783_v63, %v3629_v37  ;;  %v7441_v58 = vadd.f32 %v3784_v47, %v3630_v34  ;;  %v3846_v24 = vrot.slane %v7339_v21, %v6118_v5 }
 0x17f   :  { %v7445_v23 = vadd.f32 %v3785_v35, %v3631_v4  ;;  %v7447_v45 = vadd.f32 %v3786_v36, %v3632_v60  ;;  %v3853_v17 = vrot.slane %v3831_v16, %v6118_v5  ;;  %v3860_v25 = vrot.slane %v3832_v2, %v6118_v5 }
 0x180   :  { %v3803_v49 = vadd.f32 %v3787_v55, %v3633_v46  ;;  %v3804_v38 = vadd.f32 %v3788_v27, %v3634_v32  ;;  %v3805_v40 = vadd.f32 %v3789_v31, %v3635_v28  ;;  %v3861_v3 = vcombine.high %v3839_v61, %v3839_v61 }
 0x181   :  { %v3806_v52 = vadd.f32 %v3790_v54, %v3636_v41  ;;  %v3863_v37 = vcombine.high %v3853_v17, %v3853_v17  ;;  %v4001_v34 = vcombine.high %v7342_v59, %v7342_v59  ;;  %v4002_v21 = vcombine.high %v7349_v13, %v7349_v13 }
 0x182   :  { %v3862_v4 = vcombine.high %v3846_v24, %v3846_v24  ;;  %v3864_v50 = vcombine.high %v3860_v25, %v3860_v25  ;;  %v7457_v60 = vrot.slane %v7342_v59, %v6118_v5  ;;  %v7461_v46 = vrot.slane %v7349_v13, %v6118_v5 }
 0x183   :  { %v3868_v32 = vrot.slane %v3839_v61, %v6126_v18  ;;  %v3872_v28 = vrot.slane %v3839_v61, %v6128_v19  ;;  %v3876_v41 = vrot.slane %v3853_v17, %v6126_v18  ;;  %v3880_v51 = vrot.slane %v3853_v17, %v6128_v19 }
 0x184   :  { %v3884_v20 = vrot.slane %v3861_v3, %v6126_v18  ;;  %v3888_v14 = vrot.slane %v3861_v3, %v6128_v19  ;;  %v3892_v59 = vrot.slane %v3863_v37, %v6126_v18  ;;  %v3896_v15 = vrot.slane %v3863_v37, %v6128_v19 }
 0x185   :  { %v3900_v13 = vrot.slane %v3846_v24, %v6126_v18  ;;  %v3904_v30 = vrot.slane %v3846_v24, %v6128_v19  ;;  %v3908_v9 = vrot.slane %v3860_v25, %v6126_v18  ;;  %v3912_v33 = vrot.slane %v3860_v25, %v6128_v19 }
 0x186   :  { %v3916_v26 = vrot.slane %v3862_v4, %v6126_v18  ;;  %v3920_v29 = vrot.slane %v3862_v4, %v6128_v19  ;;  %v3924_v22 = vrot.slane %v3864_v50, %v6126_v18  ;;  %v3928_v62 = vrot.slane %v3864_v50, %v6128_v19 }
 0x187   :  { %v3945_v12 = vmul.f32 %v3868_v32, %v3811_v53  ;;  %v3946_v48 = vmul.f32 %v3872_v28, %v3812_v8  ;;  %v3947_v43 = vmul.f32 %v3876_v41, %v3811_v53  ;;  %v3948_v10 = vmul.f32 %v3880_v51, %v3812_v8 }
 0x188   :  { %v3949_v63 = vmul.f32 %v3884_v20, %v3811_v53  ;;  %v3950_v47 = vmul.f32 %v3888_v14, %v3812_v8  ;;  %v3951_v35 = vmul.f32 %v3892_v59, %v3811_v53  ;;  %v3952_v36 = vmul.f32 %v3896_v15, %v3812_v8 }
 0x189   :  { %v3953_v55 = vmul.f32 %v3900_v13, %v3811_v53  ;;  %v3954_v27 = vmul.f32 %v3904_v30, %v3812_v8  ;;  %v3955_v31 = vmul.f32 %v3908_v9, %v3811_v53  ;;  %v3956_v54 = vmul.f32 %v3912_v33, %v3812_v8 }
 0x18a   :  { %v3957_v16 = vmul.f32 %v3916_v26, %v3811_v53  ;;  %v3958_v2 = vmul.f32 %v3920_v29, %v3812_v8  ;;  %v3959_v61 = vmul.f32 %v3924_v22, %v3811_v53  ;;  %v3960_v24 = vmul.f32 %v3928_v62, %v3812_v8  ;;  %v3982_v8 = vld [vmem:[#allocation5 + $0x178] sm:$0xff] }
 0x18b   :  { %v3961_v17 = vadd.f32 %v3945_v12, %v7417_v1  ;;  %v3962_v25 = vadd.f32 %v3946_v48, %v7419_v7  ;;  %v3963_v3 = vadd.f32 %v3947_v43, %v7421_v57  ;;  %v3964_v37 = vadd.f32 %v3948_v10, %v7423_v42 }
 0x18c   :  { %v3965_v4 = vadd.f32 %v3949_v63, %v7425_v44  ;;  %v3966_v50 = vadd.f32 %v3950_v47, %v7427_v6  ;;  %v4023_v32 = vrot.slane %v4001_v34, %v6118_v5  ;;  %v4030_v28 = vrot.slane %v4002_v21, %v6118_v5 }
 0x18d   :  { %v3967_v41 = vadd.f32 %v3951_v35, %v7429_v39  ;;  %v3968_v51 = vadd.f32 %v3952_v36, %v7437_v56  ;;  %v3969_v1 = vadd.f32 %v3953_v55, %v7439_v11  ;;  %v4031_v7 = vcombine.high %v7457_v60, %v7457_v60  ;;  %v5901_v35 = vld [vmem:[#allocation2 + $0x180] ss:$8 sps:$4 sm:$0xff]   ;;  %v5903_v36 = vld [vmem:[#allocation2 + $0x184] ss:$8 sps:$4 sm:$0xff]  }
 0x18e   :  { %v3970_v57 = vadd.f32 %v3954_v27, %v7441_v58  ;;  %v3971_v42 = vadd.f32 %v3955_v31, %v7445_v23  ;;  %v7495_v44 = vadd.f32 %v3956_v54, %v7447_v45  ;;  %v4033_v6 = vcombine.high %v4023_v32, %v4023_v32  ;;  %v3981_v45 = vld [vmem:[#allocation5 + $0x170] sm:$0xff] }
 0x18f   :  { %v7497_v34 = vadd.f32 %v3957_v16, %v3803_v49  ;;  %v7499_v21 = vadd.f32 %v3958_v2, %v3804_v38  ;;  %v7501_v39 = vadd.f32 %v3959_v61, %v3805_v40  ;;  %v4032_v56 = vcombine.high %v7461_v46, %v7461_v46  ;;  %v5904_v16 = vld [vmem:[#allocation2 + $0x190] ss:$8 sps:$4 sm:$0xff]  }
 0x190   :  { %v7505_v11 = vadd.f32 %v3960_v24, %v3806_v52  ;;  %v4034_v53 = vcombine.high %v4030_v28, %v4030_v28  ;;  %v4038_v58 = vrot.slane %v7457_v60, %v6126_v18  ;;  %v4042_v23 = vrot.slane %v7457_v60, %v6128_v19 }
 0x191   :  { %v4046_v49 = vrot.slane %v4023_v32, %v6126_v18  ;;  %v4050_v38 = vrot.slane %v4023_v32, %v6128_v19  ;;  %v4054_v40 = vrot.slane %v4031_v7, %v6126_v18  ;;  %v4058_v20 = vrot.slane %v4031_v7, %v6128_v19 }
 0x192   :  { %v4062_v52 = vrot.slane %v4033_v6, %v6126_v18  ;;  %v4066_v14 = vrot.slane %v4033_v6, %v6128_v19  ;;  %v4070_v59 = vrot.slane %v7461_v46, %v6126_v18  ;;  %v4074_v60 = vrot.slane %v7461_v46, %v6128_v19 }
 0x193   :  { %v4078_v15 = vrot.slane %v4030_v28, %v6126_v18  ;;  %v4082_v13 = vrot.slane %v4030_v28, %v6128_v19  ;;  %v4086_v30 = vrot.slane %v4032_v56, %v6126_v18  ;;  %v4090_v9 = vrot.slane %v4032_v56, %v6128_v19  ;;  %v5906_v28 = vld [vmem:[#allocation2 + $0x194] ss:$8 sps:$4 sm:$0xff]  }
 0x194   :  { %v4094_v33 = vrot.slane %v4034_v53, %v6126_v18  ;;  %v4098_v26 = vrot.slane %v4034_v53, %v6128_v19  ;;  %v4115_v29 = vmul.f32 %v4038_v58, %v3981_v45  ;;  %v4116_v22 = vmul.f32 %v4042_v23, %v3982_v8 }
 0x195   :  { %v4117_v62 = vmul.f32 %v4046_v49, %v3981_v45  ;;  %v4118_v12 = vmul.f32 %v4050_v38, %v3982_v8  ;;  %v4119_v48 = vmul.f32 %v4054_v40, %v3981_v45  ;;  %v4120_v43 = vmul.f32 %v4058_v20, %v3982_v8  ;;  %v5910_v49 = vld [vmem:[#allocation2 + $0x1b0] ss:$8 sps:$4 sm:$0xff]   ;;  %v5912_v20 = vld [vmem:[#allocation2 + $0x1b4] ss:$8 sps:$4 sm:$0xff]  }
 0x196   :  { %v4121_v10 = vmul.f32 %v4062_v52, %v3981_v45  ;;  %v4122_v46 = vmul.f32 %v4066_v14, %v3982_v8  ;;  %v4123_v63 = vmul.f32 %v4070_v59, %v3981_v45  ;;  %v4124_v47 = vmul.f32 %v4074_v60, %v3982_v8 }
 0x197   :  { %v4125_v55 = vmul.f32 %v4078_v15, %v3981_v45  ;;  %v4126_v27 = vmul.f32 %v4082_v13, %v3982_v8  ;;  %v4127_v31 = vmul.f32 %v4086_v30, %v3981_v45  ;;  %v4128_v54 = vmul.f32 %v4090_v9, %v3982_v8 }
 0x198   :  { %v4129_v2 = vmul.f32 %v4094_v33, %v3981_v45  ;;  %v4130_v61 = vmul.f32 %v4098_v26, %v3982_v8  ;;  %v7527_v24 = vadd.f32 %v4115_v29, %v3961_v17  ;;  %v7529_v32 = vadd.f32 %v4116_v22, %v3962_v25 }
 0x199   :  { %v7531_v7 = vadd.f32 %v4117_v62, %v3963_v3  ;;  %v7533_v6 = vadd.f32 %v4118_v12, %v3964_v37  ;;  %v7535_v56 = vadd.f32 %v4119_v48, %v3965_v4  ;;  %v7537_v53 = vadd.f32 %v4120_v43, %v3966_v50  ;;  %v5907_v4 = vld [vmem:[#allocation2 + $0x1a0] ss:$8 sps:$4 sm:$0xff]   ;;  %v5909_v50 = vld [vmem:[#allocation2 + $0x1a4] ss:$8 sps:$4 sm:$0xff]  }
 0x19a   :  { %v7539_v58 = vadd.f32 %v4121_v10, %v3967_v41  ;;  %v7541_v23 = vadd.f32 %v4122_v46, %v3968_v51  ;;  %v4163_v45 = vrot.slane %v5901_v35, %v6118_v5  ;;  %v4170_v17 = vrot.slane %v5903_v36, %v6118_v5  ;;  %v4151_v10 = vld [vmem:[#allocation5 + $0x180] sm:$0xff]  ;;  %v4152_v46 = vld [vmem:[#allocation5 + $0x188] sm:$0xff] }
 0x19b   :  { %v7545_v8 = vadd.f32 %v4123_v63, %v3969_v1  ;;  %v7547_v25 = vadd.f32 %v4124_v47, %v3970_v57  ;;  %v7549_v3 = vadd.f32 %v4125_v55, %v3971_v42  ;;  %v7552_v37 = vrot.slane %v5904_v16, %v6118_v5 }
 0x19c   :  { %v4171_v41 = vcombine.high %v4163_v45, %v4163_v45  ;;  %v4172_v38 = vcombine.high %v4170_v17, %v4170_v17  ;;  %v4179_v51 = vrot.slane %v4163_v45, %v6118_v5  ;;  %v7556_v40 = vrot.slane %v5906_v28, %v6118_v5 }
 0x19d   :  { %v7559_v1 = vadd.f32 %v4126_v27, %v7495_v44  ;;  %v7562_v57 = vadd.f32 %v4127_v31, %v7497_v34  ;;  %v7565_v42 = vadd.f32 %v4128_v54, %v7499_v21  ;;  %v4186_v52 = vrot.slane %v4170_v17, %v6118_v5 }
 0x19e   :  { %v7569_v14 = vadd.f32 %v4129_v2, %v7501_v39  ;;  %v7572_v59 = vadd.f32 %v4130_v61, %v7505_v11  ;;  %v4193_v60 = vrot.slane %v4171_v41, %v6118_v5  ;;  %v4200_v15 = vrot.slane %v4172_v38, %v6118_v5 }
 0x19f   :  { %v4201_v44 = vcombine.high %v4179_v51, %v4179_v51  ;;  %v7577_v13 = vrot.slane %v5907_v4, %v6118_v5  ;;  %v7580_v34 = vrot.slane %v5909_v50, %v6118_v5  ;;  %v7583_v21 = vrot.slane %v5910_v49, %v6118_v5 }
 0x1a0   :  { %v4203_v30 = vcombine.high %v4193_v60, %v4193_v60  ;;  %v4341_v39 = vcombine.high %v7552_v37, %v7552_v37  ;;  %v4342_v11 = vcombine.high %v7556_v40, %v7556_v40  ;;  %v7590_v9 = vrot.slane %v5912_v20, %v6118_v5 }
 0x1a1   :  { %v4202_v33 = vcombine.high %v4186_v52, %v4186_v52  ;;  %v4204_v26 = vcombine.high %v4200_v15, %v4200_v15  ;;  %v7594_v29 = vrot.slane %v7552_v37, %v6118_v5  ;;  %v7598_v22 = vrot.slane %v7556_v40, %v6118_v5 }
 0x1a2   :  { %v4208_v62 = vrot.slane %v4179_v51, %v6126_v18  ;;  %v4212_v12 = vrot.slane %v4179_v51, %v6128_v19  ;;  %v4216_v48 = vrot.slane %v4193_v60, %v6126_v18  ;;  %v4220_v43 = vrot.slane %v4193_v60, %v6128_v19 }
 0x1a3   :  { %v4224_v63 = vrot.slane %v4201_v44, %v6126_v18  ;;  %v4228_v47 = vrot.slane %v4201_v44, %v6128_v19  ;;  %v4232_v35 = vrot.slane %v4203_v30, %v6126_v18  ;;  %v4236_v36 = vrot.slane %v4203_v30, %v6128_v19 }
 0x1a4   :  { %v4240_v55 = vrot.slane %v4186_v52, %v6126_v18  ;;  %v4244_v27 = vrot.slane %v4186_v52, %v6128_v19  ;;  %v4248_v31 = vrot.slane %v4200_v15, %v6126_v18  ;;  %v4252_v54 = vrot.slane %v4200_v15, %v6128_v19 }
 0x1a5   :  { %v4256_v16 = vrot.slane %v4202_v33, %v6126_v18  ;;  %v4260_v2 = vrot.slane %v4202_v33, %v6128_v19  ;;  %v4264_v61 = vrot.slane %v4204_v26, %v6126_v18  ;;  %v4268_v28 = vrot.slane %v4204_v26, %v6128_v19 }
 0x1a6   :  { %v4285_v45 = vmul.f32 %v4208_v62, %v4151_v10  ;;  %v4286_v17 = vmul.f32 %v4212_v12, %v4152_v46  ;;  %v4287_v37 = vmul.f32 %v4216_v48, %v4151_v10  ;;  %v4288_v4 = vmul.f32 %v4220_v43, %v4152_v46 }
 0x1a7   :  { %v4289_v50 = vmul.f32 %v4224_v63, %v4151_v10  ;;  %v4290_v49 = vmul.f32 %v4228_v47, %v4152_v46  ;;  %v4291_v41 = vmul.f32 %v4232_v35, %v4151_v10  ;;  %v4292_v38 = vmul.f32 %v4236_v36, %v4152_v46  ;;  %v4322_v36 = vld [vmem:[#allocation5 + $0x198] sm:$0xff] }
 0x1a8   :  { %v4293_v51 = vmul.f32 %v4240_v55, %v4151_v10  ;;  %v4294_v40 = vmul.f32 %v4244_v27, %v4152_v46  ;;  %v4295_v20 = vmul.f32 %v4248_v31, %v4151_v10  ;;  %v4296_v52 = vmul.f32 %v4252_v54, %v4152_v46 }
 0x1a9   :  { %v4297_v60 = vmul.f32 %v4256_v16, %v4151_v10  ;;  %v4298_v15 = vmul.f32 %v4260_v2, %v4152_v46  ;;  %v4299_v44 = vmul.f32 %v4264_v61, %v4151_v10  ;;  %v4300_v30 = vmul.f32 %v4268_v28, %v4152_v46 }
 0x1aa   :  { %v4301_v33 = vadd.f32 %v4285_v45, %v7527_v24  ;;  %v4302_v26 = vadd.f32 %v4286_v17, %v7529_v32  ;;  %v4303_v62 = vadd.f32 %v4287_v37, %v7531_v7  ;;  %v4304_v12 = vadd.f32 %v4288_v4, %v7533_v6 }
 0x1ab   :  { %v4305_v48 = vadd.f32 %v4289_v50, %v7535_v56  ;;  %v4306_v43 = vadd.f32 %v4290_v49, %v7537_v53  ;;  %v4363_v63 = vrot.slane %v4341_v39, %v6118_v5  ;;  %v4370_v47 = vrot.slane %v4342_v11, %v6118_v5 }
 0x1ac   :  { %v4307_v35 = vadd.f32 %v4291_v41, %v7539_v58  ;;  %v4308_v10 = vadd.f32 %v4292_v38, %v7541_v23  ;;  %v4309_v24 = vadd.f32 %v4293_v51, %v7545_v8  ;;  %v4371_v32 = vcombine.high %v7594_v29, %v7594_v29 }
 0x1ad   :  { %v4310_v7 = vadd.f32 %v4294_v40, %v7547_v25  ;;  %v4311_v6 = vadd.f32 %v4295_v20, %v7549_v3  ;;  %v4312_v56 = vadd.f32 %v4296_v52, %v7559_v1  ;;  %v4373_v53 = vcombine.high %v4363_v63, %v4363_v63  ;;  %v4321_v1 = vld [vmem:[#allocation5 + $0x190] sm:$0xff] }
 0x1ae   :  { %v4313_v39 = vadd.f32 %v4297_v60, %v7562_v57  ;;  %v4314_v11 = vadd.f32 %v4298_v15, %v7565_v42  ;;  %v4315_v58 = vadd.f32 %v4299_v44, %v7569_v14  ;;  %v4372_v23 = vcombine.high %v7598_v22, %v7598_v22 }
 0x1af   :  { %v4316_v8 = vadd.f32 %v4300_v30, %v7572_v59  ;;  %v4374_v46 = vcombine.high %v4370_v47, %v4370_v47  ;;  %v4378_v25 = vrot.slane %v7594_v29, %v6126_v18  ;;  %v4382_v3 = vrot.slane %v7594_v29, %v6128_v19 }
 0x1b0   :  { %v4386_v57 = vrot.slane %v4363_v63, %v6126_v18  ;;  %v4390_v42 = vrot.slane %v4363_v63, %v6128_v19  ;;  %v4394_v14 = vrot.slane %v4371_v32, %v6126_v18  ;;  %v4398_v55 = vrot.slane %v4371_v32, %v6128_v19 }
 0x1b1   :  { %v4402_v27 = vrot.slane %v4373_v53, %v6126_v18  ;;  %v4406_v59 = vrot.slane %v4373_v53, %v6128_v19  ;;  %v4410_v31 = vrot.slane %v7598_v22, %v6126_v18  ;;  %v4414_v29 = vrot.slane %v7598_v22, %v6128_v19 }
 0x1b2   :  { %v4418_v54 = vrot.slane %v4370_v47, %v6126_v18  ;;  %v4422_v16 = vrot.slane %v4370_v47, %v6128_v19  ;;  %v4426_v2 = vrot.slane %v4372_v23, %v6126_v18  ;;  %v4430_v61 = vrot.slane %v4372_v23, %v6128_v19 }
 0x1b3   :  { %v4434_v28 = vrot.slane %v4374_v46, %v6126_v18  ;;  %v4438_v45 = vrot.slane %v4374_v46, %v6128_v19  ;;  %v4455_v17 = vmul.f32 %v4378_v25, %v4321_v1  ;;  %v4456_v37 = vmul.f32 %v4382_v3, %v4322_v36 }
 0x1b4   :  { %v4457_v4 = vmul.f32 %v4386_v57, %v4321_v1  ;;  %v4458_v50 = vmul.f32 %v4390_v42, %v4322_v36  ;;  %v4459_v49 = vmul.f32 %v4394_v14, %v4321_v1  ;;  %v4460_v41 = vmul.f32 %v4398_v55, %v4322_v36 }
 0x1b5   :  { %v4461_v38 = vmul.f32 %v4402_v27, %v4321_v1  ;;  %v4462_v22 = vmul.f32 %v4406_v59, %v4322_v36  ;;  %v4463_v51 = vmul.f32 %v4410_v31, %v4321_v1  ;;  %v4464_v40 = vmul.f32 %v4414_v29, %v4322_v36  ;;  %v4491_v31 = vld [vmem:[#allocation5 + $0x1a0] sm:$0xff]  ;;  %v4492_v29 = vld [vmem:[#allocation5 + $0x1a8] sm:$0xff] }
 0x1b6   :  { %v4465_v20 = vmul.f32 %v4418_v54, %v4321_v1  ;;  %v4466_v52 = vmul.f32 %v4422_v16, %v4322_v36  ;;  %v4467_v60 = vmul.f32 %v4426_v2, %v4321_v1  ;;  %v4468_v15 = vmul.f32 %v4430_v61, %v4322_v36 }
 0x1b7   :  { %v4469_v44 = vmul.f32 %v4434_v28, %v4321_v1  ;;  %v4470_v30 = vmul.f32 %v4438_v45, %v4322_v36  ;;  %v7658_v63 = vadd.f32 %v4455_v17, %v4301_v33  ;;  %v7660_v47 = vadd.f32 %v4456_v37, %v4302_v26 }
 0x1b8   :  { %v7662_v32 = vadd.f32 %v4457_v4, %v4303_v62  ;;  %v7664_v53 = vadd.f32 %v4458_v50, %v4304_v12  ;;  %v7666_v23 = vadd.f32 %v4459_v49, %v4305_v48  ;;  %v7668_v46 = vadd.f32 %v4460_v41, %v4306_v43 }
 0x1b9   :  { %v7670_v25 = vadd.f32 %v4461_v38, %v4307_v35  ;;  %v4511_v3 = vcombine.high %v7577_v13, %v7577_v13  ;;  %v4512_v1 = vcombine.high %v7580_v34, %v7580_v34  ;;  %v4519_v33 = vrot.slane %v7577_v13, %v6118_v5 }
 0x1ba   :  { %v7678_v26 = vadd.f32 %v4462_v22, %v4308_v10  ;;  %v7680_v62 = vadd.f32 %v4463_v51, %v4309_v24  ;;  %v7682_v12 = vadd.f32 %v4464_v40, %v4310_v7  ;;  %v4526_v48 = vrot.slane %v7580_v34, %v6118_v5 }
 0x1bb   :  { %v7686_v43 = vadd.f32 %v4465_v20, %v4311_v6  ;;  %v7688_v35 = vadd.f32 %v4466_v52, %v4312_v56  ;;  %v4533_v36 = vrot.slane %v4511_v3, %v6118_v5  ;;  %v4540_v57 = vrot.slane %v4512_v1, %v6118_v5 }
 0x1bc   :  { %v4483_v42 = vadd.f32 %v4467_v60, %v4313_v39  ;;  %v4484_v14 = vadd.f32 %v4468_v15, %v4314_v11  ;;  %v4485_v13 = vadd.f32 %v4469_v44, %v4315_v58  ;;  %v4541_v10 = vcombine.high %v4519_v33, %v4519_v33 }
 0x1bd   :  { %v4486_v55 = vadd.f32 %v4470_v30, %v4316_v8  ;;  %v4543_v24 = vcombine.high %v4533_v36, %v4533_v36  ;;  %v4681_v7 = vcombine.high %v7583_v21, %v7583_v21  ;;  %v4682_v34 = vcombine.high %v7590_v9, %v7590_v9 }
 0x1be   :  { %v4542_v6 = vcombine.high %v4526_v48, %v4526_v48  ;;  %v4544_v27 = vcombine.high %v4540_v57, %v4540_v57  ;;  %v7698_v56 = vrot.slane %v7583_v21, %v6118_v5  ;;  %v7702_v39 = vrot.slane %v7590_v9, %v6118_v5 }
 0x1bf   :  { %v4548_v11 = vrot.slane %v4519_v33, %v6126_v18  ;;  %v4552_v58 = vrot.slane %v4519_v33, %v6128_v19  ;;  %v4556_v8 = vrot.slane %v4533_v36, %v6126_v18  ;;  %v4560_v59 = vrot.slane %v4533_v36, %v6128_v19 }
 0x1c0   :  { %v4564_v54 = vrot.slane %v4541_v10, %v6126_v18  ;;  %v4568_v16 = vrot.slane %v4541_v10, %v6128_v19  ;;  %v4572_v21 = vrot.slane %v4543_v24, %v6126_v18  ;;  %v4576_v2 = vrot.slane %v4543_v24, %v6128_v19 }
 0x1c1   :  { %v4580_v9 = vrot.slane %v4526_v48, %v6126_v18  ;;  %v4584_v61 = vrot.slane %v4526_v48, %v6128_v19  ;;  %v4588_v28 = vrot.slane %v4540_v57, %v6126_v18  ;;  %v4592_v45 = vrot.slane %v4540_v57, %v6128_v19 }
 0x1c2   :  { %v4596_v17 = vrot.slane %v4542_v6, %v6126_v18  ;;  %v4600_v37 = vrot.slane %v4542_v6, %v6128_v19  ;;  %v4604_v4 = vrot.slane %v4544_v27, %v6126_v18  ;;  %v4608_v50 = vrot.slane %v4544_v27, %v6128_v19 }
 0x1c3   :  { %v4625_v49 = vmul.f32 %v4548_v11, %v4491_v31  ;;  %v4626_v41 = vmul.f32 %v4552_v58, %v4492_v29  ;;  %v4627_v38 = vmul.f32 %v4556_v8, %v4491_v31  ;;  %v4628_v22 = vmul.f32 %v4560_v59, %v4492_v29 }
 0x1c4   :  { %v4629_v51 = vmul.f32 %v4564_v54, %v4491_v31  ;;  %v4630_v40 = vmul.f32 %v4568_v16, %v4492_v29  ;;  %v4631_v20 = vmul.f32 %v4572_v21, %v4491_v31  ;;  %v4632_v52 = vmul.f32 %v4576_v2, %v4492_v29 }
 0x1c5   :  { %v4633_v60 = vmul.f32 %v4580_v9, %v4491_v31  ;;  %v4634_v15 = vmul.f32 %v4584_v61, %v4492_v29  ;;  %v4635_v44 = vmul.f32 %v4588_v28, %v4491_v31  ;;  %v4636_v30 = vmul.f32 %v4592_v45, %v4492_v29 }
 0x1c6   :  { %v4637_v3 = vmul.f32 %v4596_v17, %v4491_v31  ;;  %v4638_v1 = vmul.f32 %v4600_v37, %v4492_v29  ;;  %v4639_v33 = vmul.f32 %v4604_v4, %v4491_v31  ;;  %v4640_v48 = vmul.f32 %v4608_v50, %v4492_v29  ;;  %v4662_v29 = vld [vmem:[#allocation5 + $0x1b8] sm:$0xff] }
 0x1c7   :  { %v4641_v36 = vadd.f32 %v4625_v49, %v7658_v63  ;;  %v4642_v57 = vadd.f32 %v4626_v41, %v7660_v47  ;;  %v4643_v10 = vadd.f32 %v4627_v38, %v7662_v32  ;;  %v4644_v24 = vadd.f32 %v4628_v22, %v7664_v53 }
 0x1c8   :  { %v4645_v6 = vadd.f32 %v4629_v51, %v7666_v23  ;;  %v4646_v27 = vadd.f32 %v4630_v40, %v7668_v46  ;;  %v4703_v11 = vrot.slane %v4681_v7, %v6118_v5  ;;  %v4710_v58 = vrot.slane %v4682_v34, %v6118_v5 }
 0x1c9   :  { %v4647_v8 = vadd.f32 %v4631_v20, %v7670_v25  ;;  %v4648_v59 = vadd.f32 %v4632_v52, %v7678_v26  ;;  %v4649_v63 = vadd.f32 %v4633_v60, %v7680_v62  ;;  %v4711_v47 = vcombine.high %v7698_v56, %v7698_v56  ;;  %v5913_v20 = vld [vmem:[#allocation2 + $0x1c0] ss:$8 sps:$4 sm:$0xff]   ;;  %v5915_v52 = vld [vmem:[#allocation2 + $0x1c4] ss:$8 sps:$4 sm:$0xff]  }
 0x1ca   :  { %v4650_v32 = vadd.f32 %v4634_v15, %v7682_v12  ;;  %v4651_v53 = vadd.f32 %v4635_v44, %v7686_v43  ;;  %v7736_v23 = vadd.f32 %v4636_v30, %v7688_v35  ;;  %v4713_v46 = vcombine.high %v4703_v11, %v4703_v11  ;;  %v4661_v35 = vld [vmem:[#allocation5 + $0x1b0] sm:$0xff] }
 0x1cb   :  { %v7738_v7 = vadd.f32 %v4637_v3, %v4483_v42  ;;  %v7740_v34 = vadd.f32 %v4638_v1, %v4484_v14  ;;  %v7742_v25 = vadd.f32 %v4639_v33, %v4485_v13  ;;  %v4712_v26 = vcombine.high %v7702_v39, %v7702_v39  ;;  %v5916_v3 = vld [vmem:[#allocation2 + $0x1d0] ss:$8 sps:$4 sm:$0xff]  }
 0x1cc   :  { %v7746_v62 = vadd.f32 %v4640_v48, %v4486_v55  ;;  %v4714_v31 = vcombine.high %v4710_v58, %v4710_v58  ;;  %v4718_v12 = vrot.slane %v7698_v56, %v6126_v18  ;;  %v4722_v43 = vrot.slane %v7698_v56, %v6128_v19 }
 0x1cd   :  { %v4726_v42 = vrot.slane %v4703_v11, %v6126_v18  ;;  %v4730_v14 = vrot.slane %v4703_v11, %v6128_v19  ;;  %v4734_v13 = vrot.slane %v4711_v47, %v6126_v18  ;;  %v4738_v54 = vrot.slane %v4711_v47, %v6128_v19 }
 0x1ce   :  { %v4742_v55 = vrot.slane %v4713_v46, %v6126_v18  ;;  %v4746_v16 = vrot.slane %v4713_v46, %v6128_v19  ;;  %v4750_v21 = vrot.slane %v7702_v39, %v6126_v18  ;;  %v4754_v56 = vrot.slane %v7702_v39, %v6128_v19 }
 0x1cf   :  { %v4758_v2 = vrot.slane %v4710_v58, %v6126_v18  ;;  %v4762_v9 = vrot.slane %v4710_v58, %v6128_v19  ;;  %v4766_v61 = vrot.slane %v4712_v26, %v6126_v18  ;;  %v4770_v28 = vrot.slane %v4712_v26, %v6128_v19  ;;  %v5918_v58 = vld [vmem:[#allocation2 + $0x1d4] ss:$8 sps:$4 sm:$0xff]  }
 0x1d0   :  { %v4774_v45 = vrot.slane %v4714_v31, %v6126_v18  ;;  %v4778_v17 = vrot.slane %v4714_v31, %v6128_v19  ;;  %v4795_v37 = vmul.f32 %v4718_v12, %v4661_v35  ;;  %v4796_v4 = vmul.f32 %v4722_v43, %v4662_v29 }
 0x1d1   :  { %v4797_v50 = vmul.f32 %v4726_v42, %v4661_v35  ;;  %v4798_v49 = vmul.f32 %v4730_v14, %v4662_v29  ;;  %v4799_v41 = vmul.f32 %v4734_v13, %v4661_v35  ;;  %v4800_v38 = vmul.f32 %v4738_v54, %v4662_v29  ;;  %v5922_v42 = vld [vmem:[#allocation2 + $0x1f0] ss:$8 sps:$4 sm:$0xff]   ;;  %v5924_v54 = vld [vmem:[#allocation2 + $0x1f4] ss:$8 sps:$4 sm:$0xff]  }
 0x1d2   :  { %v4801_v22 = vmul.f32 %v4742_v55, %v4661_v35  ;;  %v4802_v39 = vmul.f32 %v4746_v16, %v4662_v29  ;;  %v4803_v51 = vmul.f32 %v4750_v21, %v4661_v35  ;;  %v4804_v40 = vmul.f32 %v4754_v56, %v4662_v29 }
 0x1d3   :  { %v4805_v60 = vmul.f32 %v4758_v2, %v4661_v35  ;;  %v4806_v15 = vmul.f32 %v4762_v9, %v4662_v29  ;;  %v4807_v44 = vmul.f32 %v4766_v61, %v4661_v35  ;;  %v4808_v30 = vmul.f32 %v4770_v28, %v4662_v29 }
 0x1d4   :  { %v4809_v1 = vmul.f32 %v4774_v45, %v4661_v35  ;;  %v4810_v33 = vmul.f32 %v4778_v17, %v4662_v29  ;;  %v7768_v48 = vadd.f32 %v4795_v37, %v4641_v36  ;;  %v7770_v11 = vadd.f32 %v4796_v4, %v4642_v57 }
 0x1d5   :  { %v7772_v47 = vadd.f32 %v4797_v50, %v4643_v10  ;;  %v7774_v46 = vadd.f32 %v4798_v49, %v4644_v24  ;;  %v7776_v26 = vadd.f32 %v4799_v41, %v4645_v6  ;;  %v7778_v31 = vadd.f32 %v4800_v38, %v4646_v27  ;;  %v5919_v6 = vld [vmem:[#allocation2 + $0x1e0] ss:$8 sps:$4 sm:$0xff]   ;;  %v5921_v27 = vld [vmem:[#allocation2 + $0x1e4] ss:$8 sps:$4 sm:$0xff]  }
 0x1d6   :  { %v7780_v12 = vadd.f32 %v4801_v22, %v4647_v8  ;;  %v7782_v43 = vadd.f32 %v4802_v39, %v4648_v59  ;;  %v4843_v35 = vrot.slane %v5913_v20, %v6118_v5  ;;  %v4850_v36 = vrot.slane %v5915_v52, %v6118_v5  ;;  %v4831_v22 = vld [vmem:[#allocation5 + $0x1c0] sm:$0xff]  ;;  %v4832_v39 = vld [vmem:[#allocation5 + $0x1c8] sm:$0xff] }
 0x1d7   :  { %v7786_v29 = vadd.f32 %v4803_v51, %v4649_v63  ;;  %v7788_v57 = vadd.f32 %v4804_v40, %v4650_v32  ;;  %v7790_v10 = vadd.f32 %v4805_v60, %v4651_v53  ;;  %v7793_v24 = vrot.slane %v5916_v3, %v6118_v5 }
 0x1d8   :  { %v4851_v8 = vcombine.high %v4843_v35, %v4843_v35  ;;  %v4852_v14 = vcombine.high %v4850_v36, %v4850_v36  ;;  %v4859_v59 = vrot.slane %v4843_v35, %v6118_v5  ;;  %v7797_v13 = vrot.slane %v5918_v58, %v6118_v5 }
 0x1d9   :  { %v7800_v63 = vadd.f32 %v4806_v15, %v7736_v23  ;;  %v7803_v32 = vadd.f32 %v4807_v44, %v7738_v7  ;;  %v7806_v53 = vadd.f32 %v4808_v30, %v7740_v34  ;;  %v4866_v55 = vrot.slane %v4850_v36, %v6118_v5 }
 0x1da   :  { %v7810_v16 = vadd.f32 %v4809_v1, %v7742_v25  ;;  %v7813_v21 = vadd.f32 %v4810_v33, %v7746_v62  ;;  %v4873_v56 = vrot.slane %v4851_v8, %v6118_v5  ;;  %v4880_v2 = vrot.slane %v4852_v14, %v6118_v5 }
 0x1db   :  { %v4881_v23 = vcombine.high %v4859_v59, %v4859_v59  ;;  %v7818_v9 = vrot.slane %v5919_v6, %v6118_v5  ;;  %v7821_v7 = vrot.slane %v5921_v27, %v6118_v5  ;;  %v7824_v34 = vrot.slane %v5922_v42, %v6118_v5 }
 0x1dc   :  { %v4883_v61 = vcombine.high %v4873_v56, %v4873_v56  ;;  %v5021_v25 = vcombine.high %v7793_v24, %v7793_v24  ;;  %v5022_v62 = vcombine.high %v7797_v13, %v7797_v13  ;;  %v7831_v28 = vrot.slane %v5924_v54, %v6118_v5 }
 0x1dd   :  { %v4882_v45 = vcombine.high %v4866_v55, %v4866_v55  ;;  %v4884_v17 = vcombine.high %v4880_v2, %v4880_v2  ;;  %v7835_v37 = vrot.slane %v7793_v24, %v6118_v5  ;;  %v7839_v4 = vrot.slane %v7797_v13, %v6118_v5 }
 0x1de   :  { %v4888_v50 = vrot.slane %v4859_v59, %v6126_v18  ;;  %v4892_v49 = vrot.slane %v4859_v59, %v6128_v19  ;;  %v4896_v41 = vrot.slane %v4873_v56, %v6126_v18  ;;  %v4900_v38 = vrot.slane %v4873_v56, %v6128_v19 }
 0x1df   :  { %v4904_v51 = vrot.slane %v4881_v23, %v6126_v18  ;;  %v4908_v40 = vrot.slane %v4881_v23, %v6128_v19  ;;  %v4912_v20 = vrot.slane %v4883_v61, %v6126_v18  ;;  %v4916_v52 = vrot.slane %v4883_v61, %v6128_v19 }
 0x1e0   :  { %v4920_v60 = vrot.slane %v4866_v55, %v6126_v18  ;;  %v4924_v15 = vrot.slane %v4866_v55, %v6128_v19  ;;  %v4928_v44 = vrot.slane %v4880_v2, %v6126_v18  ;;  %v4932_v30 = vrot.slane %v4880_v2, %v6128_v19 }
 0x1e1   :  { %v4936_v3 = vrot.slane %v4882_v45, %v6126_v18  ;;  %v4940_v1 = vrot.slane %v4882_v45, %v6128_v19  ;;  %v4944_v33 = vrot.slane %v4884_v17, %v6126_v18  ;;  %v4948_v58 = vrot.slane %v4884_v17, %v6128_v19 }
 0x1e2   :  { %v4965_v35 = vmul.f32 %v4888_v50, %v4831_v22  ;;  %v4966_v36 = vmul.f32 %v4892_v49, %v4832_v39  ;;  %v4967_v24 = vmul.f32 %v4896_v41, %v4831_v22  ;;  %v4968_v6 = vmul.f32 %v4900_v38, %v4832_v39 }
 0x1e3   :  { %v4969_v27 = vmul.f32 %v4904_v51, %v4831_v22  ;;  %v4970_v42 = vmul.f32 %v4908_v40, %v4832_v39  ;;  %v4971_v8 = vmul.f32 %v4912_v20, %v4831_v22  ;;  %v4972_v14 = vmul.f32 %v4916_v52, %v4832_v39  ;;  %v5002_v52 = vld [vmem:[#allocation5 + $0x1d8] sm:$0xff] }
 0x1e4   :  { %v4973_v59 = vmul.f32 %v4920_v60, %v4831_v22  ;;  %v4974_v13 = vmul.f32 %v4924_v15, %v4832_v39  ;;  %v4975_v54 = vmul.f32 %v4928_v44, %v4831_v22  ;;  %v4976_v55 = vmul.f32 %v4932_v30, %v4832_v39 }
 0x1e5   :  { %v4977_v56 = vmul.f32 %v4936_v3, %v4831_v22  ;;  %v4978_v2 = vmul.f32 %v4940_v1, %v4832_v39  ;;  %v4979_v23 = vmul.f32 %v4944_v33, %v4831_v22  ;;  %v4980_v61 = vmul.f32 %v4948_v58, %v4832_v39 }
 0x1e6   :  { %v4981_v45 = vadd.f32 %v4965_v35, %v7768_v48  ;;  %v4982_v17 = vadd.f32 %v4966_v36, %v7770_v11  ;;  %v4983_v50 = vadd.f32 %v4967_v24, %v7772_v47  ;;  %v4984_v49 = vadd.f32 %v4968_v6, %v7774_v46 }
 0x1e7   :  { %v4985_v41 = vadd.f32 %v4969_v27, %v7776_v26  ;;  %v4986_v38 = vadd.f32 %v4970_v42, %v7778_v31  ;;  %v5043_v51 = vrot.slane %v5021_v25, %v6118_v5  ;;  %v5050_v40 = vrot.slane %v5022_v62, %v6118_v5 }
 0x1e8   :  { %v4987_v20 = vadd.f32 %v4971_v8, %v7780_v12  ;;  %v4988_v22 = vadd.f32 %v4972_v14, %v7782_v43  ;;  %v4989_v48 = vadd.f32 %v4973_v59, %v7786_v29  ;;  %v5051_v11 = vcombine.high %v7835_v37, %v7835_v37 }
 0x1e9   :  { %v4990_v47 = vadd.f32 %v4974_v13, %v7788_v57  ;;  %v4991_v46 = vadd.f32 %v4975_v54, %v7790_v10  ;;  %v4992_v26 = vadd.f32 %v4976_v55, %v7800_v63  ;;  %v5053_v31 = vcombine.high %v5043_v51, %v5043_v51  ;;  %v5001_v63 = vld [vmem:[#allocation5 + $0x1d0] sm:$0xff] }
 0x1ea   :  { %v4993_v25 = vadd.f32 %v4977_v56, %v7803_v32  ;;  %v4994_v62 = vadd.f32 %v4978_v2, %v7806_v53  ;;  %v4995_v12 = vadd.f32 %v4979_v23, %v7810_v16  ;;  %v5052_v43 = vcombine.high %v7839_v4, %v7839_v4 }
 0x1eb   :  { %v4996_v29 = vadd.f32 %v4980_v61, %v7813_v21  ;;  %v5054_v39 = vcombine.high %v5050_v40, %v5050_v40  ;;  %v5058_v57 = vrot.slane %v7835_v37, %v6126_v18  ;;  %v5062_v10 = vrot.slane %v7835_v37, %v6128_v19 }
 0x1ec   :  { %v5066_v32 = vrot.slane %v5043_v51, %v6126_v18  ;;  %v5070_v53 = vrot.slane %v5043_v51, %v6128_v19  ;;  %v5074_v16 = vrot.slane %v5051_v11, %v6126_v18  ;;  %v5078_v60 = vrot.slane %v5051_v11, %v6128_v19 }
 0x1ed   :  { %v5082_v15 = vrot.slane %v5053_v31, %v6126_v18  ;;  %v5086_v21 = vrot.slane %v5053_v31, %v6128_v19  ;;  %v5090_v44 = vrot.slane %v7839_v4, %v6126_v18  ;;  %v5094_v37 = vrot.slane %v7839_v4, %v6128_v19 }
 0x1ee   :  { %v5098_v30 = vrot.slane %v5050_v40, %v6126_v18  ;;  %v5102_v3 = vrot.slane %v5050_v40, %v6128_v19  ;;  %v5106_v1 = vrot.slane %v5052_v43, %v6126_v18  ;;  %v5110_v33 = vrot.slane %v5052_v43, %v6128_v19 }
 0x1ef   :  { %v5114_v58 = vrot.slane %v5054_v39, %v6126_v18  ;;  %v5118_v35 = vrot.slane %v5054_v39, %v6128_v19  ;;  %v5135_v36 = vmul.f32 %v5058_v57, %v5001_v63  ;;  %v5136_v24 = vmul.f32 %v5062_v10, %v5002_v52 }
 0x1f0   :  { %v5137_v6 = vmul.f32 %v5066_v32, %v5001_v63  ;;  %v5138_v27 = vmul.f32 %v5070_v53, %v5002_v52  ;;  %v5139_v42 = vmul.f32 %v5074_v16, %v5001_v63  ;;  %v5140_v8 = vmul.f32 %v5078_v60, %v5002_v52 }
 0x1f1   :  { %v5141_v14 = vmul.f32 %v5082_v15, %v5001_v63  ;;  %v5142_v4 = vmul.f32 %v5086_v21, %v5002_v52  ;;  %v5143_v59 = vmul.f32 %v5090_v44, %v5001_v63  ;;  %v5144_v13 = vmul.f32 %v5094_v37, %v5002_v52  ;;  %v5171_v44 = vld [vmem:[#allocation5 + $0x1e0] sm:$0xff]  ;;  %v5172_v37 = vld [vmem:[#allocation5 + $0x1e8] sm:$0xff] }
 0x1f2   :  { %v5145_v54 = vmul.f32 %v5098_v30, %v5001_v63  ;;  %v5146_v55 = vmul.f32 %v5102_v3, %v5002_v52  ;;  %v5147_v56 = vmul.f32 %v5106_v1, %v5001_v63  ;;  %v5148_v2 = vmul.f32 %v5110_v33, %v5002_v52 }
 0x1f3   :  { %v5149_v23 = vmul.f32 %v5114_v58, %v5001_v63  ;;  %v5150_v61 = vmul.f32 %v5118_v35, %v5002_v52  ;;  %v7899_v51 = vadd.f32 %v5135_v36, %v4981_v45  ;;  %v7901_v40 = vadd.f32 %v5136_v24, %v4982_v17 }
 0x1f4   :  { %v7903_v11 = vadd.f32 %v5137_v6, %v4983_v50  ;;  %v7905_v31 = vadd.f32 %v5138_v27, %v4984_v49  ;;  %v7907_v43 = vadd.f32 %v5139_v42, %v4985_v41  ;;  %v7909_v39 = vadd.f32 %v5140_v8, %v4986_v38 }
 0x1f5   :  { %v7911_v57 = vadd.f32 %v5141_v14, %v4987_v20  ;;  %v5191_v10 = vcombine.high %v7818_v9, %v7818_v9  ;;  %v5192_v63 = vcombine.high %v7821_v7, %v7821_v7  ;;  %v5199_v45 = vrot.slane %v7818_v9, %v6118_v5 }
 0x1f6   :  { %v7919_v17 = vadd.f32 %v5142_v4, %v4988_v22  ;;  %v7921_v50 = vadd.f32 %v5143_v59, %v4989_v48  ;;  %v7923_v49 = vadd.f32 %v5144_v13, %v4990_v47  ;;  %v5206_v41 = vrot.slane %v7821_v7, %v6118_v5 }
 0x1f7   :  { %v7927_v38 = vadd.f32 %v5145_v54, %v4991_v46  ;;  %v7929_v20 = vadd.f32 %v5146_v55, %v4992_v26  ;;  %v5213_v52 = vrot.slane %v5191_v10, %v6118_v5  ;;  %v5220_v32 = vrot.slane %v5192_v63, %v6118_v5 }
 0x1f8   :  { %v5163_v53 = vadd.f32 %v5147_v56, %v4993_v25  ;;  %v5164_v16 = vadd.f32 %v5148_v2, %v4994_v62  ;;  %v5165_v9 = vadd.f32 %v5149_v23, %v4995_v12  ;;  %v5221_v22 = vcombine.high %v5199_v45, %v5199_v45 }
 0x1f9   :  { %v5166_v60 = vadd.f32 %v5150_v61, %v4996_v29  ;;  %v5223_v48 = vcombine.high %v5213_v52, %v5213_v52  ;;  %v5361_v47 = vcombine.high %v7824_v34, %v7824_v34  ;;  %v5362_v7 = vcombine.high %v7831_v28, %v7831_v28 }
 0x1fa   :  { %v5222_v46 = vcombine.high %v5206_v41, %v5206_v41  ;;  %v5224_v15 = vcombine.high %v5220_v32, %v5220_v32  ;;  %v7939_v26 = vrot.slane %v7824_v34, %v6118_v5  ;;  %v7943_v25 = vrot.slane %v7831_v28, %v6118_v5 }
 0x1fb   :  { %v5228_v62 = vrot.slane %v5199_v45, %v6126_v18  ;;  %v5232_v12 = vrot.slane %v5199_v45, %v6128_v19  ;;  %v5236_v29 = vrot.slane %v5213_v52, %v6126_v18  ;;  %v5240_v21 = vrot.slane %v5213_v52, %v6128_v19 }
 0x1fc   :  { %v5244_v30 = vrot.slane %v5221_v22, %v6126_v18  ;;  %v5248_v3 = vrot.slane %v5221_v22, %v6128_v19  ;;  %v5252_v34 = vrot.slane %v5223_v48, %v6126_v18  ;;  %v5256_v1 = vrot.slane %v5223_v48, %v6128_v19 }
 0x1fd   :  { %v5260_v28 = vrot.slane %v5206_v41, %v6126_v18  ;;  %v5264_v33 = vrot.slane %v5206_v41, %v6128_v19  ;;  %v5268_v58 = vrot.slane %v5220_v32, %v6126_v18  ;;  %v5272_v35 = vrot.slane %v5220_v32, %v6128_v19 }
 0x1fe   :  { %v5276_v36 = vrot.slane %v5222_v46, %v6126_v18  ;;  %v5280_v24 = vrot.slane %v5222_v46, %v6128_v19  ;;  %v5284_v6 = vrot.slane %v5224_v15, %v6126_v18  ;;  %v5288_v27 = vrot.slane %v5224_v15, %v6128_v19 }
 0x1ff   :  { %v5305_v42 = vmul.f32 %v5228_v62, %v5171_v44  ;;  %v5306_v8 = vmul.f32 %v5232_v12, %v5172_v37  ;;  %v5307_v14 = vmul.f32 %v5236_v29, %v5171_v44  ;;  %v5308_v4 = vmul.f32 %v5240_v21, %v5172_v37 }
 0x200   :  { %v5309_v59 = vmul.f32 %v5244_v30, %v5171_v44  ;;  %v5310_v13 = vmul.f32 %v5248_v3, %v5172_v37  ;;  %v5311_v54 = vmul.f32 %v5252_v34, %v5171_v44  ;;  %v5312_v55 = vmul.f32 %v5256_v1, %v5172_v37  ;;  %v5342_v3 = vld [vmem:[#allocation5 + $0x1f8] sm:$0xff] }
 0x201   :  { %v5313_v56 = vmul.f32 %v5260_v28, %v5171_v44  ;;  %v5314_v2 = vmul.f32 %v5264_v33, %v5172_v37  ;;  %v5315_v23 = vmul.f32 %v5268_v58, %v5171_v44  ;;  %v5316_v61 = vmul.f32 %v5272_v35, %v5172_v37 }
 0x202   :  { %v5317_v10 = vmul.f32 %v5276_v36, %v5171_v44  ;;  %v5318_v63 = vmul.f32 %v5280_v24, %v5172_v37  ;;  %v5319_v45 = vmul.f32 %v5284_v6, %v5171_v44  ;;  %v5320_v41 = vmul.f32 %v5288_v27, %v5172_v37 }
 0x203   :  { %v5321_v52 = vadd.f32 %v5305_v42, %v7899_v51  ;;  %v5322_v32 = vadd.f32 %v5306_v8, %v7901_v40  ;;  %v5323_v22 = vadd.f32 %v5307_v14, %v7903_v11  ;;  %v5324_v48 = vadd.f32 %v5308_v4, %v7905_v31 }
 0x204   :  { %v5325_v46 = vadd.f32 %v5309_v59, %v7907_v43  ;;  %v5326_v15 = vadd.f32 %v5310_v13, %v7909_v39  ;;  %v5383_v62 = vrot.slane %v5361_v47, %v6118_v5  ;;  %v5390_v12 = vrot.slane %v5362_v7, %v6118_v5 }
 0x205   :  { %v5327_v29 = vadd.f32 %v5311_v54, %v7911_v57  ;;  %v5328_v21 = vadd.f32 %v5312_v55, %v7919_v17  ;;  %v5329_v51 = vadd.f32 %v5313_v56, %v7921_v50  ;;  %v5391_v40 = vcombine.high %v7939_v26, %v7939_v26  ;;  %v5925_v54 = vld [vmem:[#allocation7] ss:$8 sps:$4 sm:$0xff]   ;;  %v5927_v55 = vld [vmem:[#allocation7 + $0x4] ss:$8 sps:$4 sm:$0xff]  }
 0x206   :  { %v5330_v11 = vadd.f32 %v5314_v2, %v7923_v49  ;;  %v5331_v31 = vadd.f32 %v5315_v23, %v7927_v38  ;;  %v5332_v43 = vadd.f32 %v5316_v61, %v7929_v20  ;;  %v5393_v39 = vcombine.high %v5383_v62, %v5383_v62  ;;  %v5341_v49 = vld [vmem:[#allocation5 + $0x1f0] sm:$0xff] }
 0x207   :  { %v5333_v44 = vadd.f32 %v5317_v10, %v5163_v53  ;;  %v5334_v47 = vadd.f32 %v5318_v63, %v5164_v16  ;;  %v5335_v37 = vadd.f32 %v5319_v45, %v5165_v9  ;;  %v5392_v57 = vcombine.high %v7943_v25, %v7943_v25 }
 0x208   :  { %v5336_v7 = vadd.f32 %v5320_v41, %v5166_v60  ;;  %v5394_v17 = vcombine.high %v5390_v12, %v5390_v12  ;;  %v5398_v50 = vrot.slane %v7939_v26, %v6126_v18  ;;  %v5402_v30 = vrot.slane %v7939_v26, %v6128_v19 }
 0x209   :  { %v5406_v38 = vrot.slane %v5383_v62, %v6126_v18  ;;  %v5410_v20 = vrot.slane %v5383_v62, %v6128_v19  ;;  %v5414_v53 = vrot.slane %v5391_v40, %v6126_v18  ;;  %v5418_v16 = vrot.slane %v5391_v40, %v6128_v19 }
 0x20a   :  { %v5422_v9 = vrot.slane %v5393_v39, %v6126_v18  ;;  %v5426_v60 = vrot.slane %v5393_v39, %v6128_v19  ;;  %v5430_v34 = vrot.slane %v7943_v25, %v6126_v18  ;;  %v5434_v26 = vrot.slane %v7943_v25, %v6128_v19 }
 0x20b   :  { %v5438_v1 = vrot.slane %v5390_v12, %v6126_v18  ;;  %v5442_v28 = vrot.slane %v5390_v12, %v6128_v19  ;;  %v5446_v33 = vrot.slane %v5392_v57, %v6126_v18  ;;  %v5450_v58 = vrot.slane %v5392_v57, %v6128_v19 }
 0x20c   :  { %v5454_v35 = vrot.slane %v5394_v17, %v6126_v18  ;;  %v5458_v36 = vrot.slane %v5394_v17, %v6128_v19  ;;  %v5475_v24 = vmul.f32 %v5398_v50, %v5341_v49  ;;  %v5476_v6 = vmul.f32 %v5402_v30, %v5342_v3 }
 0x20d   :  { %v5477_v27 = vmul.f32 %v5406_v38, %v5341_v49  ;;  %v5478_v42 = vmul.f32 %v5410_v20, %v5342_v3  ;;  %v5479_v8 = vmul.f32 %v5414_v53, %v5341_v49  ;;  %v5480_v14 = vmul.f32 %v5418_v16, %v5342_v3 }
 0x20e   :  { %v5481_v4 = vmul.f32 %v5422_v9, %v5341_v49  ;;  %v5482_v25 = vmul.f32 %v5426_v60, %v5342_v3  ;;  %v5483_v59 = vmul.f32 %v5430_v34, %v5341_v49  ;;  %v5484_v13 = vmul.f32 %v5434_v26, %v5342_v3 }
 0x20f   :  { %v5485_v56 = vmul.f32 %v5438_v1, %v5341_v49  ;;  %v5486_v2 = vmul.f32 %v5442_v28, %v5342_v3  ;;  %v5487_v23 = vmul.f32 %v5446_v33, %v5341_v49  ;;  %v5488_v61 = vmul.f32 %v5450_v58, %v5342_v3 }
 0x210   :  { %v5489_v10 = vmul.f32 %v5454_v35, %v5341_v49  ;;  %v5490_v63 = vmul.f32 %v5458_v36, %v5342_v3  ;;  %v5491_v45 = vadd.f32 %v5475_v24, %v5321_v52  ;;  %v5492_v41 = vadd.f32 %v5476_v6, %v5322_v32 }
 0x211   :  { %v5493_v62 = vadd.f32 %v5477_v27, %v5323_v22  ;;  %v5494_v12 = vadd.f32 %v5478_v42, %v5324_v48  ;;  %v5495_v40 = vadd.f32 %v5479_v8, %v5325_v46  ;;  %v5496_v39 = vadd.f32 %v5480_v14, %v5326_v15 }
 0x212   :  { %v5497_v57 = vadd.f32 %v5481_v4, %v5327_v29  ;;  %v5498_v17 = vadd.f32 %v5482_v25, %v5328_v21  ;;  %v5519_v50 = vrot.slane %v5925_v54, %v6118_v5  ;;  %v5526_v30 = vrot.slane %v5927_v55, %v6118_v5 }
 0x213   :  { %v5499_v38 = vadd.f32 %v5483_v59, %v5329_v51  ;;  %v5500_v20 = vadd.f32 %v5484_v13, %v5330_v11  ;;  %v5501_v53 = vadd.f32 %v5485_v56, %v5331_v31  ;;  %v5502_v16 = vadd.f32 %v5486_v2, %v5332_v43  ;;  %v5657_v59 = vld [vmem:[#allocation8] sm:$0xff]  ;;  %v5658_v13 = vld [vmem:[#allocation8 + $0x8] sm:$0xff] }
 0x214   :  { %v5527_v9 = vcombine.high %v5519_v50, %v5519_v50  ;;  %v5528_v60 = vcombine.high %v5526_v30, %v5526_v30  ;;  %v5535_v49 = vrot.slane %v5519_v50, %v6118_v5  ;;  %v5542_v52 = vrot.slane %v5526_v30, %v6118_v5 }
 0x215   :  { %v5503_v32 = vadd.f32 %v5487_v23, %v5333_v44  ;;  %v5504_v22 = vadd.f32 %v5488_v61, %v5334_v47  ;;  %v5505_v48 = vadd.f32 %v5489_v10, %v5335_v37  ;;  %v5506_v46 = vadd.f32 %v5490_v63, %v5336_v7 }
 0x216   :  { %v5549_v15 = vrot.slane %v5527_v9, %v6118_v5  ;;  %v5556_v29 = vrot.slane %v5528_v60, %v6118_v5  ;;  %v5557_v21 = vcombine.high %v5535_v49, %v5535_v49  ;;  %v5558_v3 = vcombine.high %v5542_v52, %v5542_v52 }
 0x217   :  { %v5564_v51 = vrot.slane %v5535_v49, %v6126_v18  ;;  %v5568_v11 = vrot.slane %v5535_v49, %v6128_v19  ;;  %v5596_v31 = vrot.slane %v5542_v52, %v6126_v18  ;;  %v5600_v43 = vrot.slane %v5542_v52, %v6128_v19 }
 0x218   :  { %v5559_v34 = vcombine.high %v5549_v15, %v5549_v15  ;;  %v5560_v26 = vcombine.high %v5556_v29, %v5556_v29  ;;  %v5572_v44 = vrot.slane %v5549_v15, %v6126_v18  ;;  %v5576_v47 = vrot.slane %v5549_v15, %v6128_v19 }
 0x219   :  { %v5580_v37 = vrot.slane %v5557_v21, %v6126_v18  ;;  %v5584_v7 = vrot.slane %v5557_v21, %v6128_v19  ;;  %v5604_v1 = vrot.slane %v5556_v29, %v6126_v18  ;;  %v5608_v28 = vrot.slane %v5556_v29, %v6128_v19 }
 0x21a   :  { %v5588_v33 = vrot.slane %v5559_v34, %v6126_v18  ;;  %v5592_v58 = vrot.slane %v5559_v34, %v6128_v19  ;;  %v5612_v35 = vrot.slane %v5558_v3, %v6126_v18  ;;  %v5616_v36 = vrot.slane %v5558_v3, %v6128_v19 }
 0x21b   :  { %v5620_v24 = vrot.slane %v5560_v26, %v6126_v18  ;;  %v5624_v6 = vrot.slane %v5560_v26, %v6128_v19  ;;  %v5641_v27 = vadd.f32 %v5564_v51, %v5491_v45  ;;  %v5642_v42 = vadd.f32 %v5568_v11, %v5492_v41 }
 0x21c   :  { %v5643_v8 = vadd.f32 %v5572_v44, %v5493_v62  ;;  %v5644_v14 = vadd.f32 %v5576_v47, %v5494_v12  ;;  %v5645_v4 = vadd.f32 %v5580_v37, %v5495_v40  ;;  %v5646_v25 = vadd.f32 %v5584_v7, %v5496_v39 }
 0x21d   :  { %v5647_v54 = vadd.f32 %v5588_v33, %v5497_v57  ;;  %v5648_v55 = vadd.f32 %v5592_v58, %v5498_v17  ;;  %v5649_v56 = vadd.f32 %v5596_v31, %v5499_v38  ;;  %v5650_v2 = vadd.f32 %v5600_v43, %v5500_v20 }
 0x21e   :  { %v5651_v23 = vadd.f32 %v5604_v1, %v5501_v53  ;;  %v5652_v61 = vadd.f32 %v5608_v28, %v5502_v16  ;;  %v5653_v10 = vadd.f32 %v5612_v35, %v5503_v32  ;;  %v5654_v63 = vadd.f32 %v5616_v36, %v5504_v22 }
 0x21f   :  { %v5655_v50 = vadd.f32 %v5620_v24, %v5505_v48  ;;  %v5656_v18 = vadd.f32 %v5624_v6, %v5506_v46  ;;  %v5659_v30 = vadd.f32 %v5657_v59, %v5641_v27  ;;  %v5660_v19 = vadd.f32 %v5658_v13, %v5642_v42 }
 0x220   :  { %v5661_v45 = vadd.f32 %v5657_v59, %v5643_v8  ;;  %v5662_v41 = vadd.f32 %v5658_v13, %v5644_v14  ;;  %v5663_v62 = vadd.f32 %v5657_v59, %v5645_v4  ;;  %v5664_v12 = vadd.f32 %v5658_v13, %v5646_v25 }
 0x221   :  { %v5665_v40 = vadd.f32 %v5657_v59, %v5647_v54  ;;  %v5666_v39 = vadd.f32 %v5658_v13, %v5648_v55  ;;  %v5667_v9 = vadd.f32 %v5657_v59, %v5649_v56  ;;  %v5668_v60 = vadd.f32 %v5658_v13, %v5650_v2 }
 0x222   :  { %v8021_v57 = vadd.f32 %v5657_v59, %v5651_v23  ;;  %v8023_v17 = vadd.f32 %v5658_v13, %v5652_v61  ;;  %v8025_v38 = vadd.f32 %v5657_v59, %v5653_v10  ;;  %v8027_v20 = vadd.f32 %v5657_v59, %v5655_v50 }
 0x223   :  { %v5675_v53 = vmax.f32 %v5659_v30, %v5663_v62  ;;  %v5676_v16 = vmax.f32 %v5661_v45, %v5665_v40  ;;  %v8029_v49 = vadd.f32 %v5658_v13, %v5654_v63  ;;  %v8031_v52 = vadd.f32 %v5658_v13, %v5656_v18 }
 0x224   :  { %v5682_v32 = vmax.f32 %v5660_v19, %v5664_v12  ;;  %v5683_v22 = vmax.f32 %v5662_v41, %v5666_v39 }
 0x225   :  { %v5677_v48 = vmax.f32 %v5675_v53, %v5667_v9  ;;  %v5678_v46 = vmax.f32 %v5676_v16, %v8021_v57 }
 0x226   :  { %v5684_v15 = vmax.f32 %v5682_v32, %v5668_v60  ;;  %v5685_v29 = vmax.f32 %v5683_v22, %v8023_v17 }
 0x227   :  { %v5679_v21 = vmax.f32 %v5677_v48, %v8025_v38  ;;  %v5680_v3 = vmax.f32 %v5678_v46, %v8027_v20 }
 0x228   :  { %v5686_v51 = vmax.f32 %v5684_v15, %v8029_v49  ;;  %v5687_v11 = vmax.f32 %v5685_v29, %v8031_v52 }
 0x229   :  { %v5681_v31 = vmax.f32 %v5679_v21, %v5680_v3 }
 0x22a   :  { %v5688_v43 = vmax.f32 %v5686_v51, %v5687_v11 }
 0x22b   :  { %v5689_v34 = vrot.slane %v5681_v31, 4 }
 0x22c   :  { %v5695_v26 = vrot.slane %v5688_v43, 4 }
 0x22d   :  { %v5690_v44 = vmax.f32 %v5681_v31, %v5689_v34 }
 0x22e   :  { %v5696_v47 = vmax.f32 %v5688_v43, %v5695_v26 }
 0x22f   :  { %v5691_v37 = vrot.slane %v5690_v44, 2 }
 0x230   :  { %v5697_v7 = vrot.slane %v5696_v47, 2 }
 0x231   :  { %v5692_v1 = vmax.f32 %v5690_v44, %v5691_v37 }
 0x232   :  { %v5698_v28 = vmax.f32 %v5696_v47, %v5697_v7 }
 0x233   :  { %v5693_v33 = vrot.slane %v5692_v1, 1 }
 0x234   :  { %v5699_v58 = vrot.slane %v5698_v28, 1 }
 0x235   :  { %v8039_v35 = vmax.f32 %v5692_v1, %v5693_v33 }
 0x236   :  { %v8041_v36 = vmax.f32 %v5698_v28, %v5699_v58 }
 0x237   :  { %v5701_v24 = vsub.f32 %v5659_v30, %v8039_v35  ;;  %v5703_v6 = vsub.f32 %v5661_v45, %v8039_v35  ;;  %v5705_v8 = vsub.f32 %v5663_v62, %v8039_v35  ;;  %v5707_v4 = vsub.f32 %v5665_v40, %v8039_v35 }
 0x238   :  { %v5702_v27 = vsub.f32 %v5660_v19, %v8041_v36  ;;  %v5704_v42 = vsub.f32 %v5662_v41, %v8041_v36  ;;  %v5706_v14 = vsub.f32 %v5664_v12, %v8041_v36  ;;  %v5708_v54 = vsub.f32 %v5666_v39, %v8041_v36 }
 0x239   :  { %v5717_v25 = vmul.f32 1.442695, %v5701_v24  ;;  %v5721_v13 = vmul.f32 1.442695, %v5703_v6  ;;  %v5709_v56 = vsub.f32 %v5667_v9, %v8039_v35  ;;  %v5725_v2 = vmul.f32 1.442695, %v5705_v8 }
 0x23a   :  { %v5719_v59 = vmul.f32 1.442695, %v5702_v27  ;;  %v5723_v55 = vmul.f32 1.442695, %v5704_v42  ;;  %v5710_v23 = vsub.f32 %v5668_v60, %v8041_v36  ;;  %v5727_v61 = vmul.f32 1.442695, %v5706_v14 }
 0x23b   :  { %5928 = vpow2.f32 %v5717_v25  ;;  %v5711_v10 = vsub.f32 %v8021_v57, %v8039_v35  ;;  %v5729_v63 = vmul.f32 1.442695, %v5707_v4  ;;  %v5712_v50 = vsub.f32 %v8023_v17, %v8041_v36 }
 0x23c   :  { %5930 = vpow2.f32 %v5719_v59  ;;  %v5731_v18 = vmul.f32 1.442695, %v5708_v54  ;;  %v5713_v30 = vsub.f32 %v8025_v38, %v8039_v35  ;;  %v5733_v19 = vmul.f32 1.442695, %v5709_v56 }
 0x23d   :  { %5932 = vpow2.f32 %v5721_v13  ;;  %v5714_v45 = vsub.f32 %v8029_v49, %v8041_v36  ;;  %v5735_v41 = vmul.f32 1.442695, %v5710_v23  ;;  %v5715_v62 = vsub.f32 %v8027_v20, %v8039_v35 }
 0x23e   :  { %5934 = vpow2.f32 %v5723_v55  ;;  %v5737_v12 = vmul.f32 1.442695, %v5711_v10  ;;  %v5716_v40 = vsub.f32 %v8031_v52, %v8041_v36  ;;  %v5739_v39 = vmul.f32 1.442695, %v5712_v50 }
 0x23f   :  { %5936 = vpow2.f32 %v5725_v2  ;;  %v5741_v9 = vmul.f32 1.442695, %v5713_v30  ;;  %v5743_v60 = vmul.f32 1.442695, %v5714_v45  ;;  %v5745_v57 = vmul.f32 1.442695, %v5715_v62 }
 0x240   :  { %5938 = vpow2.f32 %v5727_v61  ;;  %v5747_v17 = vmul.f32 1.442695, %v5716_v40 }
 0x241   :  { %5940 = vpow2.f32 %v5729_v63 }
 0x242   :  { %5942 = vpow2.f32 %v5731_v18 }
 0x243   :  { %5944 = vpow2.f32 %v5733_v19 }
 0x244   :  { %5946 = vpow2.f32 %v5735_v41 }
 0x245   :  { %5948 = vpow2.f32 %v5737_v12 }
 0x246   :  { %5950 = vpow2.f32 %v5739_v39 }
 0x247   :  { %5952 = vpow2.f32 %v5741_v9 }
 0x248   :  { %v5929_v38 = vpop.eup %5928  ;;  %5954 = vpow2.f32 %v5743_v60 }
 0x249   :  { %v5931_v53 = vpop.eup %5930  ;;  %5956 = vpow2.f32 %v5745_v57 }
 0x24a   :  { %v5933_v20 = vpop.eup %5932  ;;  %5958 = vpow2.f32 %v5747_v17 }
 0x24b   :  { %v5935_v16 = vpop.eup %5934  ;;  %v5749_v49 = vadd.f32 %v5933_v20, %v5929_v38 }
 0x24c   :  { %v5937_v52 = vpop.eup %5936  ;;  %v5756_v32 = vadd.f32 %v5935_v16, %v5931_v53 }
 0x24d   :  { %v5939_v22 = vpop.eup %5938  ;;  %v5750_v48 = vadd.f32 %v5937_v52, %v5749_v49 }
 0x24e   :  { %v5941_v46 = vpop.eup %5940  ;;  %v5757_v15 = vadd.f32 %v5939_v22, %v5756_v32 }
 0x24f   :  { %v5943_v29 = vpop.eup %5942  ;;  %v5751_v21 = vadd.f32 %v5941_v46, %v5750_v48 }
 0x250   :  { %v5945_v3 = vpop.eup %5944  ;;  %v5758_v51 = vadd.f32 %v5943_v29, %v5757_v15 }
 0x251   :  { %v5947_v11 = vpop.eup %5946  ;;  %v5752_v31 = vadd.f32 %v5945_v3, %v5751_v21 }
 0x252   :  { %v5949_v43 = vpop.eup %5948  ;;  %v5759_v34 = vadd.f32 %v5947_v11, %v5758_v51 }
 0x253   :  { %v5951_v26 = vpop.eup %5950  ;;  %v5753_v44 = vadd.f32 %v5949_v43, %v5752_v31 }
 0x254   :  { %v5953_v47 = vpop.eup %5952  ;;  %v5760_v37 = vadd.f32 %v5951_v26, %v5759_v34 }
 0x255   :  { %v5955_v7 = vpop.eup %5954  ;;  %v5754_v1 = vadd.f32 %v5953_v47, %v5753_v44 }
 0x256   :  { %v5957_v28 = vpop.eup %5956  ;;  %v5761_v33 = vadd.f32 %v5955_v7, %v5760_v37 }
 0x257   :  { %v5959_v58 = vpop.eup %5958  ;;  %v5755_v24 = vadd.f32 %v5957_v28, %v5754_v1 }
 0x258   :  { %v5762_v6 = vadd.f32 %v5959_v58, %v5761_v33 }
 0x259   :  { %v5763_v27 = vrot.slane %v5755_v24, 4 }
 0x25a   :  { %v5769_v42 = vrot.slane %v5762_v6, 4 }
 0x25b   :  { %v5764_v8 = vadd.f32 %v5763_v27, %v5755_v24 }
 0x25c   :  { %v5770_v14 = vadd.f32 %v5769_v42, %v5762_v6 }
 0x25d   :  { %v5765_v4 = vrot.slane %v5764_v8, 2 }
 0x25e   :  { %v5771_v25 = vrot.slane %v5770_v14, 2 }
 0x25f   :  { %v5766_v59 = vadd.f32 %v5765_v4, %v5764_v8 }
 0x260   :  { %v5772_v13 = vadd.f32 %v5771_v25, %v5770_v14 }
 0x261   :  { %v5767_v54 = vrot.slane %v5766_v59, 1 }
 0x262   :  { %v5773_v55 = vrot.slane %v5772_v13, 1 }
 0x263   :  { %v5768_v56 = vadd.f32 %v5767_v54, %v5766_v59 }
 0x264   :  { %v5774_v2 = vadd.f32 %v5773_v55, %v5772_v13 }
 0x265   :  { %5960 = vlog2.f32 %v5768_v56 }
 0x266   :  { %5962 = vlog2.f32 %v5774_v2 }
 0x272   :  { %v5961_v23 = vpop.eup %5960 }
 0x273   :  { %v5963_v61 = vpop.eup %5962  ;;  %v5776_v10 = vmul.f32 0.6931472, %v5961_v23 }
 0x274   :  { %v5778_v63 = vmul.f32 0.6931472, %v5963_v61 }
 0x275   :  { %v5779_v50 = vadd.f32 %v5776_v10, %v8039_v35 }
 0x276   :  { %v5780_v18 = vadd.f32 %v5778_v63, %v8041_v36 }
 0x278   :  { %v5783_v30 = vcombine.low %v5779_v50, %v5780_v18 }
 0x27a   :  { %v5790_v19 = vrot.slane %v5783_v30, %v6118_v5 }
 0x27c   :  { %v5797_v45 = vrot.slane %v5790_v19, %v6118_v5 }
 0x27e   :  { %5803 = vst.msk [vmem:[#allocation10] sm:$0x3] %vm5801_vm0, %v5797_v45 }
 0x27f   :  { %6055 = shalt.err (!%p6052_p10)
}
 0x280   :  { %5813 = dma.vmem_to_hbm [thread:$0]  %s5811_s3, 32, %s8077_s4, [#allocation4]  }
 0x281   :  { %6070 = dma.done.wait [#allocation4], 32  }
 0x282   :  { %6071 = vsyncadd [#allocation4], 4294967264 }
 0x283   :  { %5817 = vsyncpa [#allocation3], 1 }
 0x284   :  { %5818 = vsyncpa [#allocation6], 1 }
 0x285   :  { %5819 = vsyncpa [#allocation9], 1 }
 0x286   :  { %5820 = vsyncpa [#allocation4], 1 }

</bundles_post_ra>
